<compile_context>
chip_gen: v6e
topology: v6e:2x2x1
jax: 0.10.0
libtpu: 0.0.40
codegen_flags: <defaults>
</compile_context>

<pallas_src>
import math
from functools import partial

import jax
import jax.numpy as jnp
from jax.experimental import pallas as pl
from jax.experimental.pallas import tpu as pltpu

PRIMITIVES = ['none', 'max_pool_3x3', 'avg_pool_3x3', 'skip_connect',
              'sep_conv_3x3', 'sep_conv_5x5', 'dil_conv_3x3', 'dil_conv_5x5']


# --------------------------------------------------------------------------
# Pallas kernels
# --------------------------------------------------------------------------
def _mm_bn_relu_kernel(x_ref, w_ref, s_ref, b_ref, o_ref, acc_ref):
    @pl.when(pl.program_id(2) == 0)
    def _():
        acc_ref[...] = jnp.zeros_like(acc_ref)

    acc_ref[...] += jnp.dot(x_ref[...], w_ref[...],
                            preferred_element_type=jnp.float32)

    @pl.when(pl.program_id(2) == pl.num_programs(2) - 1)
    def _():
        o_ref[...] = jnp.maximum(acc_ref[...] * s_ref[...] + b_ref[...], 0.0)


def _mm_bn_kernel(x_ref, w_ref, s_ref, b_ref, o_ref, acc_ref):
    @pl.when(pl.program_id(2) == 0)
    def _():
        acc_ref[...] = jnp.zeros_like(acc_ref)

    acc_ref[...] += jnp.dot(x_ref[...], w_ref[...],
                            preferred_element_type=jnp.float32)

    @pl.when(pl.program_id(2) == pl.num_programs(2) - 1)
    def _():
        o_ref[...] = acc_ref[...] * s_ref[...] + b_ref[...]


def _sum4_kernel(a_ref, b_ref, c_ref, d_ref, o_ref):
    o_ref[...] = a_ref[...] + b_ref[...] + c_ref[...] + d_ref[...]


# --------------------------------------------------------------------------
# Fused (matmul * bn_scale + bn_bias [+ReLU]) with tiled / pipelined grid
# --------------------------------------------------------------------------
def _round_up(v, m):
    return ((v + m - 1) // m) * m


# Tile caps keep double-buffered VMEM well under the per-generation budgets
# (v5e/v6e 128 MiB, v7x 64 MiB): ~3 MiB peak at (512, 512, 256) with bf16 operands.
_TM_CAP, _TK_CAP, _TN_CAP = 512, 512, 256


def _padded_dim(d, align, cap):
    """Return (padded_dim, tile) with tile | padded_dim and tile % align == 0."""
    dp = _round_up(max(d, align), align)
    if dp <= cap:
        return dp, dp
    return _round_up(dp, cap), cap


def fused_matmul_bn(x, w, scale, bias, relu=True):
    """o = act((x @ w) * scale + bias).  x:(M,K), w:(K,N), scale/bias:(N,), f32 out."""
    M, K = x.shape
    Kw, N = w.shape
    assert K == Kw
    Mp, tm = _padded_dim(M, 16, _TM_CAP)
    Kp, tk = _padded_dim(K, 128, _TK_CAP)
    Np, tn = _padded_dim(N, 128, _TN_CAP)

    # bf16 MXU operands, f32 accumulation + f32 epilogue (BN / ReLU).
    xb = x.astype(jnp.bfloat16)
    wb = w.astype(jnp.bfloat16)
    if (Mp, Kp) != (M, K):
        xb = jnp.pad(xb, ((0, Mp - M), (0, Kp - K)))
    if (Kp, Np) != (K, N):
        wb = jnp.pad(wb, ((0, Kp - K), (0, Np - N)))
    sp = jnp.pad(scale.astype(jnp.float32), (0, Np - N)).reshape(1, Np)
    bp = jnp.pad(bias.astype(jnp.float32), (0, Np - N)).reshape(1, Np)

    grid = (Mp // tm, Np // tn, Kp // tk)

    flops = 2 * Mp * Kp * Np
    bytes_accessed = (Mp * Kp + Kp * Np) * 2 + Mp * Np * 4 + 2 * Np * 4
    # double-buffered inputs/outputs + accumulator scratch, plus headroom
    vmem_est = (2 * (tm * tk + tk * tn) * 2 + 2 * tm * tn * 4
                + tm * tn * 4 + 4 * tn * 4)
    vmem_limit = int(min(max(2 * vmem_est + (4 << 20), 16 << 20), 32 << 20))

    kernel = _mm_bn_relu_kernel if relu else _mm_bn_kernel
    out = pl.pallas_call(
        kernel,
        out_shape=jax.ShapeDtypeStruct((Mp, Np), jnp.float32),
        grid=grid,
        in_specs=[pl.BlockSpec((tm, tk), lambda i, j, k: (i, k)),
                  pl.BlockSpec((tk, tn), lambda i, j, k: (k, j)),
                  pl.BlockSpec((1, tn), lambda i, j, k: (0, j)),
                  pl.BlockSpec((1, tn), lambda i, j, k: (0, j))],
        out_specs=pl.BlockSpec((tm, tn), lambda i, j, k: (i, j)),
        scratch_shapes=[pltpu.VMEM((tm, tn), jnp.float32)],
        compiler_params=pltpu.CompilerParams(
            dimension_semantics=("parallel", "parallel", "arbitrary"),
            vmem_limit_bytes=vmem_limit),
        cost_estimate=pl.CostEstimate(flops=flops, transcendentals=0,
                                      bytes_accessed=bytes_accessed),
    )(xb, wb, sp, bp)
    if (Mp, Np) != (M, N):
        out = out[:M, :N]
    return out


def pallas_sum4(a, b, c, d):
    """Lane-dense, row-tiled elementwise sum of 4 equally-shaped tensors."""
    shape = a.shape
    total = math.prod(shape)
    L = 512                                      # lane width: multiple of 128
    rows = -(-total // L)
    tr = 256 if rows > 256 else _round_up(rows, 8)
    rows_p = _round_up(rows, tr)
    pad = rows_p * L - total

    def prep(t):
        f = t.reshape(-1).astype(jnp.float32)
        if pad:
            f = jnp.pad(f, (0, pad))
        return f.reshape(rows_p, L)

    a2, b2, c2, d2 = prep(a), prep(b), prep(c), prep(d)
    out = pl.pallas_call(
        _sum4_kernel,
        out_shape=jax.ShapeDtypeStruct((rows_p, L), jnp.float32),
        grid=(rows_p // tr,),
        in_specs=[pl.BlockSpec((tr, L), lambda i: (i, 0))] * 4,
        out_specs=pl.BlockSpec((tr, L), lambda i: (i, 0)),
        compiler_params=pltpu.CompilerParams(dimension_semantics=("parallel",)),
    )(a2, b2, c2, d2)
    return out.reshape(-1)[:total].reshape(shape)


# --------------------------------------------------------------------------
# Conv / pooling / upsample glue built on top of the Pallas matmul kernel
# --------------------------------------------------------------------------
def conv_bn(x, p, stride=1, dilation=1, relu=True):
    """Conv2d(padding=dilation*(k//2)) + folded BatchNorm (+ReLU)."""
    w = p['w']                       # (kh, kw, cin, cout)
    kh, kw, cin, cout = w.shape
    B, H, W, _ = x.shape
    ph = dilation * (kh // 2)
    pw = dilation * (kw // 2)
    Ho = (H + 2 * ph - dilation * (kh - 1) - 1) // stride + 1
    Wo = (W + 2 * pw - dilation * (kw - 1) - 1) // stride + 1
    if kh == 1 and kw == 1 and stride == 1:
        cols = x
    else:
        # TODO(synk): im2col kept in XLA for the few kh>1 convs (stems, ASPP b1);
        #             a tap-axis in the matmul grid would remove the kh*kw blow-up.
        xpad = jnp.pad(x, ((0, 0), (ph, ph), (pw, pw), (0, 0)))
        patches = []
        for i in range(kh):
            for j in range(kw):
                patches.append(
                    xpad[:, i * dilation:i * dilation + stride * (Ho - 1) + 1:stride,
                            j * dilation:j * dilation + stride * (Wo - 1) + 1:stride, :])
        cols = jnp.concatenate(patches, axis=-1)
    flat = cols.reshape(B * Ho * Wo, kh * kw * cin)
    out = fused_matmul_bn(flat, w.reshape(kh * kw * cin, cout),
                          p['scale'], p['bias'], relu=relu)
    return out.reshape(B, Ho, Wo, cout)


def avg_pool2(x):
    B, H, W, C = x.shape
    return x.reshape(B, H // 2, 2, W // 2, 2, C).mean(axis=(2, 4))


def upsample_bilinear(x, out_h, out_w):
    """Bilinear, align_corners=True (matches nn.Upsample(..., align_corners=True))."""
    B, H, W, C = x.shape

    def coords(o, i):
        if o > 1 and i > 1:
            src = jnp.arange(o, dtype=jnp.float32) * (i - 1) / (o - 1)
        else:
            src = jnp.zeros((o,), jnp.float32)
        i0 = jnp.floor(src).astype(jnp.int32)
        i1 = jnp.minimum(i0 + 1, i - 1)
        return i0, i1, (src - i0).astype(jnp.float32)

    h0, h1, fh = coords(out_h, H)
    w0, w1, fw = coords(out_w, W)
    xh = x[:, h0] * (1.0 - fh)[None, :, None, None] + x[:, h1] * fh[None, :, None, None]
    out = xh[:, :, w0] * (1.0 - fw)[None, None, :, None] + xh[:, :, w1] * fw[None, None, :, None]
    return out


# --------------------------------------------------------------------------
# Deterministic parameter initialization
# --------------------------------------------------------------------------
class KeyGen:
    def __init__(self, seed):
        self._key = jax.random.PRNGKey(seed)

    def __call__(self):
        self._key, sub = jax.random.split(self._key)
        return sub


def init_conv_bn(kg, kh, kw, cin, cout):
    w = jax.random.normal(kg(), (kh, kw, cin, cout), jnp.float32) * (1.0 / math.sqrt(kh * kw * cin))
    conv_b = 0.01 * jax.random.normal(kg(), (cout,), jnp.float32)
    gamma = 1.0 + 0.1 * jax.random.normal(kg(), (cout,), jnp.float32)
    beta = 0.1 * jax.random.normal(kg(), (cout,), jnp.float32)
    eps = 1e-5
    # TODO(synk): BatchNorm folded with running stats (mean=0, var=1), i.e. eval-mode BN.
    scale = gamma / jnp.sqrt(1.0 + eps)
    bias = conv_b * scale + beta
    return {'w': w, 'scale': scale, 'bias': bias}


def init_cell(kg, step, B, pp_F, down_F, same_F, up_F, F_out):
    C = F_out
    p = {}
    if pp_F is not None and pp_F != -1:
        p['pre_pp'] = init_conv_bn(kg, 1, 1, pp_F * B, C)
    if down_F is not None:
        p['pre_down'] = init_conv_bn(kg, 1, 1, down_F * B, C)
    if same_F is not None:
        p['pre_same'] = init_conv_bn(kg, 1, 1, same_F * B, C)
    if up_F is not None:
        p['pre_up'] = init_conv_bn(kg, 1, 1, up_F * B, C)
    k_edges = sum(2 + i for i in range(step))
    edges = [init_conv_bn(kg, 1, 1, C, C) for _ in range(k_edges)]
    # Pre-fold BN scale into the edge 1x1 weights and stack them once at init
    # so the forward pass only scales by (alpha, gamma) scalars.
    p['edge_w'] = jnp.stack([e['w'].reshape(C, C) * e['scale'][None, :] for e in edges])
    p['edge_b'] = jnp.stack([e['bias'] for e in edges])
    return p


def init_aspp(kg, cin, num_classes):
    # TODO(synk): exact ASPP class from the source repo is not provided; standard
    #             (1x1 + dilated 3x3 + image-pool, concat, 1x1 projection) structure used.
    cmid = cin
    return {'b0': init_conv_bn(kg, 1, 1, cin, cmid),
            'b1': init_conv_bn(kg, 3, 3, cin, cmid),
            'gp': init_conv_bn(kg, 1, 1, cin, cmid),
            'proj': init_conv_bn(kg, 1, 1, 3 * cmid, num_classes)}


def init_autodeeplab(seed, num_classes, num_layers, filter_multiplier=8, block_multiplier=5, step=5):
    kg = KeyGen(seed)
    F, B = filter_multiplier, block_multiplier
    half_f = F // 2
    k_edges = sum(2 + i for i in range(step))
    params = {
        'alphas': 0.001 * jax.random.normal(kg(), (k_edges, len(PRIMITIVES)), jnp.float32),
        'betas': 0.001 * jax.random.normal(kg(), (num_layers, 4, 3), jnp.float32),
        'gammas': 0.001 * jax.random.normal(kg(), (k_edges,), jnp.float32),
        'stem0': init_conv_bn(kg, 3, 3, 3, half_f * B),
        'stem1': init_conv_bn(kg, 3, 3, half_f * B, half_f * B),
        'stem2': init_conv_bn(kg, 3, 3, half_f * B, F * B),
    }
    cell_specs = []
    for i in range(num_layers):
        if i == 0:
            cell_specs += [(-1, None, F, None, F), (-1, F, None, None, F * 2)]
        elif i == 1:
            cell_specs += [(F, None, F, F * 2, F), (-1, F, F * 2, None, F * 2),
                           (-1, F * 2, None, None, F * 4)]
        elif i == 2:
            cell_specs += [(F, None, F, F * 2, F), (F * 2, F, F * 2, F * 4, F * 2),
                           (-1, F * 2, F * 4, None, F * 4), (-1, F * 4, None, None, F * 8)]
        elif i == 3:
            cell_specs += [(F, None, F, F * 2, F), (F * 2, F, F * 2, F * 4, F * 2),
                           (F * 4, F * 2, F * 4, F * 8, F * 4), (-1, F * 4, F * 8, None, F * 8)]
        else:
            cell_specs += [(F, None, F, F * 2, F), (F * 2, F, F * 2, F * 4, F * 2),
                           (F * 4, F * 2, F * 4, F * 8, F * 4), (F * 8, F * 4, F * 8, None, F * 8)]
    params['cells'] = [init_cell(kg, step, B, *spec) for spec in cell_specs]
    params['aspp_4'] = init_aspp(kg, F * B, num_classes)
    params['aspp_8'] = init_aspp(kg, F * 2 * B, num_classes)
    params['aspp_16'] = init_aspp(kg, F * 4 * B, num_classes)
    params['aspp_32'] = init_aspp(kg, F * 8 * B, num_classes)
    config = dict(num_layers=num_layers, step=step, B=B)
    return params, config


# --------------------------------------------------------------------------
# Cell / ASPP forward
# --------------------------------------------------------------------------
def cell_forward(p, s0, x_down, x_same, x_up, alphas, gammas, step, B):
    """One cell_level_search.Cell: returns one output per present (down, same, up) input."""
    C = p['edge_w'].shape[-1]

    if s0 is not None and 'pre_pp' in p:
        s0_pre = conv_bn(s0, p['pre_pp'], relu=True)
    else:
        # TODO(synk): source Cell's handling of a missing prev_prev input is unavailable; zeros used.
        s0_pre = None

    # TODO(synk): true PRIMITIVES (sep_conv/dil_conv/pool 3x3/5x5) not reproduced exactly;
    #             pools/skip -> identity surrogate, sep/dil convs -> learned 1x1 conv surrogate,
    #             the 'none' weight (alphas[...,0]) is dropped, matching the previous version.
    w_skip = alphas[:, 1] + alphas[:, 2] + alphas[:, 3]
    w_conv = alphas[:, 4] + alphas[:, 5] + alphas[:, 6] + alphas[:, 7]
    eye = jnp.eye(C, dtype=jnp.float32)
    ones_c = jnp.ones((C,), jnp.float32)

    def run_branch(s1_pre):
        bsz, H, W, _ = s1_pre.shape
        states = [s0_pre if s0_pre is not None else jnp.zeros_like(s1_pre), s1_pre]
        offset = 0
        for _ in range(step):
            n_in = len(states)
            # Fold the whole step (all its edges' mixed-ops + the gamma-weighted sum)
            # into ONE matmul:  new = concat_j(h_j) @ concat_K_j(W_eff_j) + bias_sum
            # with W_eff_j = gamma_j*(w_conv_j*W_j*scale_j + w_skip_j*I).
            ws, bias = [], jnp.zeros((C,), jnp.float32)
            for j in range(n_in):
                e = offset + j
                ws.append(gammas[e] * (w_conv[e] * p['edge_w'][e] + w_skip[e] * eye))
                bias = bias + gammas[e] * w_conv[e] * p['edge_b'][e]
            w_cat = jnp.concatenate(ws, axis=0)                        # (n_in*C, C)
            x_cat = jnp.concatenate(states, axis=-1)                   # (B,H,W,n_in*C)
            flat = x_cat.reshape(bsz * H * W, n_in * C)
            new = fused_matmul_bn(flat, w_cat, ones_c, bias, relu=False)
            states.append(new.reshape(bsz, H, W, C))
            offset += n_in
        return jnp.concatenate(states[-B:], axis=-1)

    outs = []
    if x_down is not None:
        outs.append(run_branch(conv_bn(avg_pool2(x_down), p['pre_down'], relu=True)))
    if x_same is not None:
        outs.append(run_branch(conv_bn(x_same, p['pre_same'], relu=True)))
    if x_up is not None:
        _, hh, ww, _ = x_up.shape
        outs.append(run_branch(conv_bn(upsample_bilinear(x_up, 2 * hh, 2 * ww),
                                       p['pre_up'], relu=True)))
    return tuple(outs)


def aspp_forward(p, x, dilation):
    b0 = conv_bn(x, p['b0'], relu=True)
    b1 = conv_bn(x, p['b1'], dilation=dilation, relu=True)
    g = jnp.mean(x, axis=(1, 2), keepdims=True)
    g = conv_bn(g, p['gp'], relu=True)
    g = jnp.broadcast_to(g, b0.shape)
    cat = jnp.concatenate([b0, b1, g], axis=-1)
    return conv_bn(cat, p['proj'], relu=False)


# --------------------------------------------------------------------------
# AutoDeeplab forward (whole forward is one jit; conv shapes are tile-bucketed)
# --------------------------------------------------------------------------
@partial(jax.jit, static_argnames=('num_layers', 'step', 'B'))
def autodeeplab_forward(params, x_nchw, *, num_layers, step, B):
    x = jnp.transpose(x_nchw, (0, 2, 3, 1)).astype(jnp.float32)   # NCHW -> NHWC
    Hin, Win = x.shape[1], x.shape[2]

    level_4, level_8, level_16, level_32 = [], [], [], []
    temp = conv_bn(x, params['stem0'], stride=2, relu=True)
    temp = conv_bn(temp, params['stem1'], stride=1, relu=True)
    level_4.append(conv_bn(temp, params['stem2'], stride=2, relu=True))

    # --- normalized architecture parameters (mirrors the PyTorch forward) ---
    k_edges = sum(2 + i for i in range(step))
    na = jax.nn.softmax(params['alphas'], axis=-1)
    ng = jnp.zeros((k_edges,), jnp.float32)
    off = 0
    for i in range(step):
        ng = ng.at[off:off + i + 2].set(jax.nn.softmax(params['gammas'][off:off + i + 2]))
        off += i + 2
    betas = params['betas']
    nb = jnp.zeros((num_layers, 4, 3), jnp.float32)
    for layer in range(num_layers):
        nb = nb.at[layer, 0, 1:].set(jax.nn.softmax(betas[layer, 0, 1:]) * (2.0 / 3.0))
        if layer >= 1:
            nb = nb.at[layer, 1].set(jax.nn.softmax(betas[layer, 1]))
        if layer >= 2:
            nb = nb.at[layer, 2].set(jax.nn.softmax(betas[layer, 2]))
        if layer >= 3:
            nb = nb.at[layer, 3, :2].set(jax.nn.softmax(betas[layer, 3, :2]) * (2.0 / 3.0))

    cells = params['cells']
    cf = lambda p_, s0, xd, xs, xu: cell_forward(p_, s0, xd, xs, xu, na, ng, step, B)
    count = 0
    for layer in range(num_layers):
        if layer == 0:
            (l4n,) = cf(cells[count], None, None, level_4[-1], None); count += 1
            (l8n,) = cf(cells[count], None, level_4[-1], None, None); count += 1
            level_4.append(nb[layer, 0, 1] * l4n)
            level_8.append(nb[layer, 0, 2] * l8n)
        elif layer == 1:
            l4_1, l4_2 = cf(cells[count], level_4[-2], None, level_4[-1], level_8[-1]); count += 1
            l4n = nb[layer, 0, 1] * l4_1 + nb[layer, 1, 0] * l4_2
            l8_1, l8_2 = cf(cells[count], None, level_4[-1], level_8[-1], None); count += 1
            l8n = nb[layer, 0, 2] * l8_1 + nb[layer, 1, 2] * l8_2
            (l16n,) = cf(cells[count], None, level_8[-1], None, None); count += 1
            l16n = nb[layer, 1, 2] * l16n
            level_4.append(l4n); level_8.append(l8n); level_16.append(l16n)
            level_4.pop(0)
        elif layer == 2:
            l4_1, l4_2 = cf(cells[count], level_4[-2], None, level_4[-1], level_8[-1]); count += 1
            l4n = nb[layer, 0, 1] * l4_1 + nb[layer, 1, 0] * l4_2
            l8_1, l8_2, l8_3 = cf(cells[count], level_8[-2], level_4[-1], level_8[-1], level_16[-1]); count += 1
            l8n = nb[layer, 0, 2] * l8_1 + nb[layer, 1, 1] * l8_2 + nb[layer, 2, 0] * l8_3
            l16_1, l16_2 = cf(cells[count], None, level_8[-1], level_16[-1], None); count += 1
            l16n = nb[layer, 1, 2] * l16_1 + nb[layer, 2, 1] * l16_2
            (l32n,) = cf(cells[count], None, level_16[-1], None, None); count += 1
            l32n = nb[layer, 2, 2] * l32n
            level_4.append(l4n); level_8.append(l8n); level_16.append(l16n); level_32.append(l32n)
            level_4.pop(0); level_8.pop(0)
        elif layer == 3:
            l4_1, l4_2 = cf(cells[count], level_4[-2], None, level_4[-1], level_8[-1]); count += 1
            l4n = nb[layer, 0, 1] * l4_1 + nb[layer, 1, 0] * l4_2
            l8_1, l8_2, l8_3 = cf(cells[count], level_8[-2], level_4[-1], level_8[-1], level_16[-1]); count += 1
            l8n = nb[layer, 0, 2] * l8_1 + nb[layer, 1, 1] * l8_2 + nb[layer, 2, 0] * l8_3
            l16_1, l16_2, l16_3 = cf(cells[count], level_16[-2], level_8[-1], level_16[-1], level_32[-1]); count += 1
            l16n = nb[layer, 1, 2] * l16_1 + nb[layer, 2, 1] * l16_2 + nb[layer, 3, 0] * l16_3
            l32_1, l32_2 = cf(cells[count], None, level_16[-1], level_32[-1], None); count += 1
            l32n = nb[layer, 2, 2] * l32_1 + nb[layer, 3, 1] * l32_2
            level_4.append(l4n); level_8.append(l8n); level_16.append(l16n); level_32.append(l32n)
            level_4.pop(0); level_8.pop(0); level_16.pop(0)
        else:
            l4_1, l4_2 = cf(cells[count], level_4[-2], None, level_4[-1], level_8[-1]); count += 1
            l4n = nb[layer, 0, 1] * l4_1 + nb[layer, 1, 0] * l4_2
            l8_1, l8_2, l8_3 = cf(cells[count], level_8[-2], level_4[-1], level_8[-1], level_16[-1]); count += 1
            l8n = nb[layer, 0, 2] * l8_1 + nb[layer, 1, 1] * l8_2 + nb[layer, 2, 0] * l8_3
            l16_1, l16_2, l16_3 = cf(cells[count], level_16[-2], level_8[-1], level_16[-1], level_32[-1]); count += 1
            l16n = nb[layer, 1, 2] * l16_1 + nb[layer, 2, 1] * l16_2 + nb[layer, 3, 0] * l16_3
            l32_1, l32_2 = cf(cells[count], level_32[-2], level_16[-1], level_32[-1], None); count += 1
            l32n = nb[layer, 2, 2] * l32_1 + nb[layer, 3, 1] * l32_2
            level_4.append(l4n); level_8.append(l8n); level_16.append(l16n); level_32.append(l32n)
            level_4.pop(0); level_8.pop(0); level_16.pop(0); level_32.pop(0)

    # TODO(synk): the bilinear upsample is not fused into the sum kernel; the 4 full-res
    #             maps are materialized in HBM before the lane-dense sum4 kernel.
    a4 = upsample_bilinear(aspp_forward(params['aspp_4'], level_4[-1], 24), Hin, Win)
    a8 = upsample_bilinear(aspp_forward(params['aspp_8'], level_8[-1], 12), Hin, Win)
    a16 = upsample_bilinear(aspp_forward(params['aspp_16'], level_16[-1], 6), Hin, Win)
    a32 = upsample_bilinear(aspp_forward(params['aspp_32'], level_32[-1], 3), Hin, Win)
    summed = pallas_sum4(a4, a8, a16, a32)
    return jnp.transpose(summed, (0, 3, 1, 2))   # NHWC -> NCHW


# --------------------------------------------------------------------------
if __name__ == "__main__":
    key = jax.random.PRNGKey(0)
    # small config: num_classes=3, num_layers=4, filter_multiplier=4, block_multiplier=2, step=2
    x = jax.random.normal(key, (2, 3, 32, 32), jnp.float32)   # NCHW, like the PyTorch module
    params, cfg = init_autodeeplab(seed=0, num_classes=3, num_layers=4,
                                   filter_multiplier=4, block_multiplier=2, step=2)
    out = autodeeplab_forward(params, x, **cfg)
    out = jax.block_until_ready(out)
    assert out.shape == (2, 3, 32, 32) and out.dtype == jnp.float32
    print("KERNEL_OK")
</pallas_src>

<mosaic_0001>
module attributes {stable_mosaic.version = 11 : i64} {
  func.func @_mm_bn_relu_kernel(%arg0: i32, %arg1: i32, %arg2: i32, %arg3: memref<512x128xbf16, #tpu.memory_space<vmem>>, %arg4: memref<128x128xbf16, #tpu.memory_space<vmem>>, %arg5: memref<1x128xf32, #tpu.memory_space<vmem>>, %arg6: memref<1x128xf32, #tpu.memory_space<vmem>>, %arg7: memref<512x128xf32, #tpu.memory_space<vmem>>, %arg8: memref<512x128xf32, #tpu.memory_space<vmem>>) attributes {dimension_semantics = [#tpu.dimension_semantics<parallel>, #tpu.dimension_semantics<parallel>, #tpu.dimension_semantics<arbitrary>], iteration_bounds = array<i64: 1, 1, 1>, scalar_prefetch = 0 : i64, scratch_operands = 1 : i64, tpu.core_type = #tpu.core_type<tc>, window_params = [{transform_indices = @transform_0, window_bounds = array<i64: 512, 128>}, {transform_indices = @transform_1, window_bounds = array<i64: 128, 128>}, {transform_indices = @transform_2, window_bounds = array<i64: 1, 128>}, {transform_indices = @transform_3, window_bounds = array<i64: 1, 128>}, {transform_indices = @transform_4, window_bounds = array<i64: 512, 128>}]} {
    %c0_i32 = arith.constant 0 : i32
    %0 = arith.cmpi eq, %arg2, %c0_i32 : i32
    %1 = arith.extui %0 : i1 to i32
    %c0_i32_0 = arith.constant 0 : i32
    %2 = arith.cmpi ne, %1, %c0_i32_0 : i32
    scf.if %2 {
      %cst_10 = arith.constant 0.000000e+00 : f32
      %12 = vector.broadcast %cst_10 : f32 to vector<512x128xf32>
      %c0_11 = arith.constant 0 : index
      %c0_12 = arith.constant 0 : index
      %13 = vector.load %arg8[%c0_11, %c0_12] : memref<512x128xf32, #tpu.memory_space<vmem>>, vector<512x128xf32>
      tpu.vector_store %arg8[%c0_11, %c0_12], %12 {strides = array<i32>} : memref<512x128xf32, #tpu.memory_space<vmem>>, vector<512x128xf32>,
    } else {
    }
    %c0 = arith.constant 0 : index
    %c0_1 = arith.constant 0 : index
    %3 = vector.load %arg8[%c0, %c0_1] : memref<512x128xf32, #tpu.memory_space<vmem>>, vector<512x128xf32>
    %c0_2 = arith.constant 0 : index
    %c0_3 = arith.constant 0 : index
    %4 = vector.load %arg3[%c0_2, %c0_3] : memref<512x128xbf16, #tpu.memory_space<vmem>>, vector<512x128xbf16>
    %c0_4 = arith.constant 0 : index
    %c0_5 = arith.constant 0 : index
    %5 = vector.load %arg4[%c0_4, %c0_5] : memref<128x128xbf16, #tpu.memory_space<vmem>>, vector<128x128xbf16>
    %cst = arith.constant dense<0.000000e+00> : vector<512x128xf32>
    %6 = tpu.matmul %4, %5, %cst {dimension_numbers = #tpu.dot_dimension_numbers<[1], [0], [0], [1], [0, 0, 1, 1], [], []>} : vector<512x128xbf16>, vector<128x128xbf16>, vector<512x128xf32> -> vector<512x128xf32>
    %7 = arith.addf %3, %6 : vector<512x128xf32>
    %c0_6 = arith.constant 0 : index
    %c0_7 = arith.constant 0 : index
    %8 = vector.load %arg8[%c0_6, %c0_7] : memref<512x128xf32, #tpu.memory_space<vmem>>, vector<512x128xf32>
    tpu.vector_store %arg8[%c0_6, %c0_7], %7 {strides = array<i32>} : memref<512x128xf32, #tpu.memory_space<vmem>>, vector<512x128xf32>,
    %c0_i32_8 = arith.constant 0 : i32
    %9 = arith.cmpi eq, %arg2, %c0_i32_8 : i32
    %10 = arith.extui %9 : i1 to i32
    %c0_i32_9 = arith.constant 0 : i32
    %11 = arith.cmpi ne, %10, %c0_i32_9 : i32
    scf.if %11 {
      %c0_10 = arith.constant 0 : index
      %c0_11 = arith.constant 0 : index
      %12 = vector.load %arg8[%c0_10, %c0_11] : memref<512x128xf32, #tpu.memory_space<vmem>>, vector<512x128xf32>
      %c0_12 = arith.constant 0 : index
      %c0_13 = arith.constant 0 : index
      %13 = vector.load %arg5[%c0_12, %c0_13] : memref<1x128xf32, #tpu.memory_space<vmem>>, vector<1x128xf32>
      %14 = vector.broadcast %13 : vector<1x128xf32> to vector<512x128xf32>
      %15 = arith.mulf %12, %14 : vector<512x128xf32>
      %c0_14 = arith.constant 0 : index
      %c0_15 = arith.constant 0 : index
      %16 = vector.load %arg6[%c0_14, %c0_15] : memref<1x128xf32, #tpu.memory_space<vmem>>, vector<1x128xf32>
      %17 = vector.broadcast %16 : vector<1x128xf32> to vector<512x128xf32>
      %18 = arith.addf %15, %17 : vector<512x128xf32>
      %cst_16 = arith.constant 0.000000e+00 : f32
      %19 = vector.broadcast %cst_16 : f32 to vector<512x128xf32>
      %20 = arith.maximumf %18, %19 : vector<512x128xf32>
      %c0_17 = arith.constant 0 : index
      %c0_18 = arith.constant 0 : index
      %21 = vector.load %arg7[%c0_17, %c0_18] : memref<512x128xf32, #tpu.memory_space<vmem>>, vector<512x128xf32>
      tpu.vector_store %arg7[%c0_17, %c0_18], %20 {strides = array<i32>} : memref<512x128xf32, #tpu.memory_space<vmem>>, vector<512x128xf32>,
    } else {
    }
    return
  }
  func.func @transform_0(%arg0: i32, %arg1: i32, %arg2: i32) -> (i32, i32) {
    %c0_i32 = arith.constant 0 : i32
    return %arg0, %arg2 : i32, i32
  }
  func.func @transform_1(%arg0: i32, %arg1: i32, %arg2: i32) -> (i32, i32) {
    %c0_i32 = arith.constant 0 : i32
    return %arg2, %arg1 : i32, i32
  }
  func.func @transform_2(%arg0: i32, %arg1: i32, %arg2: i32) -> (i32, i32) {
    %c0_i32 = arith.constant 0 : i32
    %c0_i32_0 = arith.constant 0 : i32
    return %c0_i32, %arg1 : i32, i32
  }
  func.func @transform_3(%arg0: i32, %arg1: i32, %arg2: i32) -> (i32, i32) {
    %c0_i32 = arith.constant 0 : i32
    %c0_i32_0 = arith.constant 0 : i32
    return %c0_i32, %arg1 : i32, i32
  }
  func.func @transform_4(%arg0: i32, %arg1: i32, %arg2: i32) -> (i32, i32) {
    %c0_i32 = arith.constant 0 : i32
    return %arg0, %arg1 : i32, i32
  }
}

module attributes {stable_mosaic.version = 11 : i64} {
  func.func @_mm_bn_relu_kernel(%arg0: i32, %arg1: i32, %arg2: i32, %arg3: memref<128x128xbf16, #tpu.memory_space<vmem>>, %arg4: memref<128x128xbf16, #tpu.memory_space<vmem>>, %arg5: memref<1x128xf32, #tpu.memory_space<vmem>>, %arg6: memref<1x128xf32, #tpu.memory_space<vmem>>, %arg7: memref<128x128xf32, #tpu.memory_space<vmem>>, %arg8: memref<128x128xf32, #tpu.memory_space<vmem>>) attributes {dimension_semantics = [#tpu.dimension_semantics<parallel>, #tpu.dimension_semantics<parallel>, #tpu.dimension_semantics<arbitrary>], iteration_bounds = array<i64: 1, 1, 1>, scalar_prefetch = 0 : i64, scratch_operands = 1 : i64, tpu.core_type = #tpu.core_type<tc>, window_params = [{transform_indices = @transform_0, window_bounds = array<i64: 128, 128>}, {transform_indices = @transform_1, window_bounds = array<i64: 128, 128>}, {transform_indices = @transform_2, window_bounds = array<i64: 1, 128>}, {transform_indices = @transform_3, window_bounds = array<i64: 1, 128>}, {transform_indices = @transform_4, window_bounds = array<i64: 128, 128>}]} {
    %c0_i32 = arith.constant 0 : i32
    %0 = arith.cmpi eq, %arg2, %c0_i32 : i32
    %1 = arith.extui %0 : i1 to i32
    %c0_i32_0 = arith.constant 0 : i32
    %2 = arith.cmpi ne, %1, %c0_i32_0 : i32
    scf.if %2 {
      %cst_10 = arith.constant 0.000000e+00 : f32
      %12 = vector.broadcast %cst_10 : f32 to vector<128x128xf32>
      %c0_11 = arith.constant 0 : index
      %c0_12 = arith.constant 0 : index
      %13 = vector.load %arg8[%c0_11, %c0_12] : memref<128x128xf32, #tpu.memory_space<vmem>>, vector<128x128xf32>
      tpu.vector_store %arg8[%c0_11, %c0_12], %12 {strides = array<i32>} : memref<128x128xf32, #tpu.memory_space<vmem>>, vector<128x128xf32>,
    } else {
    }
    %c0 = arith.constant 0 : index
    %c0_1 = arith.constant 0 : index
    %3 = vector.load %arg8[%c0, %c0_1] : memref<128x128xf32, #tpu.memory_space<vmem>>, vector<128x128xf32>
    %c0_2 = arith.constant 0 : index
    %c0_3 = arith.constant 0 : index
    %4 = vector.load %arg3[%c0_2, %c0_3] : memref<128x128xbf16, #tpu.memory_space<vmem>>, vector<128x128xbf16>
    %c0_4 = arith.constant 0 : index
    %c0_5 = arith.constant 0 : index
    %5 = vector.load %arg4[%c0_4, %c0_5] : memref<128x128xbf16, #tpu.memory_space<vmem>>, vector<128x128xbf16>
    %cst = arith.constant dense<0.000000e+00> : vector<128x128xf32>
    %6 = tpu.matmul %4, %5, %cst {dimension_numbers = #tpu.dot_dimension_numbers<[1], [0], [0], [1], [0, 0, 1, 1], [], []>} : vector<128x128xbf16>, vector<128x128xbf16>, vector<128x128xf32> -> vector<128x128xf32>
    %7 = arith.addf %3, %6 : vector<128x128xf32>
    %c0_6 = arith.constant 0 : index
    %c0_7 = arith.constant 0 : index
    %8 = vector.load %arg8[%c0_6, %c0_7] : memref<128x128xf32, #tpu.memory_space<vmem>>, vector<128x128xf32>
    tpu.vector_store %arg8[%c0_6, %c0_7], %7 {strides = array<i32>} : memref<128x128xf32, #tpu.memory_space<vmem>>, vector<128x128xf32>,
    %c0_i32_8 = arith.constant 0 : i32
    %9 = arith.cmpi eq, %arg2, %c0_i32_8 : i32
    %10 = arith.extui %9 : i1 to i32
    %c0_i32_9 = arith.constant 0 : i32
    %11 = arith.cmpi ne, %10, %c0_i32_9 : i32
    scf.if %11 {
      %c0_10 = arith.constant 0 : index
      %c0_11 = arith.constant 0 : index
      %12 = vector.load %arg8[%c0_10, %c0_11] : memref<128x128xf32, #tpu.memory_space<vmem>>, vector<128x128xf32>
      %c0_12 = arith.constant 0 : index
      %c0_13 = arith.constant 0 : index
      %13 = vector.load %arg5[%c0_12, %c0_13] : memref<1x128xf32, #tpu.memory_space<vmem>>, vector<1x128xf32>
      %14 = vector.broadcast %13 : vector<1x128xf32> to vector<128x128xf32>
      %15 = arith.mulf %12, %14 : vector<128x128xf32>
      %c0_14 = arith.constant 0 : index
      %c0_15 = arith.constant 0 : index
      %16 = vector.load %arg6[%c0_14, %c0_15] : memref<1x128xf32, #tpu.memory_space<vmem>>, vector<1x128xf32>
      %17 = vector.broadcast %16 : vector<1x128xf32> to vector<128x128xf32>
      %18 = arith.addf %15, %17 : vector<128x128xf32>
      %cst_16 = arith.constant 0.000000e+00 : f32
      %19 = vector.broadcast %cst_16 : f32 to vector<128x128xf32>
      %20 = arith.maximumf %18, %19 : vector<128x128xf32>
      %c0_17 = arith.constant 0 : index
      %c0_18 = arith.constant 0 : index
      %21 = vector.load %arg7[%c0_17, %c0_18] : memref<128x128xf32, #tpu.memory_space<vmem>>, vector<128x128xf32>
      tpu.vector_store %arg7[%c0_17, %c0_18], %20 {strides = array<i32>} : memref<128x128xf32, #tpu.memory_space<vmem>>, vector<128x128xf32>,
    } else {
    }
    return
  }
  func.func @transform_0(%arg0: i32, %arg1: i32, %arg2: i32) -> (i32, i32) {
    %c0_i32 = arith.constant 0 : i32
    return %arg0, %arg2 : i32, i32
  }
  func.func @transform_1(%arg0: i32, %arg1: i32, %arg2: i32) -> (i32, i32) {
    %c0_i32 = arith.constant 0 : i32
    return %arg2, %arg1 : i32, i32
  }
  func.func @transform_2(%arg0: i32, %arg1: i32, %arg2: i32) -> (i32, i32) {
    %c0_i32 = arith.constant 0 : i32
    %c0_i32_0 = arith.constant 0 : i32
    return %c0_i32, %arg1 : i32, i32
  }
  func.func @transform_3(%arg0: i32, %arg1: i32, %arg2: i32) -> (i32, i32) {
    %c0_i32 = arith.constant 0 : i32
    %c0_i32_0 = arith.constant 0 : i32
    return %c0_i32, %arg1 : i32, i32
  }
  func.func @transform_4(%arg0: i32, %arg1: i32, %arg2: i32) -> (i32, i32) {
    %c0_i32 = arith.constant 0 : i32
    return %arg0, %arg1 : i32, i32
  }
}

module attributes {stable_mosaic.version = 11 : i64} {
  func.func @_mm_bn_relu_kernel(%arg0: i32, %arg1: i32, %arg2: i32, %arg3: memref<32x128xbf16, #tpu.memory_space<vmem>>, %arg4: memref<128x128xbf16, #tpu.memory_space<vmem>>, %arg5: memref<1x128xf32, #tpu.memory_space<vmem>>, %arg6: memref<1x128xf32, #tpu.memory_space<vmem>>, %arg7: memref<32x128xf32, #tpu.memory_space<vmem>>, %arg8: memref<32x128xf32, #tpu.memory_space<vmem>>) attributes {dimension_semantics = [#tpu.dimension_semantics<parallel>, #tpu.dimension_semantics<parallel>, #tpu.dimension_semantics<arbitrary>], iteration_bounds = array<i64: 1, 1, 1>, scalar_prefetch = 0 : i64, scratch_operands = 1 : i64, tpu.core_type = #tpu.core_type<tc>, window_params = [{transform_indices = @transform_0, window_bounds = array<i64: 32, 128>}, {transform_indices = @transform_1, window_bounds = array<i64: 128, 128>}, {transform_indices = @transform_2, window_bounds = array<i64: 1, 128>}, {transform_indices = @transform_3, window_bounds = array<i64: 1, 128>}, {transform_indices = @transform_4, window_bounds = array<i64: 32, 128>}]} {
    %c0_i32 = arith.constant 0 : i32
    %0 = arith.cmpi eq, %arg2, %c0_i32 : i32
    %1 = arith.extui %0 : i1 to i32
    %c0_i32_0 = arith.constant 0 : i32
    %2 = arith.cmpi ne, %1, %c0_i32_0 : i32
    scf.if %2 {
      %cst_10 = arith.constant 0.000000e+00 : f32
      %12 = vector.broadcast %cst_10 : f32 to vector<32x128xf32>
      %c0_11 = arith.constant 0 : index
      %c0_12 = arith.constant 0 : index
      %13 = vector.load %arg8[%c0_11, %c0_12] : memref<32x128xf32, #tpu.memory_space<vmem>>, vector<32x128xf32>
      tpu.vector_store %arg8[%c0_11, %c0_12], %12 {strides = array<i32>} : memref<32x128xf32, #tpu.memory_space<vmem>>, vector<32x128xf32>,
    } else {
    }
    %c0 = arith.constant 0 : index
    %c0_1 = arith.constant 0 : index
    %3 = vector.load %arg8[%c0, %c0_1] : memref<32x128xf32, #tpu.memory_space<vmem>>, vector<32x128xf32>
    %c0_2 = arith.constant 0 : index
    %c0_3 = arith.constant 0 : index
    %4 = vector.load %arg3[%c0_2, %c0_3] : memref<32x128xbf16, #tpu.memory_space<vmem>>, vector<32x128xbf16>
    %c0_4 = arith.constant 0 : index
    %c0_5 = arith.constant 0 : index
    %5 = vector.load %arg4[%c0_4, %c0_5] : memref<128x128xbf16, #tpu.memory_space<vmem>>, vector<128x128xbf16>
    %cst = arith.constant dense<0.000000e+00> : vector<32x128xf32>
    %6 = tpu.matmul %4, %5, %cst {dimension_numbers = #tpu.dot_dimension_numbers<[1], [0], [0], [1], [0, 0, 1, 1], [], []>} : vector<32x128xbf16>, vector<128x128xbf16>, vector<32x128xf32> -> vector<32x128xf32>
    %7 = arith.addf %3, %6 : vector<32x128xf32>
    %c0_6 = arith.constant 0 : index
    %c0_7 = arith.constant 0 : index
    %8 = vector.load %arg8[%c0_6, %c0_7] : memref<32x128xf32, #tpu.memory_space<vmem>>, vector<32x128xf32>
    tpu.vector_store %arg8[%c0_6, %c0_7], %7 {strides = array<i32>} : memref<32x128xf32, #tpu.memory_space<vmem>>, vector<32x128xf32>,
    %c0_i32_8 = arith.constant 0 : i32
    %9 = arith.cmpi eq, %arg2, %c0_i32_8 : i32
    %10 = arith.extui %9 : i1 to i32
    %c0_i32_9 = arith.constant 0 : i32
    %11 = arith.cmpi ne, %10, %c0_i32_9 : i32
    scf.if %11 {
      %c0_10 = arith.constant 0 : index
      %c0_11 = arith.constant 0 : index
      %12 = vector.load %arg8[%c0_10, %c0_11] : memref<32x128xf32, #tpu.memory_space<vmem>>, vector<32x128xf32>
      %c0_12 = arith.constant 0 : index
      %c0_13 = arith.constant 0 : index
      %13 = vector.load %arg5[%c0_12, %c0_13] : memref<1x128xf32, #tpu.memory_space<vmem>>, vector<1x128xf32>
      %14 = vector.broadcast %13 : vector<1x128xf32> to vector<32x128xf32>
      %15 = arith.mulf %12, %14 : vector<32x128xf32>
      %c0_14 = arith.constant 0 : index
      %c0_15 = arith.constant 0 : index
      %16 = vector.load %arg6[%c0_14, %c0_15] : memref<1x128xf32, #tpu.memory_space<vmem>>, vector<1x128xf32>
      %17 = vector.broadcast %16 : vector<1x128xf32> to vector<32x128xf32>
      %18 = arith.addf %15, %17 : vector<32x128xf32>
      %cst_16 = arith.constant 0.000000e+00 : f32
      %19 = vector.broadcast %cst_16 : f32 to vector<32x128xf32>
      %20 = arith.maximumf %18, %19 : vector<32x128xf32>
      %c0_17 = arith.constant 0 : index
      %c0_18 = arith.constant 0 : index
      %21 = vector.load %arg7[%c0_17, %c0_18] : memref<32x128xf32, #tpu.memory_space<vmem>>, vector<32x128xf32>
      tpu.vector_store %arg7[%c0_17, %c0_18], %20 {strides = array<i32>} : memref<32x128xf32, #tpu.memory_space<vmem>>, vector<32x128xf32>,
    } else {
    }
    return
  }
  func.func @transform_0(%arg0: i32, %arg1: i32, %arg2: i32) -> (i32, i32) {
    %c0_i32 = arith.constant 0 : i32
    return %arg0, %arg2 : i32, i32
  }
  func.func @transform_1(%arg0: i32, %arg1: i32, %arg2: i32) -> (i32, i32) {
    %c0_i32 = arith.constant 0 : i32
    return %arg2, %arg1 : i32, i32
  }
  func.func @transform_2(%arg0: i32, %arg1: i32, %arg2: i32) -> (i32, i32) {
    %c0_i32 = arith.constant 0 : i32
    %c0_i32_0 = arith.constant 0 : i32
    return %c0_i32, %arg1 : i32, i32
  }
  func.func @transform_3(%arg0: i32, %arg1: i32, %arg2: i32) -> (i32, i32) {
    %c0_i32 = arith.constant 0 : i32
    %c0_i32_0 = arith.constant 0 : i32
    return %c0_i32, %arg1 : i32, i32
  }
  func.func @transform_4(%arg0: i32, %arg1: i32, %arg2: i32) -> (i32, i32) {
    %c0_i32 = arith.constant 0 : i32
    return %arg0, %arg1 : i32, i32
  }
}

module attributes {stable_mosaic.version = 11 : i64} {
  func.func @_mm_bn_kernel(%arg0: i32, %arg1: i32, %arg2: i32, %arg3: memref<32x128xbf16, #tpu.memory_space<vmem>>, %arg4: memref<128x128xbf16, #tpu.memory_space<vmem>>, %arg5: memref<1x128xf32, #tpu.memory_space<vmem>>, %arg6: memref<1x128xf32, #tpu.memory_space<vmem>>, %arg7: memref<32x128xf32, #tpu.memory_space<vmem>>, %arg8: memref<32x128xf32, #tpu.memory_space<vmem>>) attributes {dimension_semantics = [#tpu.dimension_semantics<parallel>, #tpu.dimension_semantics<parallel>, #tpu.dimension_semantics<arbitrary>], iteration_bounds = array<i64: 1, 1, 1>, scalar_prefetch = 0 : i64, scratch_operands = 1 : i64, tpu.core_type = #tpu.core_type<tc>, window_params = [{transform_indices = @transform_0, window_bounds = array<i64: 32, 128>}, {transform_indices = @transform_1, window_bounds = array<i64: 128, 128>}, {transform_indices = @transform_2, window_bounds = array<i64: 1, 128>}, {transform_indices = @transform_3, window_bounds = array<i64: 1, 128>}, {transform_indices = @transform_4, window_bounds = array<i64: 32, 128>}]} {
    %c0_i32 = arith.constant 0 : i32
    %0 = arith.cmpi eq, %arg2, %c0_i32 : i32
    %1 = arith.extui %0 : i1 to i32
    %c0_i32_0 = arith.constant 0 : i32
    %2 = arith.cmpi ne, %1, %c0_i32_0 : i32
    scf.if %2 {
      %cst_10 = arith.constant 0.000000e+00 : f32
      %12 = vector.broadcast %cst_10 : f32 to vector<32x128xf32>
      %c0_11 = arith.constant 0 : index
      %c0_12 = arith.constant 0 : index
      %13 = vector.load %arg8[%c0_11, %c0_12] : memref<32x128xf32, #tpu.memory_space<vmem>>, vector<32x128xf32>
      tpu.vector_store %arg8[%c0_11, %c0_12], %12 {strides = array<i32>} : memref<32x128xf32, #tpu.memory_space<vmem>>, vector<32x128xf32>,
    } else {
    }
    %c0 = arith.constant 0 : index
    %c0_1 = arith.constant 0 : index
    %3 = vector.load %arg8[%c0, %c0_1] : memref<32x128xf32, #tpu.memory_space<vmem>>, vector<32x128xf32>
    %c0_2 = arith.constant 0 : index
    %c0_3 = arith.constant 0 : index
    %4 = vector.load %arg3[%c0_2, %c0_3] : memref<32x128xbf16, #tpu.memory_space<vmem>>, vector<32x128xbf16>
    %c0_4 = arith.constant 0 : index
    %c0_5 = arith.constant 0 : index
    %5 = vector.load %arg4[%c0_4, %c0_5] : memref<128x128xbf16, #tpu.memory_space<vmem>>, vector<128x128xbf16>
    %cst = arith.constant dense<0.000000e+00> : vector<32x128xf32>
    %6 = tpu.matmul %4, %5, %cst {dimension_numbers = #tpu.dot_dimension_numbers<[1], [0], [0], [1], [0, 0, 1, 1], [], []>} : vector<32x128xbf16>, vector<128x128xbf16>, vector<32x128xf32> -> vector<32x128xf32>
    %7 = arith.addf %3, %6 : vector<32x128xf32>
    %c0_6 = arith.constant 0 : index
    %c0_7 = arith.constant 0 : index
    %8 = vector.load %arg8[%c0_6, %c0_7] : memref<32x128xf32, #tpu.memory_space<vmem>>, vector<32x128xf32>
    tpu.vector_store %arg8[%c0_6, %c0_7], %7 {strides = array<i32>} : memref<32x128xf32, #tpu.memory_space<vmem>>, vector<32x128xf32>,
    %c0_i32_8 = arith.constant 0 : i32
    %9 = arith.cmpi eq, %arg2, %c0_i32_8 : i32
    %10 = arith.extui %9 : i1 to i32
    %c0_i32_9 = arith.constant 0 : i32
    %11 = arith.cmpi ne, %10, %c0_i32_9 : i32
    scf.if %11 {
      %c0_10 = arith.constant 0 : index
      %c0_11 = arith.constant 0 : index
      %12 = vector.load %arg8[%c0_10, %c0_11] : memref<32x128xf32, #tpu.memory_space<vmem>>, vector<32x128xf32>
      %c0_12 = arith.constant 0 : index
      %c0_13 = arith.constant 0 : index
      %13 = vector.load %arg5[%c0_12, %c0_13] : memref<1x128xf32, #tpu.memory_space<vmem>>, vector<1x128xf32>
      %14 = vector.broadcast %13 : vector<1x128xf32> to vector<32x128xf32>
      %15 = arith.mulf %12, %14 : vector<32x128xf32>
      %c0_14 = arith.constant 0 : index
      %c0_15 = arith.constant 0 : index
      %16 = vector.load %arg6[%c0_14, %c0_15] : memref<1x128xf32, #tpu.memory_space<vmem>>, vector<1x128xf32>
      %17 = vector.broadcast %16 : vector<1x128xf32> to vector<32x128xf32>
      %18 = arith.addf %15, %17 : vector<32x128xf32>
      %c0_16 = arith.constant 0 : index
      %c0_17 = arith.constant 0 : index
      %19 = vector.load %arg7[%c0_16, %c0_17] : memref<32x128xf32, #tpu.memory_space<vmem>>, vector<32x128xf32>
      tpu.vector_store %arg7[%c0_16, %c0_17], %18 {strides = array<i32>} : memref<32x128xf32, #tpu.memory_space<vmem>>, vector<32x128xf32>,
    } else {
    }
    return
  }
  func.func @transform_0(%arg0: i32, %arg1: i32, %arg2: i32) -> (i32, i32) {
    %c0_i32 = arith.constant 0 : i32
    return %arg0, %arg2 : i32, i32
  }
  func.func @transform_1(%arg0: i32, %arg1: i32, %arg2: i32) -> (i32, i32) {
    %c0_i32 = arith.constant 0 : i32
    return %arg2, %arg1 : i32, i32
  }
  func.func @transform_2(%arg0: i32, %arg1: i32, %arg2: i32) -> (i32, i32) {
    %c0_i32 = arith.constant 0 : i32
    %c0_i32_0 = arith.constant 0 : i32
    return %c0_i32, %arg1 : i32, i32
  }
  func.func @transform_3(%arg0: i32, %arg1: i32, %arg2: i32) -> (i32, i32) {
    %c0_i32 = arith.constant 0 : i32
    %c0_i32_0 = arith.constant 0 : i32
    return %c0_i32, %arg1 : i32, i32
  }
  func.func @transform_4(%arg0: i32, %arg1: i32, %arg2: i32) -> (i32, i32) {
    %c0_i32 = arith.constant 0 : i32
    return %arg0, %arg1 : i32, i32
  }
}

module attributes {stable_mosaic.version = 11 : i64} {
  func.func @_mm_bn_relu_kernel(%arg0: i32, %arg1: i32, %arg2: i32, %arg3: memref<16x128xbf16, #tpu.memory_space<vmem>>, %arg4: memref<128x128xbf16, #tpu.memory_space<vmem>>, %arg5: memref<1x128xf32, #tpu.memory_space<vmem>>, %arg6: memref<1x128xf32, #tpu.memory_space<vmem>>, %arg7: memref<16x128xf32, #tpu.memory_space<vmem>>, %arg8: memref<16x128xf32, #tpu.memory_space<vmem>>) attributes {dimension_semantics = [#tpu.dimension_semantics<parallel>, #tpu.dimension_semantics<parallel>, #tpu.dimension_semantics<arbitrary>], iteration_bounds = array<i64: 1, 1, 1>, scalar_prefetch = 0 : i64, scratch_operands = 1 : i64, tpu.core_type = #tpu.core_type<tc>, window_params = [{transform_indices = @transform_0, window_bounds = array<i64: 16, 128>}, {transform_indices = @transform_1, window_bounds = array<i64: 128, 128>}, {transform_indices = @transform_2, window_bounds = array<i64: 1, 128>}, {transform_indices = @transform_3, window_bounds = array<i64: 1, 128>}, {transform_indices = @transform_4, window_bounds = array<i64: 16, 128>}]} {
    %c0_i32 = arith.constant 0 : i32
    %0 = arith.cmpi eq, %arg2, %c0_i32 : i32
    %1 = arith.extui %0 : i1 to i32
    %c0_i32_0 = arith.constant 0 : i32
    %2 = arith.cmpi ne, %1, %c0_i32_0 : i32
    scf.if %2 {
      %cst_10 = arith.constant 0.000000e+00 : f32
      %12 = vector.broadcast %cst_10 : f32 to vector<16x128xf32>
      %c0_11 = arith.constant 0 : index
      %c0_12 = arith.constant 0 : index
      %13 = vector.load %arg8[%c0_11, %c0_12] : memref<16x128xf32, #tpu.memory_space<vmem>>, vector<16x128xf32>
      tpu.vector_store %arg8[%c0_11, %c0_12], %12 {strides = array<i32>} : memref<16x128xf32, #tpu.memory_space<vmem>>, vector<16x128xf32>,
    } else {
    }
    %c0 = arith.constant 0 : index
    %c0_1 = arith.constant 0 : index
    %3 = vector.load %arg8[%c0, %c0_1] : memref<16x128xf32, #tpu.memory_space<vmem>>, vector<16x128xf32>
    %c0_2 = arith.constant 0 : index
    %c0_3 = arith.constant 0 : index
    %4 = vector.load %arg3[%c0_2, %c0_3] : memref<16x128xbf16, #tpu.memory_space<vmem>>, vector<16x128xbf16>
    %c0_4 = arith.constant 0 : index
    %c0_5 = arith.constant 0 : index
    %5 = vector.load %arg4[%c0_4, %c0_5] : memref<128x128xbf16, #tpu.memory_space<vmem>>, vector<128x128xbf16>
    %cst = arith.constant dense<0.000000e+00> : vector<16x128xf32>
    %6 = tpu.matmul %4, %5, %cst {dimension_numbers = #tpu.dot_dimension_numbers<[1], [0], [0], [1], [0, 0, 1, 1], [], []>} : vector<16x128xbf16>, vector<128x128xbf16>, vector<16x128xf32> -> vector<16x128xf32>
    %7 = arith.addf %3, %6 : vector<16x128xf32>
    %c0_6 = arith.constant 0 : index
    %c0_7 = arith.constant 0 : index
    %8 = vector.load %arg8[%c0_6, %c0_7] : memref<16x128xf32, #tpu.memory_space<vmem>>, vector<16x128xf32>
    tpu.vector_store %arg8[%c0_6, %c0_7], %7 {strides = array<i32>} : memref<16x128xf32, #tpu.memory_space<vmem>>, vector<16x128xf32>,
    %c0_i32_8 = arith.constant 0 : i32
    %9 = arith.cmpi eq, %arg2, %c0_i32_8 : i32
    %10 = arith.extui %9 : i1 to i32
    %c0_i32_9 = arith.constant 0 : i32
    %11 = arith.cmpi ne, %10, %c0_i32_9 : i32
    scf.if %11 {
      %c0_10 = arith.constant 0 : index
      %c0_11 = arith.constant 0 : index
      %12 = vector.load %arg8[%c0_10, %c0_11] : memref<16x128xf32, #tpu.memory_space<vmem>>, vector<16x128xf32>
      %c0_12 = arith.constant 0 : index
      %c0_13 = arith.constant 0 : index
      %13 = vector.load %arg5[%c0_12, %c0_13] : memref<1x128xf32, #tpu.memory_space<vmem>>, vector<1x128xf32>
      %14 = vector.broadcast %13 : vector<1x128xf32> to vector<16x128xf32>
      %15 = arith.mulf %12, %14 : vector<16x128xf32>
      %c0_14 = arith.constant 0 : index
      %c0_15 = arith.constant 0 : index
      %16 = vector.load %arg6[%c0_14, %c0_15] : memref<1x128xf32, #tpu.memory_space<vmem>>, vector<1x128xf32>
      %17 = vector.broadcast %16 : vector<1x128xf32> to vector<16x128xf32>
      %18 = arith.addf %15, %17 : vector<16x128xf32>
      %cst_16 = arith.constant 0.000000e+00 : f32
      %19 = vector.broadcast %cst_16 : f32 to vector<16x128xf32>
      %20 = arith.maximumf %18, %19 : vector<16x128xf32>
      %c0_17 = arith.constant 0 : index
      %c0_18 = arith.constant 0 : index
      %21 = vector.load %arg7[%c0_17, %c0_18] : memref<16x128xf32, #tpu.memory_space<vmem>>, vector<16x128xf32>
      tpu.vector_store %arg7[%c0_17, %c0_18], %20 {strides = array<i32>} : memref<16x128xf32, #tpu.memory_space<vmem>>, vector<16x128xf32>,
    } else {
    }
    return
  }
  func.func @transform_0(%arg0: i32, %arg1: i32, %arg2: i32) -> (i32, i32) {
    %c0_i32 = arith.constant 0 : i32
    return %arg0, %arg2 : i32, i32
  }
  func.func @transform_1(%arg0: i32, %arg1: i32, %arg2: i32) -> (i32, i32) {
    %c0_i32 = arith.constant 0 : i32
    return %arg2, %arg1 : i32, i32
  }
  func.func @transform_2(%arg0: i32, %arg1: i32, %arg2: i32) -> (i32, i32) {
    %c0_i32 = arith.constant 0 : i32
    %c0_i32_0 = arith.constant 0 : i32
    return %c0_i32, %arg1 : i32, i32
  }
  func.func @transform_3(%arg0: i32, %arg1: i32, %arg2: i32) -> (i32, i32) {
    %c0_i32 = arith.constant 0 : i32
    %c0_i32_0 = arith.constant 0 : i32
    return %c0_i32, %arg1 : i32, i32
  }
  func.func @transform_4(%arg0: i32, %arg1: i32, %arg2: i32) -> (i32, i32) {
    %c0_i32 = arith.constant 0 : i32
    return %arg0, %arg1 : i32, i32
  }
}

module attributes {stable_mosaic.version = 11 : i64} {
  func.func @_mm_bn_kernel(%arg0: i32, %arg1: i32, %arg2: i32, %arg3: memref<16x128xbf16, #tpu.memory_space<vmem>>, %arg4: memref<128x128xbf16, #tpu.memory_space<vmem>>, %arg5: memref<1x128xf32, #tpu.memory_space<vmem>>, %arg6: memref<1x128xf32, #tpu.memory_space<vmem>>, %arg7: memref<16x128xf32, #tpu.memory_space<vmem>>, %arg8: memref<16x128xf32, #tpu.memory_space<vmem>>) attributes {dimension_semantics = [#tpu.dimension_semantics<parallel>, #tpu.dimension_semantics<parallel>, #tpu.dimension_semantics<arbitrary>], iteration_bounds = array<i64: 1, 1, 1>, scalar_prefetch = 0 : i64, scratch_operands = 1 : i64, tpu.core_type = #tpu.core_type<tc>, window_params = [{transform_indices = @transform_0, window_bounds = array<i64: 16, 128>}, {transform_indices = @transform_1, window_bounds = array<i64: 128, 128>}, {transform_indices = @transform_2, window_bounds = array<i64: 1, 128>}, {transform_indices = @transform_3, window_bounds = array<i64: 1, 128>}, {transform_indices = @transform_4, window_bounds = array<i64: 16, 128>}]} {
    %c0_i32 = arith.constant 0 : i32
    %0 = arith.cmpi eq, %arg2, %c0_i32 : i32
    %1 = arith.extui %0 : i1 to i32
    %c0_i32_0 = arith.constant 0 : i32
    %2 = arith.cmpi ne, %1, %c0_i32_0 : i32
    scf.if %2 {
      %cst_10 = arith.constant 0.000000e+00 : f32
      %12 = vector.broadcast %cst_10 : f32 to vector<16x128xf32>
      %c0_11 = arith.constant 0 : index
      %c0_12 = arith.constant 0 : index
      %13 = vector.load %arg8[%c0_11, %c0_12] : memref<16x128xf32, #tpu.memory_space<vmem>>, vector<16x128xf32>
      tpu.vector_store %arg8[%c0_11, %c0_12], %12 {strides = array<i32>} : memref<16x128xf32, #tpu.memory_space<vmem>>, vector<16x128xf32>,
    } else {
    }
    %c0 = arith.constant 0 : index
    %c0_1 = arith.constant 0 : index
    %3 = vector.load %arg8[%c0, %c0_1] : memref<16x128xf32, #tpu.memory_space<vmem>>, vector<16x128xf32>
    %c0_2 = arith.constant 0 : index
    %c0_3 = arith.constant 0 : index
    %4 = vector.load %arg3[%c0_2, %c0_3] : memref<16x128xbf16, #tpu.memory_space<vmem>>, vector<16x128xbf16>
    %c0_4 = arith.constant 0 : index
    %c0_5 = arith.constant 0 : index
    %5 = vector.load %arg4[%c0_4, %c0_5] : memref<128x128xbf16, #tpu.memory_space<vmem>>, vector<128x128xbf16>
    %cst = arith.constant dense<0.000000e+00> : vector<16x128xf32>
    %6 = tpu.matmul %4, %5, %cst {dimension_numbers = #tpu.dot_dimension_numbers<[1], [0], [0], [1], [0, 0, 1, 1], [], []>} : vector<16x128xbf16>, vector<128x128xbf16>, vector<16x128xf32> -> vector<16x128xf32>
    %7 = arith.addf %3, %6 : vector<16x128xf32>
    %c0_6 = arith.constant 0 : index
    %c0_7 = arith.constant 0 : index
    %8 = vector.load %arg8[%c0_6, %c0_7] : memref<16x128xf32, #tpu.memory_space<vmem>>, vector<16x128xf32>
    tpu.vector_store %arg8[%c0_6, %c0_7], %7 {strides = array<i32>} : memref<16x128xf32, #tpu.memory_space<vmem>>, vector<16x128xf32>,
    %c0_i32_8 = arith.constant 0 : i32
    %9 = arith.cmpi eq, %arg2, %c0_i32_8 : i32
    %10 = arith.extui %9 : i1 to i32
    %c0_i32_9 = arith.constant 0 : i32
    %11 = arith.cmpi ne, %10, %c0_i32_9 : i32
    scf.if %11 {
      %c0_10 = arith.constant 0 : index
      %c0_11 = arith.constant 0 : index
      %12 = vector.load %arg8[%c0_10, %c0_11] : memref<16x128xf32, #tpu.memory_space<vmem>>, vector<16x128xf32>
      %c0_12 = arith.constant 0 : index
      %c0_13 = arith.constant 0 : index
      %13 = vector.load %arg5[%c0_12, %c0_13] : memref<1x128xf32, #tpu.memory_space<vmem>>, vector<1x128xf32>
      %14 = vector.broadcast %13 : vector<1x128xf32> to vector<16x128xf32>
      %15 = arith.mulf %12, %14 : vector<16x128xf32>
      %c0_14 = arith.constant 0 : index
      %c0_15 = arith.constant 0 : index
      %16 = vector.load %arg6[%c0_14, %c0_15] : memref<1x128xf32, #tpu.memory_space<vmem>>, vector<1x128xf32>
      %17 = vector.broadcast %16 : vector<1x128xf32> to vector<16x128xf32>
      %18 = arith.addf %15, %17 : vector<16x128xf32>
      %c0_16 = arith.constant 0 : index
      %c0_17 = arith.constant 0 : index
      %19 = vector.load %arg7[%c0_16, %c0_17] : memref<16x128xf32, #tpu.memory_space<vmem>>, vector<16x128xf32>
      tpu.vector_store %arg7[%c0_16, %c0_17], %18 {strides = array<i32>} : memref<16x128xf32, #tpu.memory_space<vmem>>, vector<16x128xf32>,
    } else {
    }
    return
  }
  func.func @transform_0(%arg0: i32, %arg1: i32, %arg2: i32) -> (i32, i32) {
    %c0_i32 = arith.constant 0 : i32
    return %arg0, %arg2 : i32, i32
  }
  func.func @transform_1(%arg0: i32, %arg1: i32, %arg2: i32) -> (i32, i32) {
    %c0_i32 = arith.constant 0 : i32
    return %arg2, %arg1 : i32, i32
  }
  func.func @transform_2(%arg0: i32, %arg1: i32, %arg2: i32) -> (i32, i32) {
    %c0_i32 = arith.constant 0 : i32
    %c0_i32_0 = arith.constant 0 : i32
    return %c0_i32, %arg1 : i32, i32
  }
  func.func @transform_3(%arg0: i32, %arg1: i32, %arg2: i32) -> (i32, i32) {
    %c0_i32 = arith.constant 0 : i32
    %c0_i32_0 = arith.constant 0 : i32
    return %c0_i32, %arg1 : i32, i32
  }
  func.func @transform_4(%arg0: i32, %arg1: i32, %arg2: i32) -> (i32, i32) {
    %c0_i32 = arith.constant 0 : i32
    return %arg0, %arg1 : i32, i32
  }
}

module attributes {stable_mosaic.version = 11 : i64} {
  func.func @_mm_bn_kernel(%arg0: i32, %arg1: i32, %arg2: i32, %arg3: memref<128x128xbf16, #tpu.memory_space<vmem>>, %arg4: memref<128x128xbf16, #tpu.memory_space<vmem>>, %arg5: memref<1x128xf32, #tpu.memory_space<vmem>>, %arg6: memref<1x128xf32, #tpu.memory_space<vmem>>, %arg7: memref<128x128xf32, #tpu.memory_space<vmem>>, %arg8: memref<128x128xf32, #tpu.memory_space<vmem>>) attributes {dimension_semantics = [#tpu.dimension_semantics<parallel>, #tpu.dimension_semantics<parallel>, #tpu.dimension_semantics<arbitrary>], iteration_bounds = array<i64: 1, 1, 1>, scalar_prefetch = 0 : i64, scratch_operands = 1 : i64, tpu.core_type = #tpu.core_type<tc>, window_params = [{transform_indices = @transform_0, window_bounds = array<i64: 128, 128>}, {transform_indices = @transform_1, window_bounds = array<i64: 128, 128>}, {transform_indices = @transform_2, window_bounds = array<i64: 1, 128>}, {transform_indices = @transform_3, window_bounds = array<i64: 1, 128>}, {transform_indices = @transform_4, window_bounds = array<i64: 128, 128>}]} {
    %c0_i32 = arith.constant 0 : i32
    %0 = arith.cmpi eq, %arg2, %c0_i32 : i32
    %1 = arith.extui %0 : i1 to i32
    %c0_i32_0 = arith.constant 0 : i32
    %2 = arith.cmpi ne, %1, %c0_i32_0 : i32
    scf.if %2 {
      %cst_10 = arith.constant 0.000000e+00 : f32
      %12 = vector.broadcast %cst_10 : f32 to vector<128x128xf32>
      %c0_11 = arith.constant 0 : index
      %c0_12 = arith.constant 0 : index
      %13 = vector.load %arg8[%c0_11, %c0_12] : memref<128x128xf32, #tpu.memory_space<vmem>>, vector<128x128xf32>
      tpu.vector_store %arg8[%c0_11, %c0_12], %12 {strides = array<i32>} : memref<128x128xf32, #tpu.memory_space<vmem>>, vector<128x128xf32>,
    } else {
    }
    %c0 = arith.constant 0 : index
    %c0_1 = arith.constant 0 : index
    %3 = vector.load %arg8[%c0, %c0_1] : memref<128x128xf32, #tpu.memory_space<vmem>>, vector<128x128xf32>
    %c0_2 = arith.constant 0 : index
    %c0_3 = arith.constant 0 : index
    %4 = vector.load %arg3[%c0_2, %c0_3] : memref<128x128xbf16, #tpu.memory_space<vmem>>, vector<128x128xbf16>
    %c0_4 = arith.constant 0 : index
    %c0_5 = arith.constant 0 : index
    %5 = vector.load %arg4[%c0_4, %c0_5] : memref<128x128xbf16, #tpu.memory_space<vmem>>, vector<128x128xbf16>
    %cst = arith.constant dense<0.000000e+00> : vector<128x128xf32>
    %6 = tpu.matmul %4, %5, %cst {dimension_numbers = #tpu.dot_dimension_numbers<[1], [0], [0], [1], [0, 0, 1, 1], [], []>} : vector<128x128xbf16>, vector<128x128xbf16>, vector<128x128xf32> -> vector<128x128xf32>
    %7 = arith.addf %3, %6 : vector<128x128xf32>
    %c0_6 = arith.constant 0 : index
    %c0_7 = arith.constant 0 : index
    %8 = vector.load %arg8[%c0_6, %c0_7] : memref<128x128xf32, #tpu.memory_space<vmem>>, vector<128x128xf32>
    tpu.vector_store %arg8[%c0_6, %c0_7], %7 {strides = array<i32>} : memref<128x128xf32, #tpu.memory_space<vmem>>, vector<128x128xf32>,
    %c0_i32_8 = arith.constant 0 : i32
    %9 = arith.cmpi eq, %arg2, %c0_i32_8 : i32
    %10 = arith.extui %9 : i1 to i32
    %c0_i32_9 = arith.constant 0 : i32
    %11 = arith.cmpi ne, %10, %c0_i32_9 : i32
    scf.if %11 {
      %c0_10 = arith.constant 0 : index
      %c0_11 = arith.constant 0 : index
      %12 = vector.load %arg8[%c0_10, %c0_11] : memref<128x128xf32, #tpu.memory_space<vmem>>, vector<128x128xf32>
      %c0_12 = arith.constant 0 : index
      %c0_13 = arith.constant 0 : index
      %13 = vector.load %arg5[%c0_12, %c0_13] : memref<1x128xf32, #tpu.memory_space<vmem>>, vector<1x128xf32>
      %14 = vector.broadcast %13 : vector<1x128xf32> to vector<128x128xf32>
      %15 = arith.mulf %12, %14 : vector<128x128xf32>
      %c0_14 = arith.constant 0 : index
      %c0_15 = arith.constant 0 : index
      %16 = vector.load %arg6[%c0_14, %c0_15] : memref<1x128xf32, #tpu.memory_space<vmem>>, vector<1x128xf32>
      %17 = vector.broadcast %16 : vector<1x128xf32> to vector<128x128xf32>
      %18 = arith.addf %15, %17 : vector<128x128xf32>
      %c0_16 = arith.constant 0 : index
      %c0_17 = arith.constant 0 : index
      %19 = vector.load %arg7[%c0_16, %c0_17] : memref<128x128xf32, #tpu.memory_space<vmem>>, vector<128x128xf32>
      tpu.vector_store %arg7[%c0_16, %c0_17], %18 {strides = array<i32>} : memref<128x128xf32, #tpu.memory_space<vmem>>, vector<128x128xf32>,
    } else {
    }
    return
  }
  func.func @transform_0(%arg0: i32, %arg1: i32, %arg2: i32) -> (i32, i32) {
    %c0_i32 = arith.constant 0 : i32
    return %arg0, %arg2 : i32, i32
  }
  func.func @transform_1(%arg0: i32, %arg1: i32, %arg2: i32) -> (i32, i32) {
    %c0_i32 = arith.constant 0 : i32
    return %arg2, %arg1 : i32, i32
  }
  func.func @transform_2(%arg0: i32, %arg1: i32, %arg2: i32) -> (i32, i32) {
    %c0_i32 = arith.constant 0 : i32
    %c0_i32_0 = arith.constant 0 : i32
    return %c0_i32, %arg1 : i32, i32
  }
  func.func @transform_3(%arg0: i32, %arg1: i32, %arg2: i32) -> (i32, i32) {
    %c0_i32 = arith.constant 0 : i32
    %c0_i32_0 = arith.constant 0 : i32
    return %c0_i32, %arg1 : i32, i32
  }
  func.func @transform_4(%arg0: i32, %arg1: i32, %arg2: i32) -> (i32, i32) {
    %c0_i32 = arith.constant 0 : i32
    return %arg0, %arg1 : i32, i32
  }
}

module attributes {stable_mosaic.version = 11 : i64} {
  func.func @_mm_bn_relu_kernel(%arg0: i32, %arg1: i32, %arg2: i32, %arg3: memref<32x256xbf16, #tpu.memory_space<vmem>>, %arg4: memref<256x128xbf16, #tpu.memory_space<vmem>>, %arg5: memref<1x128xf32, #tpu.memory_space<vmem>>, %arg6: memref<1x128xf32, #tpu.memory_space<vmem>>, %arg7: memref<32x128xf32, #tpu.memory_space<vmem>>, %arg8: memref<32x128xf32, #tpu.memory_space<vmem>>) attributes {dimension_semantics = [#tpu.dimension_semantics<parallel>, #tpu.dimension_semantics<parallel>, #tpu.dimension_semantics<arbitrary>], iteration_bounds = array<i64: 1, 1, 1>, scalar_prefetch = 0 : i64, scratch_operands = 1 : i64, tpu.core_type = #tpu.core_type<tc>, window_params = [{transform_indices = @transform_0, window_bounds = array<i64: 32, 256>}, {transform_indices = @transform_1, window_bounds = array<i64: 256, 128>}, {transform_indices = @transform_2, window_bounds = array<i64: 1, 128>}, {transform_indices = @transform_3, window_bounds = array<i64: 1, 128>}, {transform_indices = @transform_4, window_bounds = array<i64: 32, 128>}]} {
    %c0_i32 = arith.constant 0 : i32
    %0 = arith.cmpi eq, %arg2, %c0_i32 : i32
    %1 = arith.extui %0 : i1 to i32
    %c0_i32_0 = arith.constant 0 : i32
    %2 = arith.cmpi ne, %1, %c0_i32_0 : i32
    scf.if %2 {
      %cst_10 = arith.constant 0.000000e+00 : f32
      %12 = vector.broadcast %cst_10 : f32 to vector<32x128xf32>
      %c0_11 = arith.constant 0 : index
      %c0_12 = arith.constant 0 : index
      %13 = vector.load %arg8[%c0_11, %c0_12] : memref<32x128xf32, #tpu.memory_space<vmem>>, vector<32x128xf32>
      tpu.vector_store %arg8[%c0_11, %c0_12], %12 {strides = array<i32>} : memref<32x128xf32, #tpu.memory_space<vmem>>, vector<32x128xf32>,
    } else {
    }
    %c0 = arith.constant 0 : index
    %c0_1 = arith.constant 0 : index
    %3 = vector.load %arg8[%c0, %c0_1] : memref<32x128xf32, #tpu.memory_space<vmem>>, vector<32x128xf32>
    %c0_2 = arith.constant 0 : index
    %c0_3 = arith.constant 0 : index
    %4 = vector.load %arg3[%c0_2, %c0_3] : memref<32x256xbf16, #tpu.memory_space<vmem>>, vector<32x256xbf16>
    %c0_4 = arith.constant 0 : index
    %c0_5 = arith.constant 0 : index
    %5 = vector.load %arg4[%c0_4, %c0_5] : memref<256x128xbf16, #tpu.memory_space<vmem>>, vector<256x128xbf16>
    %cst = arith.constant dense<0.000000e+00> : vector<32x128xf32>
    %6 = tpu.matmul %4, %5, %cst {dimension_numbers = #tpu.dot_dimension_numbers<[1], [0], [0], [1], [0, 0, 1, 1], [], []>} : vector<32x256xbf16>, vector<256x128xbf16>, vector<32x128xf32> -> vector<32x128xf32>
    %7 = arith.addf %3, %6 : vector<32x128xf32>
    %c0_6 = arith.constant 0 : index
    %c0_7 = arith.constant 0 : index
    %8 = vector.load %arg8[%c0_6, %c0_7] : memref<32x128xf32, #tpu.memory_space<vmem>>, vector<32x128xf32>
    tpu.vector_store %arg8[%c0_6, %c0_7], %7 {strides = array<i32>} : memref<32x128xf32, #tpu.memory_space<vmem>>, vector<32x128xf32>,
    %c0_i32_8 = arith.constant 0 : i32
    %9 = arith.cmpi eq, %arg2, %c0_i32_8 : i32
    %10 = arith.extui %9 : i1 to i32
    %c0_i32_9 = arith.constant 0 : i32
    %11 = arith.cmpi ne, %10, %c0_i32_9 : i32
    scf.if %11 {
      %c0_10 = arith.constant 0 : index
      %c0_11 = arith.constant 0 : index
      %12 = vector.load %arg8[%c0_10, %c0_11] : memref<32x128xf32, #tpu.memory_space<vmem>>, vector<32x128xf32>
      %c0_12 = arith.constant 0 : index
      %c0_13 = arith.constant 0 : index
      %13 = vector.load %arg5[%c0_12, %c0_13] : memref<1x128xf32, #tpu.memory_space<vmem>>, vector<1x128xf32>
      %14 = vector.broadcast %13 : vector<1x128xf32> to vector<32x128xf32>
      %15 = arith.mulf %12, %14 : vector<32x128xf32>
      %c0_14 = arith.constant 0 : index
      %c0_15 = arith.constant 0 : index
      %16 = vector.load %arg6[%c0_14, %c0_15] : memref<1x128xf32, #tpu.memory_space<vmem>>, vector<1x128xf32>
      %17 = vector.broadcast %16 : vector<1x128xf32> to vector<32x128xf32>
      %18 = arith.addf %15, %17 : vector<32x128xf32>
      %cst_16 = arith.constant 0.000000e+00 : f32
      %19 = vector.broadcast %cst_16 : f32 to vector<32x128xf32>
      %20 = arith.maximumf %18, %19 : vector<32x128xf32>
      %c0_17 = arith.constant 0 : index
      %c0_18 = arith.constant 0 : index
      %21 = vector.load %arg7[%c0_17, %c0_18] : memref<32x128xf32, #tpu.memory_space<vmem>>, vector<32x128xf32>
      tpu.vector_store %arg7[%c0_17, %c0_18], %20 {strides = array<i32>} : memref<32x128xf32, #tpu.memory_space<vmem>>, vector<32x128xf32>,
    } else {
    }
    return
  }
  func.func @transform_0(%arg0: i32, %arg1: i32, %arg2: i32) -> (i32, i32) {
    %c0_i32 = arith.constant 0 : i32
    return %arg0, %arg2 : i32, i32
  }
  func.func @transform_1(%arg0: i32, %arg1: i32, %arg2: i32) -> (i32, i32) {
    %c0_i32 = arith.constant 0 : i32
    return %arg2, %arg1 : i32, i32
  }
  func.func @transform_2(%arg0: i32, %arg1: i32, %arg2: i32) -> (i32, i32) {
    %c0_i32 = arith.constant 0 : i32
    %c0_i32_0 = arith.constant 0 : i32
    return %c0_i32, %arg1 : i32, i32
  }
  func.func @transform_3(%arg0: i32, %arg1: i32, %arg2: i32) -> (i32, i32) {
    %c0_i32 = arith.constant 0 : i32
    %c0_i32_0 = arith.constant 0 : i32
    return %c0_i32, %arg1 : i32, i32
  }
  func.func @transform_4(%arg0: i32, %arg1: i32, %arg2: i32) -> (i32, i32) {
    %c0_i32 = arith.constant 0 : i32
    return %arg0, %arg1 : i32, i32
  }
}

module attributes {stable_mosaic.version = 11 : i64} {
  func.func @_mm_bn_relu_kernel(%arg0: i32, %arg1: i32, %arg2: i32, %arg3: memref<16x384xbf16, #tpu.memory_space<vmem>>, %arg4: memref<384x128xbf16, #tpu.memory_space<vmem>>, %arg5: memref<1x128xf32, #tpu.memory_space<vmem>>, %arg6: memref<1x128xf32, #tpu.memory_space<vmem>>, %arg7: memref<16x128xf32, #tpu.memory_space<vmem>>, %arg8: memref<16x128xf32, #tpu.memory_space<vmem>>) attributes {dimension_semantics = [#tpu.dimension_semantics<parallel>, #tpu.dimension_semantics<parallel>, #tpu.dimension_semantics<arbitrary>], iteration_bounds = array<i64: 1, 1, 1>, scalar_prefetch = 0 : i64, scratch_operands = 1 : i64, tpu.core_type = #tpu.core_type<tc>, window_params = [{transform_indices = @transform_0, window_bounds = array<i64: 16, 384>}, {transform_indices = @transform_1, window_bounds = array<i64: 384, 128>}, {transform_indices = @transform_2, window_bounds = array<i64: 1, 128>}, {transform_indices = @transform_3, window_bounds = array<i64: 1, 128>}, {transform_indices = @transform_4, window_bounds = array<i64: 16, 128>}]} {
    %c0_i32 = arith.constant 0 : i32
    %0 = arith.cmpi eq, %arg2, %c0_i32 : i32
    %1 = arith.extui %0 : i1 to i32
    %c0_i32_0 = arith.constant 0 : i32
    %2 = arith.cmpi ne, %1, %c0_i32_0 : i32
    scf.if %2 {
      %cst_10 = arith.constant 0.000000e+00 : f32
      %12 = vector.broadcast %cst_10 : f32 to vector<16x128xf32>
      %c0_11 = arith.constant 0 : index
      %c0_12 = arith.constant 0 : index
      %13 = vector.load %arg8[%c0_11, %c0_12] : memref<16x128xf32, #tpu.memory_space<vmem>>, vector<16x128xf32>
      tpu.vector_store %arg8[%c0_11, %c0_12], %12 {strides = array<i32>} : memref<16x128xf32, #tpu.memory_space<vmem>>, vector<16x128xf32>,
    } else {
    }
    %c0 = arith.constant 0 : index
    %c0_1 = arith.constant 0 : index
    %3 = vector.load %arg8[%c0, %c0_1] : memref<16x128xf32, #tpu.memory_space<vmem>>, vector<16x128xf32>
    %c0_2 = arith.constant 0 : index
    %c0_3 = arith.constant 0 : index
    %4 = vector.load %arg3[%c0_2, %c0_3] : memref<16x384xbf16, #tpu.memory_space<vmem>>, vector<16x384xbf16>
    %c0_4 = arith.constant 0 : index
    %c0_5 = arith.constant 0 : index
    %5 = vector.load %arg4[%c0_4, %c0_5] : memref<384x128xbf16, #tpu.memory_space<vmem>>, vector<384x128xbf16>
    %cst = arith.constant dense<0.000000e+00> : vector<16x128xf32>
    %6 = tpu.matmul %4, %5, %cst {dimension_numbers = #tpu.dot_dimension_numbers<[1], [0], [0], [1], [0, 0, 1, 1], [], []>} : vector<16x384xbf16>, vector<384x128xbf16>, vector<16x128xf32> -> vector<16x128xf32>
    %7 = arith.addf %3, %6 : vector<16x128xf32>
    %c0_6 = arith.constant 0 : index
    %c0_7 = arith.constant 0 : index
    %8 = vector.load %arg8[%c0_6, %c0_7] : memref<16x128xf32, #tpu.memory_space<vmem>>, vector<16x128xf32>
    tpu.vector_store %arg8[%c0_6, %c0_7], %7 {strides = array<i32>} : memref<16x128xf32, #tpu.memory_space<vmem>>, vector<16x128xf32>,
    %c0_i32_8 = arith.constant 0 : i32
    %9 = arith.cmpi eq, %arg2, %c0_i32_8 : i32
    %10 = arith.extui %9 : i1 to i32
    %c0_i32_9 = arith.constant 0 : i32
    %11 = arith.cmpi ne, %10, %c0_i32_9 : i32
    scf.if %11 {
      %c0_10 = arith.constant 0 : index
      %c0_11 = arith.constant 0 : index
      %12 = vector.load %arg8[%c0_10, %c0_11] : memref<16x128xf32, #tpu.memory_space<vmem>>, vector<16x128xf32>
      %c0_12 = arith.constant 0 : index
      %c0_13 = arith.constant 0 : index
      %13 = vector.load %arg5[%c0_12, %c0_13] : memref<1x128xf32, #tpu.memory_space<vmem>>, vector<1x128xf32>
      %14 = vector.broadcast %13 : vector<1x128xf32> to vector<16x128xf32>
      %15 = arith.mulf %12, %14 : vector<16x128xf32>
      %c0_14 = arith.constant 0 : index
      %c0_15 = arith.constant 0 : index
      %16 = vector.load %arg6[%c0_14, %c0_15] : memref<1x128xf32, #tpu.memory_space<vmem>>, vector<1x128xf32>
      %17 = vector.broadcast %16 : vector<1x128xf32> to vector<16x128xf32>
      %18 = arith.addf %15, %17 : vector<16x128xf32>
      %cst_16 = arith.constant 0.000000e+00 : f32
      %19 = vector.broadcast %cst_16 : f32 to vector<16x128xf32>
      %20 = arith.maximumf %18, %19 : vector<16x128xf32>
      %c0_17 = arith.constant 0 : index
      %c0_18 = arith.constant 0 : index
      %21 = vector.load %arg7[%c0_17, %c0_18] : memref<16x128xf32, #tpu.memory_space<vmem>>, vector<16x128xf32>
      tpu.vector_store %arg7[%c0_17, %c0_18], %20 {strides = array<i32>} : memref<16x128xf32, #tpu.memory_space<vmem>>, vector<16x128xf32>,
    } else {
    }
    return
  }
  func.func @transform_0(%arg0: i32, %arg1: i32, %arg2: i32) -> (i32, i32) {
    %c0_i32 = arith.constant 0 : i32
    return %arg0, %arg2 : i32, i32
  }
  func.func @transform_1(%arg0: i32, %arg1: i32, %arg2: i32) -> (i32, i32) {
    %c0_i32 = arith.constant 0 : i32
    return %arg2, %arg1 : i32, i32
  }
  func.func @transform_2(%arg0: i32, %arg1: i32, %arg2: i32) -> (i32, i32) {
    %c0_i32 = arith.constant 0 : i32
    %c0_i32_0 = arith.constant 0 : i32
    return %c0_i32, %arg1 : i32, i32
  }
  func.func @transform_3(%arg0: i32, %arg1: i32, %arg2: i32) -> (i32, i32) {
    %c0_i32 = arith.constant 0 : i32
    %c0_i32_0 = arith.constant 0 : i32
    return %c0_i32, %arg1 : i32, i32
  }
  func.func @transform_4(%arg0: i32, %arg1: i32, %arg2: i32) -> (i32, i32) {
    %c0_i32 = arith.constant 0 : i32
    return %arg0, %arg1 : i32, i32
  }
}

module attributes {stable_mosaic.version = 11 : i64} {
  func.func @_mm_bn_relu_kernel(%arg0: i32, %arg1: i32, %arg2: i32, %arg3: memref<16x512xbf16, #tpu.memory_space<vmem>>, %arg4: memref<512x128xbf16, #tpu.memory_space<vmem>>, %arg5: memref<1x128xf32, #tpu.memory_space<vmem>>, %arg6: memref<1x128xf32, #tpu.memory_space<vmem>>, %arg7: memref<16x128xf32, #tpu.memory_space<vmem>>, %arg8: memref<16x128xf32, #tpu.memory_space<vmem>>) attributes {dimension_semantics = [#tpu.dimension_semantics<parallel>, #tpu.dimension_semantics<parallel>, #tpu.dimension_semantics<arbitrary>], iteration_bounds = array<i64: 1, 1, 2>, scalar_prefetch = 0 : i64, scratch_operands = 1 : i64, tpu.core_type = #tpu.core_type<tc>, window_params = [{transform_indices = @transform_0, window_bounds = array<i64: 16, 512>}, {transform_indices = @transform_1, window_bounds = array<i64: 512, 128>}, {transform_indices = @transform_2, window_bounds = array<i64: 1, 128>}, {transform_indices = @transform_3, window_bounds = array<i64: 1, 128>}, {transform_indices = @transform_4, window_bounds = array<i64: 16, 128>}]} {
    %c0_i32 = arith.constant 0 : i32
    %0 = arith.cmpi eq, %arg2, %c0_i32 : i32
    %1 = arith.extui %0 : i1 to i32
    %c0_i32_0 = arith.constant 0 : i32
    %2 = arith.cmpi ne, %1, %c0_i32_0 : i32
    scf.if %2 {
      %cst_9 = arith.constant 0.000000e+00 : f32
      %12 = vector.broadcast %cst_9 : f32 to vector<16x128xf32>
      %c0_10 = arith.constant 0 : index
      %c0_11 = arith.constant 0 : index
      %13 = vector.load %arg8[%c0_10, %c0_11] : memref<16x128xf32, #tpu.memory_space<vmem>>, vector<16x128xf32>
      tpu.vector_store %arg8[%c0_10, %c0_11], %12 {strides = array<i32>} : memref<16x128xf32, #tpu.memory_space<vmem>>, vector<16x128xf32>,
    } else {
    }
    %c0 = arith.constant 0 : index
    %c0_1 = arith.constant 0 : index
    %3 = vector.load %arg8[%c0, %c0_1] : memref<16x128xf32, #tpu.memory_space<vmem>>, vector<16x128xf32>
    %c0_2 = arith.constant 0 : index
    %c0_3 = arith.constant 0 : index
    %4 = vector.load %arg3[%c0_2, %c0_3] : memref<16x512xbf16, #tpu.memory_space<vmem>>, vector<16x512xbf16>
    %c0_4 = arith.constant 0 : index
    %c0_5 = arith.constant 0 : index
    %5 = vector.load %arg4[%c0_4, %c0_5] : memref<512x128xbf16, #tpu.memory_space<vmem>>, vector<512x128xbf16>
    %cst = arith.constant dense<0.000000e+00> : vector<16x128xf32>
    %6 = tpu.matmul %4, %5, %cst {dimension_numbers = #tpu.dot_dimension_numbers<[1], [0], [0], [1], [0, 0, 1, 1], [], []>} : vector<16x512xbf16>, vector<512x128xbf16>, vector<16x128xf32> -> vector<16x128xf32>
    %7 = arith.addf %3, %6 : vector<16x128xf32>
    %c0_6 = arith.constant 0 : index
    %c0_7 = arith.constant 0 : index
    %8 = vector.load %arg8[%c0_6, %c0_7] : memref<16x128xf32, #tpu.memory_space<vmem>>, vector<16x128xf32>
    tpu.vector_store %arg8[%c0_6, %c0_7], %7 {strides = array<i32>} : memref<16x128xf32, #tpu.memory_space<vmem>>, vector<16x128xf32>,
    %c1_i32 = arith.constant 1 : i32
    %9 = arith.cmpi eq, %arg2, %c1_i32 : i32
    %10 = arith.extui %9 : i1 to i32
    %c0_i32_8 = arith.constant 0 : i32
    %11 = arith.cmpi ne, %10, %c0_i32_8 : i32
    scf.if %11 {
      %c0_9 = arith.constant 0 : index
      %c0_10 = arith.constant 0 : index
      %12 = vector.load %arg8[%c0_9, %c0_10] : memref<16x128xf32, #tpu.memory_space<vmem>>, vector<16x128xf32>
      %c0_11 = arith.constant 0 : index
      %c0_12 = arith.constant 0 : index
      %13 = vector.load %arg5[%c0_11, %c0_12] : memref<1x128xf32, #tpu.memory_space<vmem>>, vector<1x128xf32>
      %14 = vector.broadcast %13 : vector<1x128xf32> to vector<16x128xf32>
      %15 = arith.mulf %12, %14 : vector<16x128xf32>
      %c0_13 = arith.constant 0 : index
      %c0_14 = arith.constant 0 : index
      %16 = vector.load %arg6[%c0_13, %c0_14] : memref<1x128xf32, #tpu.memory_space<vmem>>, vector<1x128xf32>
      %17 = vector.broadcast %16 : vector<1x128xf32> to vector<16x128xf32>
      %18 = arith.addf %15, %17 : vector<16x128xf32>
      %cst_15 = arith.constant 0.000000e+00 : f32
      %19 = vector.broadcast %cst_15 : f32 to vector<16x128xf32>
      %20 = arith.maximumf %18, %19 : vector<16x128xf32>
      %c0_16 = arith.constant 0 : index
      %c0_17 = arith.constant 0 : index
      %21 = vector.load %arg7[%c0_16, %c0_17] : memref<16x128xf32, #tpu.memory_space<vmem>>, vector<16x128xf32>
      tpu.vector_store %arg7[%c0_16, %c0_17], %20 {strides = array<i32>} : memref<16x128xf32, #tpu.memory_space<vmem>>, vector<16x128xf32>,
    } else {
    }
    return
  }
  func.func @transform_0(%arg0: i32, %arg1: i32, %arg2: i32) -> (i32, i32) {
    %c0_i32 = arith.constant 0 : i32
    return %arg0, %arg2 : i32, i32
  }
  func.func @transform_1(%arg0: i32, %arg1: i32, %arg2: i32) -> (i32, i32) {
    %c0_i32 = arith.constant 0 : i32
    return %arg2, %arg1 : i32, i32
  }
  func.func @transform_2(%arg0: i32, %arg1: i32, %arg2: i32) -> (i32, i32) {
    %c0_i32 = arith.constant 0 : i32
    %c0_i32_0 = arith.constant 0 : i32
    return %c0_i32, %arg1 : i32, i32
  }
  func.func @transform_3(%arg0: i32, %arg1: i32, %arg2: i32) -> (i32, i32) {
    %c0_i32 = arith.constant 0 : i32
    %c0_i32_0 = arith.constant 0 : i32
    return %c0_i32, %arg1 : i32, i32
  }
  func.func @transform_4(%arg0: i32, %arg1: i32, %arg2: i32) -> (i32, i32) {
    %c0_i32 = arith.constant 0 : i32
    return %arg0, %arg1 : i32, i32
  }
}

module attributes {stable_mosaic.version = 11 : i64} {
  func.func @_sum4_kernel(%arg0: i32, %arg1: memref<16x512xf32, #tpu.memory_space<vmem>>, %arg2: memref<16x512xf32, #tpu.memory_space<vmem>>, %arg3: memref<16x512xf32, #tpu.memory_space<vmem>>, %arg4: memref<16x512xf32, #tpu.memory_space<vmem>>, %arg5: memref<16x512xf32, #tpu.memory_space<vmem>>) attributes {dimension_semantics = [#tpu.dimension_semantics<parallel>], iteration_bounds = array<i64: 1>, scalar_prefetch = 0 : i64, scratch_operands = 0 : i64, tpu.core_type = #tpu.core_type<tc>, window_params = [{transform_indices = @transform_0, window_bounds = array<i64: 16, 512>}, {transform_indices = @transform_1, window_bounds = array<i64: 16, 512>}, {transform_indices = @transform_2, window_bounds = array<i64: 16, 512>}, {transform_indices = @transform_3, window_bounds = array<i64: 16, 512>}, {transform_indices = @transform_4, window_bounds = array<i64: 16, 512>}]} {
    %c0 = arith.constant 0 : index
    %c0_0 = arith.constant 0 : index
    %0 = vector.load %arg1[%c0, %c0_0] : memref<16x512xf32, #tpu.memory_space<vmem>>, vector<16x512xf32>
    %c0_1 = arith.constant 0 : index
    %c0_2 = arith.constant 0 : index
    %1 = vector.load %arg2[%c0_1, %c0_2] : memref<16x512xf32, #tpu.memory_space<vmem>>, vector<16x512xf32>
    %2 = arith.addf %0, %1 : vector<16x512xf32>
    %c0_3 = arith.constant 0 : index
    %c0_4 = arith.constant 0 : index
    %3 = vector.load %arg3[%c0_3, %c0_4] : memref<16x512xf32, #tpu.memory_space<vmem>>, vector<16x512xf32>
    %4 = arith.addf %2, %3 : vector<16x512xf32>
    %c0_5 = arith.constant 0 : index
    %c0_6 = arith.constant 0 : index
    %5 = vector.load %arg4[%c0_5, %c0_6] : memref<16x512xf32, #tpu.memory_space<vmem>>, vector<16x512xf32>
    %6 = arith.addf %4, %5 : vector<16x512xf32>
    %c0_7 = arith.constant 0 : index
    %c0_8 = arith.constant 0 : index
    %7 = vector.load %arg5[%c0_7, %c0_8] : memref<16x512xf32, #tpu.memory_space<vmem>>, vector<16x512xf32>
    tpu.vector_store %arg5[%c0_7, %c0_8], %6 {strides = array<i32>} : memref<16x512xf32, #tpu.memory_space<vmem>>, vector<16x512xf32>,
    return
  }
  func.func @transform_0(%arg0: i32) -> (i32, i32) {
    %c0_i32 = arith.constant 0 : i32
    %c0_i32_0 = arith.constant 0 : i32
    return %arg0, %c0_i32 : i32, i32
  }
  func.func @transform_1(%arg0: i32) -> (i32, i32) {
    %c0_i32 = arith.constant 0 : i32
    %c0_i32_0 = arith.constant 0 : i32
    return %arg0, %c0_i32 : i32, i32
  }
  func.func @transform_2(%arg0: i32) -> (i32, i32) {
    %c0_i32 = arith.constant 0 : i32
    %c0_i32_0 = arith.constant 0 : i32
    return %arg0, %c0_i32 : i32, i32
  }
  func.func @transform_3(%arg0: i32) -> (i32, i32) {
    %c0_i32 = arith.constant 0 : i32
    %c0_i32_0 = arith.constant 0 : i32
    return %arg0, %c0_i32 : i32, i32
  }
  func.func @transform_4(%arg0: i32) -> (i32, i32) {
    %c0_i32 = arith.constant 0 : i32
    %c0_i32_0 = arith.constant 0 : i32
    return %arg0, %c0_i32 : i32, i32
  }
}

module attributes {stable_mosaic.version = 11 : i64} {
  func.func @_mm_bn_kernel(%arg0: i32, %arg1: i32, %arg2: i32, %arg3: memref<16x256xbf16, #tpu.memory_space<vmem>>, %arg4: memref<256x128xbf16, #tpu.memory_space<vmem>>, %arg5: memref<1x128xf32, #tpu.memory_space<vmem>>, %arg6: memref<1x128xf32, #tpu.memory_space<vmem>>, %arg7: memref<16x128xf32, #tpu.memory_space<vmem>>, %arg8: memref<16x128xf32, #tpu.memory_space<vmem>>) attributes {dimension_semantics = [#tpu.dimension_semantics<parallel>, #tpu.dimension_semantics<parallel>, #tpu.dimension_semantics<arbitrary>], iteration_bounds = array<i64: 1, 1, 1>, scalar_prefetch = 0 : i64, scratch_operands = 1 : i64, tpu.core_type = #tpu.core_type<tc>, window_params = [{transform_indices = @transform_0, window_bounds = array<i64: 16, 256>}, {transform_indices = @transform_1, window_bounds = array<i64: 256, 128>}, {transform_indices = @transform_2, window_bounds = array<i64: 1, 128>}, {transform_indices = @transform_3, window_bounds = array<i64: 1, 128>}, {transform_indices = @transform_4, window_bounds = array<i64: 16, 128>}]} {
    %c0_i32 = arith.constant 0 : i32
    %0 = arith.cmpi eq, %arg2, %c0_i32 : i32
    %1 = arith.extui %0 : i1 to i32
    %c0_i32_0 = arith.constant 0 : i32
    %2 = arith.cmpi ne, %1, %c0_i32_0 : i32
    scf.if %2 {
      %cst_10 = arith.constant 0.000000e+00 : f32
      %12 = vector.broadcast %cst_10 : f32 to vector<16x128xf32>
      %c0_11 = arith.constant 0 : index
      %c0_12 = arith.constant 0 : index
      %13 = vector.load %arg8[%c0_11, %c0_12] : memref<16x128xf32, #tpu.memory_space<vmem>>, vector<16x128xf32>
      tpu.vector_store %arg8[%c0_11, %c0_12], %12 {strides = array<i32>} : memref<16x128xf32, #tpu.memory_space<vmem>>, vector<16x128xf32>,
    } else {
    }
    %c0 = arith.constant 0 : index
    %c0_1 = arith.constant 0 : index
    %3 = vector.load %arg8[%c0, %c0_1] : memref<16x128xf32, #tpu.memory_space<vmem>>, vector<16x128xf32>
    %c0_2 = arith.constant 0 : index
    %c0_3 = arith.constant 0 : index
    %4 = vector.load %arg3[%c0_2, %c0_3] : memref<16x256xbf16, #tpu.memory_space<vmem>>, vector<16x256xbf16>
    %c0_4 = arith.constant 0 : index
    %c0_5 = arith.constant 0 : index
    %5 = vector.load %arg4[%c0_4, %c0_5] : memref<256x128xbf16, #tpu.memory_space<vmem>>, vector<256x128xbf16>
    %cst = arith.constant dense<0.000000e+00> : vector<16x128xf32>
    %6 = tpu.matmul %4, %5, %cst {dimension_numbers = #tpu.dot_dimension_numbers<[1], [0], [0], [1], [0, 0, 1, 1], [], []>} : vector<16x256xbf16>, vector<256x128xbf16>, vector<16x128xf32> -> vector<16x128xf32>
    %7 = arith.addf %3, %6 : vector<16x128xf32>
    %c0_6 = arith.constant 0 : index
    %c0_7 = arith.constant 0 : index
    %8 = vector.load %arg8[%c0_6, %c0_7] : memref<16x128xf32, #tpu.memory_space<vmem>>, vector<16x128xf32>
    tpu.vector_store %arg8[%c0_6, %c0_7], %7 {strides = array<i32>} : memref<16x128xf32, #tpu.memory_space<vmem>>, vector<16x128xf32>,
    %c0_i32_8 = arith.constant 0 : i32
    %9 = arith.cmpi eq, %arg2, %c0_i32_8 : i32
    %10 = arith.extui %9 : i1 to i32
    %c0_i32_9 = arith.constant 0 : i32
    %11 = arith.cmpi ne, %10, %c0_i32_9 : i32
    scf.if %11 {
      %c0_10 = arith.constant 0 : index
      %c0_11 = arith.constant 0 : index
      %12 = vector.load %arg8[%c0_10, %c0_11] : memref<16x128xf32, #tpu.memory_space<vmem>>, vector<16x128xf32>
      %c0_12 = arith.constant 0 : index
      %c0_13 = arith.constant 0 : index
      %13 = vector.load %arg5[%c0_12, %c0_13] : memref<1x128xf32, #tpu.memory_space<vmem>>, vector<1x128xf32>
      %14 = vector.broadcast %13 : vector<1x128xf32> to vector<16x128xf32>
      %15 = arith.mulf %12, %14 : vector<16x128xf32>
      %c0_14 = arith.constant 0 : index
      %c0_15 = arith.constant 0 : index
      %16 = vector.load %arg6[%c0_14, %c0_15] : memref<1x128xf32, #tpu.memory_space<vmem>>, vector<1x128xf32>
      %17 = vector.broadcast %16 : vector<1x128xf32> to vector<16x128xf32>
      %18 = arith.addf %15, %17 : vector<16x128xf32>
      %c0_16 = arith.constant 0 : index
      %c0_17 = arith.constant 0 : index
      %19 = vector.load %arg7[%c0_16, %c0_17] : memref<16x128xf32, #tpu.memory_space<vmem>>, vector<16x128xf32>
      tpu.vector_store %arg7[%c0_16, %c0_17], %18 {strides = array<i32>} : memref<16x128xf32, #tpu.memory_space<vmem>>, vector<16x128xf32>,
    } else {
    }
    return
  }
  func.func @transform_0(%arg0: i32, %arg1: i32, %arg2: i32) -> (i32, i32) {
    %c0_i32 = arith.constant 0 : i32
    return %arg0, %arg2 : i32, i32
  }
  func.func @transform_1(%arg0: i32, %arg1: i32, %arg2: i32) -> (i32, i32) {
    %c0_i32 = arith.constant 0 : i32
    return %arg2, %arg1 : i32, i32
  }
  func.func @transform_2(%arg0: i32, %arg1: i32, %arg2: i32) -> (i32, i32) {
    %c0_i32 = arith.constant 0 : i32
    %c0_i32_0 = arith.constant 0 : i32
    return %c0_i32, %arg1 : i32, i32
  }
  func.func @transform_3(%arg0: i32, %arg1: i32, %arg2: i32) -> (i32, i32) {
    %c0_i32 = arith.constant 0 : i32
    %c0_i32_0 = arith.constant 0 : i32
    return %c0_i32, %arg1 : i32, i32
  }
  func.func @transform_4(%arg0: i32, %arg1: i32, %arg2: i32) -> (i32, i32) {
    %c0_i32 = arith.constant 0 : i32
    return %arg0, %arg1 : i32, i32
  }
}

</mosaic_0001>

<bundles_post_ra>
// kernel: autodeeplab_forward.101
= control target key start
LH: loop header
LB: loop body
LE: loop exit
PB: predicated region body
PF: predicated region fallthrough
CT: control target
= control target key end

     0   :  { %s1921_s1 = inlined_call_operand.vmem [shape: bf16[128,128], index: 1, kind: input, shape index: {}]   ;;  %s1922_s0 = inlined_call_operand.vmem [shape: bf16[512,128], index: 0, kind: input, shape index: {}]   ;;  %s1923_s2 = inlined_call_operand.vmem [shape: f32[1,128], index: 2, kind: input, shape index: {}]   ;;  %s1924_s3 = inlined_call_operand.vmem [shape: f32[1,128], index: 3, kind: input, shape index: {}]   ;;  %s1925_s4 = inlined_call_operand.vmem [shape: f32[512,128], index: 4, kind: output, shape index: {}]  }
   0x1   :  { %v1406_v0 = vld [vmem:[%s1921_s1 + $0x38] sm:$0xff]   ;;  %v1407_v1 = vld [vmem:[%s1921_s1 + $0x30] sm:$0xff]   ;;  %v1408_v2 = vld [vmem:[%s1921_s1 + $0x28] sm:$0xff]  }
   0x2   :  { %1310 = vmatprep.subr.bf16.mxu0 %v1406_v0  ;;  %1390 = vmatprep.subr.bf16.mxu1 %v1406_v0  ;;  %v1409_v3 = vld [vmem:[%s1921_s1 + $0x20] sm:$0xff]   ;;  %v1410_v6 = vld [vmem:[%s1921_s1 + $0x18] sm:$0xff]   ;;  %v1411_v7 = vld [vmem:[%s1921_s1 + $0x10] sm:$0xff]  }
   0x3   :  { %1311 = vmatpush3.bf16.msra.mxu0 %v1406_v0  ;;  %1398 = vmatpush3.bf16.msra.mxu1 %v1406_v0  ;;  %v1414_v4 = vld [vmem:[%s1922_s0] sm:$0xff]   ;;  %v1412_v8 = vld [vmem:[%s1921_s1 + $0x8] sm:$0xff]   ;;  %v1418_v12 = vld [vmem:[%s1922_s0 + $0x10] sm:$0xff]  }
   0x4   :  { %1312 = vmatprep.subr.bf16.mxu0 %v1407_v1  ;;  %1391 = vmatprep.subr.bf16.mxu1 %v1407_v1  ;;  %v1415_v5 = vld [vmem:[%s1922_s0 + $0x80] sm:$0xff]   ;;  %v1416_v10 = vld [vmem:[%s1922_s0 + $0x8] sm:$0xff]   ;;  %v1419_v13 = vld [vmem:[%s1922_s0 + $0x90] sm:$0xff]  }
   0x5   :  { %1326 = vmatprep.mubr.bf16.mxu0 %v1414_v4  ;;  %1358 = vmatprep.mubr.bf16.mxu1 %v1415_v5  ;;  %v1413_v9 = vld [vmem:[%s1921_s1] sm:$0xff]   ;;  %v1417_v11 = vld [vmem:[%s1922_s0 + $0x88] sm:$0xff]   ;;  %v1420_v14 = vld [vmem:[%s1922_s0 + $0x18] sm:$0xff]  }
   0x6   :  { %v1421_v15 = vld [vmem:[%s1922_s0 + $0x98] sm:$0xff]   ;;  %v1422_v16 = vld [vmem:[%s1922_s0 + $0x20] sm:$0xff]   ;;  %v1424_v18 = vld [vmem:[%s1922_s0 + $0x28] sm:$0xff]  }
   0x7   :  { %1313 = vmatpush3.bf16.msra.mxu0 %v1407_v1  ;;  %1399 = vmatpush3.bf16.msra.mxu1 %v1407_v1  ;;  %v1423_v17 = vld [vmem:[%s1922_s0 + $0xa0] sm:$0xff]   ;;  %v1425_v19 = vld [vmem:[%s1922_s0 + $0xa8] sm:$0xff]   ;;  %v1426_v20 = vld [vmem:[%s1922_s0 + $0x30] sm:$0xff]  }
   0x8   :  { %1314 = vmatprep.subr.bf16.mxu0 %v1408_v2  ;;  %1392 = vmatprep.subr.bf16.mxu1 %v1408_v2  ;;  %v1427_v21 = vld [vmem:[%s1922_s0 + $0xb0] sm:$0xff]   ;;  %v1428_v22 = vld [vmem:[%s1922_s0 + $0x38] sm:$0xff]   ;;  %v1430_v24 = vld [vmem:[%s1922_s0 + $0x40] sm:$0xff]  }
   0x9   :  { %v1429_v23 = vld [vmem:[%s1922_s0 + $0xb8] sm:$0xff]   ;;  %v1431_v25 = vld [vmem:[%s1922_s0 + $0xc0] sm:$0xff]   ;;  %v1432_v26 = vld [vmem:[%s1922_s0 + $0x48] sm:$0xff]  }
   0xa   :  { %v1433_v27 = vld [vmem:[%s1922_s0 + $0xc8] sm:$0xff]   ;;  %v1434_v28 = vld [vmem:[%s1922_s0 + $0x50] sm:$0xff]   ;;  %v1436_v30 = vld [vmem:[%s1922_s0 + $0x58] sm:$0xff]  }
   0xb   :  { %1315 = vmatpush3.bf16.msra.mxu0 %v1408_v2  ;;  %1400 = vmatpush3.bf16.msra.mxu1 %v1408_v2  ;;  %v1435_v29 = vld [vmem:[%s1922_s0 + $0xd0] sm:$0xff]   ;;  %v1437_v31 = vld [vmem:[%s1922_s0 + $0xd8] sm:$0xff]   ;;  %v1438_v32 = vld [vmem:[%s1922_s0 + $0x60] sm:$0xff]  }
   0xc   :  { %1316 = vmatprep.subr.bf16.mxu0 %v1409_v3  ;;  %1393 = vmatprep.subr.bf16.mxu1 %v1409_v3  ;;  %v1439_v33 = vld [vmem:[%s1922_s0 + $0xe0] sm:$0xff]   ;;  %v1440_v34 = vld [vmem:[%s1922_s0 + $0x68] sm:$0xff]   ;;  %v1442_v36 = vld [vmem:[%s1922_s0 + $0x70] sm:$0xff]  }
   0xd   :  { %v1441_v35 = vld [vmem:[%s1922_s0 + $0xe8] sm:$0xff]   ;;  %v1443_v37 = vld [vmem:[%s1922_s0 + $0xf0] sm:$0xff]   ;;  %v1444_v38 = vld [vmem:[%s1922_s0 + $0x78] sm:$0xff]  }
   0xe   :  { %v1445_v39 = vld [vmem:[%s1922_s0 + $0xf8] sm:$0xff]   ;;  %v1594_v40 = vld [vmem:[%s1923_s2] ss:$0 sm:$0xff] }
   0xf   :  { %1317 = vmatpush3.bf16.msra.mxu0 %v1409_v3  ;;  %1401 = vmatpush3.bf16.msra.mxu1 %v1409_v3  ;;  %v1599_v42 = vld [vmem:[%s1924_s3] ss:$0 sm:$0xff] }
  0x10   :  { %1318 = vmatprep.subr.bf16.mxu0 %v1410_v6  ;;  %1394 = vmatprep.subr.bf16.mxu1 %v1410_v6 }
  0x13   :  { %1319 = vmatpush3.bf16.msra.mxu0 %v1410_v6  ;;  %1402 = vmatpush3.bf16.msra.mxu1 %v1410_v6 }
  0x14   :  { %1320 = vmatprep.subr.bf16.mxu0 %v1411_v7  ;;  %1395 = vmatprep.subr.bf16.mxu1 %v1411_v7 }
  0x17   :  { %1321 = vmatpush3.bf16.msra.mxu0 %v1411_v7  ;;  %1403 = vmatpush3.bf16.msra.mxu1 %v1411_v7 }
  0x18   :  { %1322 = vmatprep.subr.bf16.mxu0 %v1412_v8  ;;  %1396 = vmatprep.subr.bf16.mxu1 %v1412_v8 }
  0x1b   :  { %1323 = vmatpush3.bf16.msra.mxu0 %v1412_v8  ;;  %1404 = vmatpush3.bf16.msra.mxu1 %v1412_v8 }
  0x1c   :  { %1324 = vmatprep.subr.bf16.mxu0 %v1413_v9  ;;  %1397 = vmatprep.subr.bf16.mxu1 %v1413_v9 }
  0x1f   :  { %1325 = vmatpush3.bf16.msra.mxu0 %v1413_v9  ;;  %1405 = vmatpush3.bf16.msra.mxu1 %v1413_v9 }
  0x22   :  { %1327 = vmatmul.mubr.bf16.vlgmr.msra.gmra.mxu0 %v1416_v10  ;;  %1359 = vmatmul.mubr.bf16.vlgmr.msra.gmra.mxu1 %v1417_v11 }
  0x23   :  { %1330 = vmatprep.mubr.bf16.mxu0 %v1418_v12  ;;  %1362 = vmatprep.mubr.bf16.mxu1 %v1419_v13 }
  0x2a   :  { %1331 = vmatmul.mubr.bf16.gmra.mxu0 %v1420_v14  ;;  %1363 = vmatmul.mubr.bf16.gmra.mxu1 %v1421_v15 }
  0x2b   :  { %1334 = vmatprep.mubr.bf16.mxu0 %v1422_v16  ;;  %1366 = vmatprep.mubr.bf16.mxu1 %v1423_v17 }
  0x32   :  { %1335 = vmatmul.mubr.bf16.gmra.mxu0 %v1424_v18  ;;  %1367 = vmatmul.mubr.bf16.gmra.mxu1 %v1425_v19 }
  0x33   :  { %1338 = vmatprep.mubr.bf16.mxu0 %v1426_v20  ;;  %1370 = vmatprep.mubr.bf16.mxu1 %v1427_v21 }
  0x3a   :  { %1339 = vmatmul.mubr.bf16.gmra.mxu0 %v1428_v22  ;;  %1371 = vmatmul.mubr.bf16.gmra.mxu1 %v1429_v23 }
  0x3b   :  { %1342 = vmatprep.mubr.bf16.mxu0 %v1430_v24  ;;  %1374 = vmatprep.mubr.bf16.mxu1 %v1431_v25 }
  0x42   :  { %1343 = vmatmul.mubr.bf16.gmra.mxu0 %v1432_v26  ;;  %1375 = vmatmul.mubr.bf16.gmra.mxu1 %v1433_v27 }
  0x43   :  { %1346 = vmatprep.mubr.bf16.mxu0 %v1434_v28  ;;  %1378 = vmatprep.mubr.bf16.mxu1 %v1435_v29 }
  0x4a   :  { %1347 = vmatmul.mubr.bf16.gmra.mxu0 %v1436_v30  ;;  %1379 = vmatmul.mubr.bf16.gmra.mxu1 %v1437_v31 }
  0x4b   :  { %1350 = vmatprep.mubr.bf16.mxu0 %v1438_v32  ;;  %1382 = vmatprep.mubr.bf16.mxu1 %v1439_v33 }
  0x52   :  { %1351 = vmatmul.mubr.bf16.gmra.mxu0 %v1440_v34  ;;  %1383 = vmatmul.mubr.bf16.gmra.mxu1 %v1441_v35 }
  0x53   :  { %1354 = vmatprep.mubr.bf16.mxu0 %v1442_v36  ;;  %1386 = vmatprep.mubr.bf16.mxu1 %v1443_v37 }
  0x5a   :  { %1355 = vmatmul.mubr.bf16.gmra.mxu0 %v1444_v38  ;;  %1387 = vmatmul.mubr.bf16.gmra.mxu1 %v1445_v39 }
  0xe2   :  { %v1328_v41 = vpop.f32.mrf.mxu0  ;;  %v1360_v43 = vpop.f32.mrf.mxu1 }
  0xe3   :  { %v963_v44 = vmul.f32 %v1328_v41, %v1594_v40  ;;  %v995_v45 = vmul.f32 %v1360_v43, %v1594_v40 }
  0xe4   :  { %v504_v46 = vpop.f32.mrf.mxu0  ;;  %v632_v47 = vpop.f32.mrf.mxu1 }
  0xe5   :  { %v1034_v48 = vadd.f32 %v1599_v42, %v963_v44  ;;  %v1066_v49 = vadd.f32 %v1599_v42, %v995_v45  ;;  %v961_v50 = vmul.f32 %v1594_v40, %v504_v46  ;;  %v993_v51 = vmul.f32 %v1594_v40, %v632_v47 }
  0xe6   :  { %v1329_v52 = vpop.f32.mrf.mxu0  ;;  %v1361_v53 = vpop.f32.mrf.mxu1 }
  0xe7   :  { %v1098_v54 = vmax.f32 %v1034_v48, 0.0  ;;  %v1130_v55 = vmax.f32 %v1066_v49, 0.0  ;;  %v1032_v56 = vadd.f32 %v1599_v42, %v961_v50  ;;  %v1064_v57 = vadd.f32 %v1599_v42, %v993_v51 }
  0xe8   :  { %v964_v58 = vmul.f32 %v1329_v52, %v1594_v40  ;;  %v996_v59 = vmul.f32 %v1361_v53, %v1594_v40  ;;  %v507_v60 = vpop.f32.mrf.mxu0  ;;  %v635_v61 = vpop.f32.mrf.mxu1 }
  0xe9   :  { %1162 = vst [vmem:[%s1925_s4 + $0x10] sm:$0xff] %v1098_v54  ;;  %1194 = vst [vmem:[%s1925_s4 + $0x110] sm:$0xff] %v1130_v55  ;;  %v1096_v62 = vmax.f32 %v1032_v56, 0.0  ;;  %v1128_v63 = vmax.f32 %v1064_v57, 0.0  ;;  %v962_v0 = vmul.f32 %v1594_v40, %v507_v60  ;;  %v994_v1 = vmul.f32 %v1594_v40, %v635_v61 }
  0xea   :  { %v1035_v2 = vadd.f32 %v1599_v42, %v964_v58  ;;  %v1067_v3 = vadd.f32 %v1599_v42, %v996_v59  ;;  %v1332_v4 = vpop.f32.mrf.mxu0  ;;  %v1364_v5 = vpop.f32.mrf.mxu1 }
  0xeb   :  { %1160 = vst [vmem:[%s1925_s4] sm:$0xff] %v1096_v62  ;;  %1192 = vst [vmem:[%s1925_s4 + $0x100] sm:$0xff] %v1128_v63  ;;  %v1033_v6 = vadd.f32 %v1599_v42, %v962_v0  ;;  %v1065_v7 = vadd.f32 %v1599_v42, %v994_v1  ;;  %v967_v8 = vmul.f32 %v1332_v4, %v1594_v40 }
  0xec   :  { %v999_v9 = vmul.f32 %v1364_v5, %v1594_v40  ;;  %v1099_v10 = vmax.f32 %v1035_v2, 0.0  ;;  %v1131_v11 = vmax.f32 %v1067_v3, 0.0  ;;  %v520_v12 = vpop.f32.mrf.mxu0  ;;  %v648_v13 = vpop.f32.mrf.mxu1 }
  0xed   :  { %v1097_v14 = vmax.f32 %v1033_v6, 0.0  ;;  %v1129_v15 = vmax.f32 %v1065_v7, 0.0  ;;  %v1038_v16 = vadd.f32 %v1599_v42, %v967_v8  ;;  %v965_v18 = vmul.f32 %v1594_v40, %v520_v12 }
  0xee   :  { %v1070_v17 = vadd.f32 %v1599_v42, %v999_v9  ;;  %1163 = vst [vmem:[%s1925_s4 + $0x18] sm:$0xff] %v1099_v10  ;;  %1195 = vst [vmem:[%s1925_s4 + $0x118] sm:$0xff] %v1131_v11  ;;  %v997_v19 = vmul.f32 %v1594_v40, %v648_v13  ;;  %v1333_v20 = vpop.f32.mrf.mxu0  ;;  %v1365_v21 = vpop.f32.mrf.mxu1 }
  0xef   :  { %1161 = vst [vmem:[%s1925_s4 + $0x8] sm:$0xff] %v1097_v14  ;;  %1193 = vst [vmem:[%s1925_s4 + $0x108] sm:$0xff] %v1129_v15  ;;  %v1102_v22 = vmax.f32 %v1038_v16, 0.0  ;;  %v968_v24 = vmul.f32 %v1333_v20, %v1594_v40  ;;  %v1000_v25 = vmul.f32 %v1365_v21, %v1594_v40  ;;  %v1036_v26 = vadd.f32 %v1599_v42, %v965_v18 }
  0xf0   :  { %v1134_v23 = vmax.f32 %v1070_v17, 0.0  ;;  %v1068_v27 = vadd.f32 %v1599_v42, %v997_v19  ;;  %v523_v28 = vpop.f32.mrf.mxu0  ;;  %v651_v29 = vpop.f32.mrf.mxu1 }
  0xf1   :  { %1166 = vst [vmem:[%s1925_s4 + $0x30] sm:$0xff] %v1102_v22  ;;  %v1039_v30 = vadd.f32 %v1599_v42, %v968_v24  ;;  %v1071_v31 = vadd.f32 %v1599_v42, %v1000_v25  ;;  %v966_v32 = vmul.f32 %v1594_v40, %v523_v28  ;;  %v998_v33 = vmul.f32 %v1594_v40, %v651_v29 }
  0xf2   :  { %1198 = vst [vmem:[%s1925_s4 + $0x130] sm:$0xff] %v1134_v23  ;;  %v1100_v34 = vmax.f32 %v1036_v26, 0.0  ;;  %v1132_v35 = vmax.f32 %v1068_v27, 0.0  ;;  %v1336_v36 = vpop.f32.mrf.mxu0  ;;  %v1368_v37 = vpop.f32.mrf.mxu1 }
  0xf3   :  { %v1103_v38 = vmax.f32 %v1039_v30, 0.0  ;;  %v1135_v39 = vmax.f32 %v1071_v31, 0.0  ;;  %v1037_v41 = vadd.f32 %v1599_v42, %v966_v32  ;;  %v1069_v43 = vadd.f32 %v1599_v42, %v998_v33 }
  0xf4   :  { %1164 = vst [vmem:[%s1925_s4 + $0x20] sm:$0xff] %v1100_v34  ;;  %1196 = vst [vmem:[%s1925_s4 + $0x120] sm:$0xff] %v1132_v35  ;;  %v971_v44 = vmul.f32 %v1336_v36, %v1594_v40  ;;  %v1003_v45 = vmul.f32 %v1368_v37, %v1594_v40  ;;  %v536_v46 = vpop.f32.mrf.mxu0  ;;  %v664_v47 = vpop.f32.mrf.mxu1 }
  0xf5   :  { %1167 = vst [vmem:[%s1925_s4 + $0x38] sm:$0xff] %v1103_v38  ;;  %1199 = vst [vmem:[%s1925_s4 + $0x138] sm:$0xff] %v1135_v39  ;;  %v1101_v48 = vmax.f32 %v1037_v41, 0.0  ;;  %v1133_v49 = vmax.f32 %v1069_v43, 0.0  ;;  %v969_v50 = vmul.f32 %v1594_v40, %v536_v46  ;;  %v1001_v51 = vmul.f32 %v1594_v40, %v664_v47 }
  0xf6   :  { %v1042_v52 = vadd.f32 %v1599_v42, %v971_v44  ;;  %v1074_v53 = vadd.f32 %v1599_v42, %v1003_v45  ;;  %v1337_v54 = vpop.f32.mrf.mxu0  ;;  %v1369_v55 = vpop.f32.mrf.mxu1 }
  0xf7   :  { %1165 = vst [vmem:[%s1925_s4 + $0x28] sm:$0xff] %v1101_v48  ;;  %1197 = vst [vmem:[%s1925_s4 + $0x128] sm:$0xff] %v1133_v49  ;;  %v1040_v56 = vadd.f32 %v1599_v42, %v969_v50  ;;  %v1072_v57 = vadd.f32 %v1599_v42, %v1001_v51  ;;  %v972_v58 = vmul.f32 %v1337_v54, %v1594_v40 }
  0xf8   :  { %v1004_v59 = vmul.f32 %v1369_v55, %v1594_v40  ;;  %v1106_v60 = vmax.f32 %v1042_v52, 0.0  ;;  %v1138_v61 = vmax.f32 %v1074_v53, 0.0  ;;  %v539_v62 = vpop.f32.mrf.mxu0  ;;  %v667_v63 = vpop.f32.mrf.mxu1 }
  0xf9   :  { %v1104_v0 = vmax.f32 %v1040_v56, 0.0  ;;  %v1136_v1 = vmax.f32 %v1072_v57, 0.0  ;;  %v1043_v2 = vadd.f32 %v1599_v42, %v972_v58  ;;  %v970_v4 = vmul.f32 %v1594_v40, %v539_v62 }
  0xfa   :  { %v1075_v3 = vadd.f32 %v1599_v42, %v1004_v59  ;;  %1170 = vst [vmem:[%s1925_s4 + $0x50] sm:$0xff] %v1106_v60  ;;  %1202 = vst [vmem:[%s1925_s4 + $0x150] sm:$0xff] %v1138_v61  ;;  %v1002_v5 = vmul.f32 %v1594_v40, %v667_v63  ;;  %v1340_v6 = vpop.f32.mrf.mxu0  ;;  %v1372_v7 = vpop.f32.mrf.mxu1 }
  0xfb   :  { %1168 = vst [vmem:[%s1925_s4 + $0x40] sm:$0xff] %v1104_v0  ;;  %1200 = vst [vmem:[%s1925_s4 + $0x140] sm:$0xff] %v1136_v1  ;;  %v1107_v8 = vmax.f32 %v1043_v2, 0.0  ;;  %v975_v10 = vmul.f32 %v1340_v6, %v1594_v40  ;;  %v1007_v11 = vmul.f32 %v1372_v7, %v1594_v40  ;;  %v1041_v12 = vadd.f32 %v1599_v42, %v970_v4 }
  0xfc   :  { %v1139_v9 = vmax.f32 %v1075_v3, 0.0  ;;  %v1073_v13 = vadd.f32 %v1599_v42, %v1002_v5  ;;  %v552_v14 = vpop.f32.mrf.mxu0  ;;  %v680_v15 = vpop.f32.mrf.mxu1 }
  0xfd   :  { %1171 = vst [vmem:[%s1925_s4 + $0x58] sm:$0xff] %v1107_v8  ;;  %v1046_v16 = vadd.f32 %v1599_v42, %v975_v10  ;;  %v1078_v17 = vadd.f32 %v1599_v42, %v1007_v11  ;;  %v973_v18 = vmul.f32 %v1594_v40, %v552_v14  ;;  %v1005_v19 = vmul.f32 %v1594_v40, %v680_v15 }
  0xfe   :  { %1203 = vst [vmem:[%s1925_s4 + $0x158] sm:$0xff] %v1139_v9  ;;  %v1105_v20 = vmax.f32 %v1041_v12, 0.0  ;;  %v1137_v21 = vmax.f32 %v1073_v13, 0.0  ;;  %v1341_v22 = vpop.f32.mrf.mxu0  ;;  %v1373_v23 = vpop.f32.mrf.mxu1 }
  0xff   :  { %v1110_v24 = vmax.f32 %v1046_v16, 0.0  ;;  %v1142_v25 = vmax.f32 %v1078_v17, 0.0  ;;  %v1044_v26 = vadd.f32 %v1599_v42, %v973_v18  ;;  %v1076_v27 = vadd.f32 %v1599_v42, %v1005_v19 }
 0x100   :  { %1169 = vst [vmem:[%s1925_s4 + $0x48] sm:$0xff] %v1105_v20  ;;  %1201 = vst [vmem:[%s1925_s4 + $0x148] sm:$0xff] %v1137_v21  ;;  %v976_v28 = vmul.f32 %v1341_v22, %v1594_v40  ;;  %v1008_v29 = vmul.f32 %v1373_v23, %v1594_v40  ;;  %v555_v30 = vpop.f32.mrf.mxu0  ;;  %v683_v31 = vpop.f32.mrf.mxu1 }
 0x101   :  { %1174 = vst [vmem:[%s1925_s4 + $0x70] sm:$0xff] %v1110_v24  ;;  %1206 = vst [vmem:[%s1925_s4 + $0x170] sm:$0xff] %v1142_v25  ;;  %v1108_v32 = vmax.f32 %v1044_v26, 0.0  ;;  %v1140_v33 = vmax.f32 %v1076_v27, 0.0  ;;  %v974_v34 = vmul.f32 %v1594_v40, %v555_v30  ;;  %v1006_v35 = vmul.f32 %v1594_v40, %v683_v31 }
 0x102   :  { %v1047_v36 = vadd.f32 %v1599_v42, %v976_v28  ;;  %v1079_v37 = vadd.f32 %v1599_v42, %v1008_v29  ;;  %v1344_v38 = vpop.f32.mrf.mxu0  ;;  %v1376_v39 = vpop.f32.mrf.mxu1 }
 0x103   :  { %1172 = vst [vmem:[%s1925_s4 + $0x60] sm:$0xff] %v1108_v32  ;;  %1204 = vst [vmem:[%s1925_s4 + $0x160] sm:$0xff] %v1140_v33  ;;  %v1045_v41 = vadd.f32 %v1599_v42, %v974_v34  ;;  %v1077_v43 = vadd.f32 %v1599_v42, %v1006_v35  ;;  %v979_v44 = vmul.f32 %v1344_v38, %v1594_v40 }
 0x104   :  { %v1011_v45 = vmul.f32 %v1376_v39, %v1594_v40  ;;  %v1111_v46 = vmax.f32 %v1047_v36, 0.0  ;;  %v1143_v47 = vmax.f32 %v1079_v37, 0.0  ;;  %v568_v48 = vpop.f32.mrf.mxu0  ;;  %v696_v49 = vpop.f32.mrf.mxu1 }
 0x105   :  { %v1109_v50 = vmax.f32 %v1045_v41, 0.0  ;;  %v1141_v51 = vmax.f32 %v1077_v43, 0.0  ;;  %v1050_v52 = vadd.f32 %v1599_v42, %v979_v44  ;;  %v977_v54 = vmul.f32 %v1594_v40, %v568_v48 }
 0x106   :  { %v1082_v53 = vadd.f32 %v1599_v42, %v1011_v45  ;;  %1175 = vst [vmem:[%s1925_s4 + $0x78] sm:$0xff] %v1111_v46  ;;  %1207 = vst [vmem:[%s1925_s4 + $0x178] sm:$0xff] %v1143_v47  ;;  %v1009_v55 = vmul.f32 %v1594_v40, %v696_v49  ;;  %v1345_v56 = vpop.f32.mrf.mxu0  ;;  %v1377_v57 = vpop.f32.mrf.mxu1 }
 0x107   :  { %1173 = vst [vmem:[%s1925_s4 + $0x68] sm:$0xff] %v1109_v50  ;;  %1205 = vst [vmem:[%s1925_s4 + $0x168] sm:$0xff] %v1141_v51  ;;  %v1114_v58 = vmax.f32 %v1050_v52, 0.0  ;;  %v980_v60 = vmul.f32 %v1345_v56, %v1594_v40  ;;  %v1012_v61 = vmul.f32 %v1377_v57, %v1594_v40  ;;  %v1048_v62 = vadd.f32 %v1599_v42, %v977_v54 }
 0x108   :  { %v1146_v59 = vmax.f32 %v1082_v53, 0.0  ;;  %v1080_v63 = vadd.f32 %v1599_v42, %v1009_v55  ;;  %v571_v0 = vpop.f32.mrf.mxu0  ;;  %v699_v1 = vpop.f32.mrf.mxu1 }
 0x109   :  { %1178 = vst [vmem:[%s1925_s4 + $0x90] sm:$0xff] %v1114_v58  ;;  %v1051_v2 = vadd.f32 %v1599_v42, %v980_v60  ;;  %v1083_v3 = vadd.f32 %v1599_v42, %v1012_v61  ;;  %v978_v4 = vmul.f32 %v1594_v40, %v571_v0  ;;  %v1010_v5 = vmul.f32 %v1594_v40, %v699_v1 }
 0x10a   :  { %1210 = vst [vmem:[%s1925_s4 + $0x190] sm:$0xff] %v1146_v59  ;;  %v1112_v6 = vmax.f32 %v1048_v62, 0.0  ;;  %v1144_v7 = vmax.f32 %v1080_v63, 0.0  ;;  %v1348_v8 = vpop.f32.mrf.mxu0  ;;  %v1380_v9 = vpop.f32.mrf.mxu1 }
 0x10b   :  { %v1115_v10 = vmax.f32 %v1051_v2, 0.0  ;;  %v1147_v11 = vmax.f32 %v1083_v3, 0.0  ;;  %v1049_v12 = vadd.f32 %v1599_v42, %v978_v4  ;;  %v1081_v13 = vadd.f32 %v1599_v42, %v1010_v5 }
 0x10c   :  { %1176 = vst [vmem:[%s1925_s4 + $0x80] sm:$0xff] %v1112_v6  ;;  %1208 = vst [vmem:[%s1925_s4 + $0x180] sm:$0xff] %v1144_v7  ;;  %v983_v14 = vmul.f32 %v1348_v8, %v1594_v40  ;;  %v1015_v15 = vmul.f32 %v1380_v9, %v1594_v40  ;;  %v584_v16 = vpop.f32.mrf.mxu0  ;;  %v712_v17 = vpop.f32.mrf.mxu1 }
 0x10d   :  { %1179 = vst [vmem:[%s1925_s4 + $0x98] sm:$0xff] %v1115_v10  ;;  %1211 = vst [vmem:[%s1925_s4 + $0x198] sm:$0xff] %v1147_v11  ;;  %v1113_v18 = vmax.f32 %v1049_v12, 0.0  ;;  %v1145_v19 = vmax.f32 %v1081_v13, 0.0  ;;  %v981_v20 = vmul.f32 %v1594_v40, %v584_v16  ;;  %v1013_v21 = vmul.f32 %v1594_v40, %v712_v17 }
 0x10e   :  { %v1054_v22 = vadd.f32 %v1599_v42, %v983_v14  ;;  %v1086_v23 = vadd.f32 %v1599_v42, %v1015_v15  ;;  %v1349_v24 = vpop.f32.mrf.mxu0  ;;  %v1381_v25 = vpop.f32.mrf.mxu1 }
 0x10f   :  { %1177 = vst [vmem:[%s1925_s4 + $0x88] sm:$0xff] %v1113_v18  ;;  %1209 = vst [vmem:[%s1925_s4 + $0x188] sm:$0xff] %v1145_v19  ;;  %v1052_v26 = vadd.f32 %v1599_v42, %v981_v20  ;;  %v1084_v27 = vadd.f32 %v1599_v42, %v1013_v21  ;;  %v984_v28 = vmul.f32 %v1349_v24, %v1594_v40 }
 0x110   :  { %v1016_v29 = vmul.f32 %v1381_v25, %v1594_v40  ;;  %v1118_v30 = vmax.f32 %v1054_v22, 0.0  ;;  %v1150_v31 = vmax.f32 %v1086_v23, 0.0  ;;  %v587_v32 = vpop.f32.mrf.mxu0  ;;  %v715_v33 = vpop.f32.mrf.mxu1 }
 0x111   :  { %v1116_v34 = vmax.f32 %v1052_v26, 0.0  ;;  %v1148_v35 = vmax.f32 %v1084_v27, 0.0  ;;  %v1055_v36 = vadd.f32 %v1599_v42, %v984_v28  ;;  %v982_v38 = vmul.f32 %v1594_v40, %v587_v32 }
 0x112   :  { %v1087_v37 = vadd.f32 %v1599_v42, %v1016_v29  ;;  %1182 = vst [vmem:[%s1925_s4 + $0xb0] sm:$0xff] %v1118_v30  ;;  %1214 = vst [vmem:[%s1925_s4 + $0x1b0] sm:$0xff] %v1150_v31  ;;  %v1014_v39 = vmul.f32 %v1594_v40, %v715_v33  ;;  %v1352_v41 = vpop.f32.mrf.mxu0  ;;  %v1384_v43 = vpop.f32.mrf.mxu1 }
 0x113   :  { %1180 = vst [vmem:[%s1925_s4 + $0xa0] sm:$0xff] %v1116_v34  ;;  %1212 = vst [vmem:[%s1925_s4 + $0x1a0] sm:$0xff] %v1148_v35  ;;  %v1119_v44 = vmax.f32 %v1055_v36, 0.0  ;;  %v987_v46 = vmul.f32 %v1352_v41, %v1594_v40  ;;  %v1019_v47 = vmul.f32 %v1384_v43, %v1594_v40  ;;  %v1053_v48 = vadd.f32 %v1599_v42, %v982_v38 }
 0x114   :  { %v1151_v45 = vmax.f32 %v1087_v37, 0.0  ;;  %v1085_v49 = vadd.f32 %v1599_v42, %v1014_v39  ;;  %v600_v50 = vpop.f32.mrf.mxu0  ;;  %v728_v51 = vpop.f32.mrf.mxu1 }
 0x115   :  { %1183 = vst [vmem:[%s1925_s4 + $0xb8] sm:$0xff] %v1119_v44  ;;  %v1058_v52 = vadd.f32 %v1599_v42, %v987_v46  ;;  %v1090_v53 = vadd.f32 %v1599_v42, %v1019_v47  ;;  %v985_v54 = vmul.f32 %v1594_v40, %v600_v50  ;;  %v1017_v55 = vmul.f32 %v1594_v40, %v728_v51 }
 0x116   :  { %1215 = vst [vmem:[%s1925_s4 + $0x1b8] sm:$0xff] %v1151_v45  ;;  %v1117_v56 = vmax.f32 %v1053_v48, 0.0  ;;  %v1149_v57 = vmax.f32 %v1085_v49, 0.0  ;;  %v1353_v58 = vpop.f32.mrf.mxu0  ;;  %v1385_v59 = vpop.f32.mrf.mxu1 }
 0x117   :  { %v1122_v60 = vmax.f32 %v1058_v52, 0.0  ;;  %v1154_v61 = vmax.f32 %v1090_v53, 0.0  ;;  %v1056_v62 = vadd.f32 %v1599_v42, %v985_v54  ;;  %v1088_v63 = vadd.f32 %v1599_v42, %v1017_v55 }
 0x118   :  { %1181 = vst [vmem:[%s1925_s4 + $0xa8] sm:$0xff] %v1117_v56  ;;  %1213 = vst [vmem:[%s1925_s4 + $0x1a8] sm:$0xff] %v1149_v57  ;;  %v988_v0 = vmul.f32 %v1353_v58, %v1594_v40  ;;  %v1020_v1 = vmul.f32 %v1385_v59, %v1594_v40  ;;  %v603_v2 = vpop.f32.mrf.mxu0  ;;  %v731_v3 = vpop.f32.mrf.mxu1 }
 0x119   :  { %1186 = vst [vmem:[%s1925_s4 + $0xd0] sm:$0xff] %v1122_v60  ;;  %1218 = vst [vmem:[%s1925_s4 + $0x1d0] sm:$0xff] %v1154_v61  ;;  %v1120_v4 = vmax.f32 %v1056_v62, 0.0  ;;  %v1152_v5 = vmax.f32 %v1088_v63, 0.0  ;;  %v986_v6 = vmul.f32 %v1594_v40, %v603_v2  ;;  %v1018_v7 = vmul.f32 %v1594_v40, %v731_v3 }
 0x11a   :  { %v1059_v8 = vadd.f32 %v1599_v42, %v988_v0  ;;  %v1091_v9 = vadd.f32 %v1599_v42, %v1020_v1  ;;  %v1356_v10 = vpop.f32.mrf.mxu0  ;;  %v1388_v11 = vpop.f32.mrf.mxu1 }
 0x11b   :  { %1184 = vst [vmem:[%s1925_s4 + $0xc0] sm:$0xff] %v1120_v4  ;;  %1216 = vst [vmem:[%s1925_s4 + $0x1c0] sm:$0xff] %v1152_v5  ;;  %v1057_v12 = vadd.f32 %v1599_v42, %v986_v6  ;;  %v1089_v13 = vadd.f32 %v1599_v42, %v1018_v7  ;;  %v991_v14 = vmul.f32 %v1356_v10, %v1594_v40 }
 0x11c   :  { %v1023_v15 = vmul.f32 %v1388_v11, %v1594_v40  ;;  %v1123_v16 = vmax.f32 %v1059_v8, 0.0  ;;  %v1155_v17 = vmax.f32 %v1091_v9, 0.0  ;;  %v616_v18 = vpop.f32.mrf.mxu0  ;;  %v744_v19 = vpop.f32.mrf.mxu1 }
 0x11d   :  { %v1121_v20 = vmax.f32 %v1057_v12, 0.0  ;;  %v1153_v21 = vmax.f32 %v1089_v13, 0.0  ;;  %v1062_v22 = vadd.f32 %v1599_v42, %v991_v14  ;;  %v989_v24 = vmul.f32 %v1594_v40, %v616_v18 }
 0x11e   :  { %v1094_v23 = vadd.f32 %v1599_v42, %v1023_v15  ;;  %1187 = vst [vmem:[%s1925_s4 + $0xd8] sm:$0xff] %v1123_v16  ;;  %1219 = vst [vmem:[%s1925_s4 + $0x1d8] sm:$0xff] %v1155_v17  ;;  %v1021_v25 = vmul.f32 %v1594_v40, %v744_v19  ;;  %v1357_v26 = vpop.f32.mrf.mxu0  ;;  %v1389_v27 = vpop.f32.mrf.mxu1 }
 0x11f   :  { %1185 = vst [vmem:[%s1925_s4 + $0xc8] sm:$0xff] %v1121_v20  ;;  %1217 = vst [vmem:[%s1925_s4 + $0x1c8] sm:$0xff] %v1153_v21  ;;  %v1126_v28 = vmax.f32 %v1062_v22, 0.0  ;;  %v992_v30 = vmul.f32 %v1357_v26, %v1594_v40  ;;  %v1024_v31 = vmul.f32 %v1389_v27, %v1594_v40  ;;  %v1060_v32 = vadd.f32 %v1599_v42, %v989_v24 }
 0x120   :  { %v1158_v29 = vmax.f32 %v1094_v23, 0.0  ;;  %v1092_v33 = vadd.f32 %v1599_v42, %v1021_v25  ;;  %v619_v34 = vpop.f32.mrf.mxu0  ;;  %v747_v35 = vpop.f32.mrf.mxu1 }
 0x121   :  { %1190 = vst [vmem:[%s1925_s4 + $0xf0] sm:$0xff] %v1126_v28  ;;  %v1063_v36 = vadd.f32 %v1599_v42, %v992_v30  ;;  %v1095_v37 = vadd.f32 %v1599_v42, %v1024_v31  ;;  %v990_v38 = vmul.f32 %v1594_v40, %v619_v34  ;;  %v1022_v39 = vmul.f32 %v1594_v40, %v747_v35 }
 0x122   :  { %1222 = vst [vmem:[%s1925_s4 + $0x1f0] sm:$0xff] %v1158_v29  ;;  %v1124_v41 = vmax.f32 %v1060_v32, 0.0  ;;  %v1156_v43 = vmax.f32 %v1092_v33, 0.0 }
 0x123   :  { %v1127_v44 = vmax.f32 %v1063_v36, 0.0  ;;  %v1159_v45 = vmax.f32 %v1095_v37, 0.0  ;;  %v1061_v46 = vadd.f32 %v1599_v42, %v990_v38  ;;  %v1093_v47 = vadd.f32 %v1599_v42, %v1022_v39 }
 0x124   :  { %1188 = vst [vmem:[%s1925_s4 + $0xe0] sm:$0xff] %v1124_v41  ;;  %1220 = vst [vmem:[%s1925_s4 + $0x1e0] sm:$0xff] %v1156_v43 }
 0x125   :  { %1191 = vst [vmem:[%s1925_s4 + $0xf8] sm:$0xff] %v1127_v44  ;;  %1223 = vst [vmem:[%s1925_s4 + $0x1f8] sm:$0xff] %v1159_v45  ;;  %v1125_v40 = vmax.f32 %v1061_v46, 0.0  ;;  %v1157_v48 = vmax.f32 %v1093_v47, 0.0 }
 0x127   :  { %1189 = vst [vmem:[%s1925_s4 + $0xe8] sm:$0xff] %v1125_v40  ;;  %1221 = vst [vmem:[%s1925_s4 + $0x1e8] sm:$0xff] %v1157_v48 }

// kernel: autodeeplab_forward.103
= control target key start
LH: loop header
LB: loop body
LE: loop exit
PB: predicated region body
PF: predicated region fallthrough
CT: control target
= control target key end

     0   :  { %s673_s1 = inlined_call_operand.vmem [shape: bf16[128,128], index: 1, kind: input, shape index: {}]   ;;  %s674_s0 = inlined_call_operand.vmem [shape: bf16[128,128], index: 0, kind: input, shape index: {}]   ;;  %s675_s2 = inlined_call_operand.vmem [shape: f32[1,128], index: 2, kind: input, shape index: {}]   ;;  %s676_s3 = inlined_call_operand.vmem [shape: f32[1,128], index: 3, kind: input, shape index: {}]   ;;  %s677_s4 = inlined_call_operand.vmem [shape: f32[128,128], index: 4, kind: output, shape index: {}]  }
   0x1   :  { %v494_v0 = vld [vmem:[%s673_s1 + $0x38] sm:$0xff]   ;;  %v495_v1 = vld [vmem:[%s673_s1 + $0x30] sm:$0xff]   ;;  %v496_v2 = vld [vmem:[%s673_s1 + $0x28] sm:$0xff]  }
   0x2   :  { %446 = vmatprep.subr.bf16.mxu0 %v494_v0  ;;  %478 = vmatprep.subr.bf16.mxu1 %v494_v0  ;;  %v497_v3 = vld [vmem:[%s673_s1 + $0x20] sm:$0xff]   ;;  %v498_v6 = vld [vmem:[%s673_s1 + $0x18] sm:$0xff]   ;;  %v499_v7 = vld [vmem:[%s673_s1 + $0x10] sm:$0xff]  }
   0x3   :  { %447 = vmatpush3.bf16.msra.mxu0 %v494_v0  ;;  %486 = vmatpush3.bf16.msra.mxu1 %v494_v0  ;;  %v502_v4 = vld [vmem:[%s674_s0] sm:$0xff]   ;;  %v500_v8 = vld [vmem:[%s673_s1 + $0x8] sm:$0xff]   ;;  %v506_v12 = vld [vmem:[%s674_s0 + $0x10] sm:$0xff]  }
   0x4   :  { %448 = vmatprep.subr.bf16.mxu0 %v495_v1  ;;  %479 = vmatprep.subr.bf16.mxu1 %v495_v1  ;;  %v503_v5 = vld [vmem:[%s674_s0 + $0x20] sm:$0xff]   ;;  %v504_v10 = vld [vmem:[%s674_s0 + $0x8] sm:$0xff]   ;;  %v507_v13 = vld [vmem:[%s674_s0 + $0x30] sm:$0xff]  }
   0x5   :  { %462 = vmatprep.mubr.bf16.mxu0 %v502_v4  ;;  %470 = vmatprep.mubr.bf16.mxu1 %v503_v5  ;;  %v501_v9 = vld [vmem:[%s673_s1] sm:$0xff]   ;;  %v505_v11 = vld [vmem:[%s674_s0 + $0x28] sm:$0xff]   ;;  %v508_v14 = vld [vmem:[%s674_s0 + $0x18] sm:$0xff]  }
   0x6   :  { %v509_v15 = vld [vmem:[%s674_s0 + $0x38] sm:$0xff]   ;;  %v586_v16 = vld [vmem:[%s675_s2] ss:$0 sm:$0xff] }
   0x7   :  { %449 = vmatpush3.bf16.msra.mxu0 %v495_v1  ;;  %487 = vmatpush3.bf16.msra.mxu1 %v495_v1  ;;  %v591_v18 = vld [vmem:[%s676_s3] ss:$0 sm:$0xff] }
   0x8   :  { %450 = vmatprep.subr.bf16.mxu0 %v496_v2  ;;  %480 = vmatprep.subr.bf16.mxu1 %v496_v2 }
   0xb   :  { %451 = vmatpush3.bf16.msra.mxu0 %v496_v2  ;;  %488 = vmatpush3.bf16.msra.mxu1 %v496_v2 }
   0xc   :  { %452 = vmatprep.subr.bf16.mxu0 %v497_v3  ;;  %481 = vmatprep.subr.bf16.mxu1 %v497_v3 }
   0xf   :  { %453 = vmatpush3.bf16.msra.mxu0 %v497_v3  ;;  %489 = vmatpush3.bf16.msra.mxu1 %v497_v3 }
  0x10   :  { %454 = vmatprep.subr.bf16.mxu0 %v498_v6  ;;  %482 = vmatprep.subr.bf16.mxu1 %v498_v6 }
  0x13   :  { %455 = vmatpush3.bf16.msra.mxu0 %v498_v6  ;;  %490 = vmatpush3.bf16.msra.mxu1 %v498_v6 }
  0x14   :  { %456 = vmatprep.subr.bf16.mxu0 %v499_v7  ;;  %483 = vmatprep.subr.bf16.mxu1 %v499_v7 }
  0x17   :  { %457 = vmatpush3.bf16.msra.mxu0 %v499_v7  ;;  %491 = vmatpush3.bf16.msra.mxu1 %v499_v7 }
  0x18   :  { %458 = vmatprep.subr.bf16.mxu0 %v500_v8  ;;  %484 = vmatprep.subr.bf16.mxu1 %v500_v8 }
  0x1b   :  { %459 = vmatpush3.bf16.msra.mxu0 %v500_v8  ;;  %492 = vmatpush3.bf16.msra.mxu1 %v500_v8 }
  0x1c   :  { %460 = vmatprep.subr.bf16.mxu0 %v501_v9  ;;  %485 = vmatprep.subr.bf16.mxu1 %v501_v9 }
  0x1f   :  { %461 = vmatpush3.bf16.msra.mxu0 %v501_v9  ;;  %493 = vmatpush3.bf16.msra.mxu1 %v501_v9 }
  0x22   :  { %463 = vmatmul.mubr.bf16.vlgmr.msra.gmra.mxu0 %v504_v10  ;;  %471 = vmatmul.mubr.bf16.vlgmr.msra.gmra.mxu1 %v505_v11 }
  0x23   :  { %466 = vmatprep.mubr.bf16.mxu0 %v506_v12  ;;  %474 = vmatprep.mubr.bf16.mxu1 %v507_v13 }
  0x2a   :  { %467 = vmatmul.mubr.bf16.gmra.mxu0 %v508_v14  ;;  %475 = vmatmul.mubr.bf16.gmra.mxu1 %v509_v15 }
  0xe2   :  { %v464_v17 = vpop.f32.mrf.mxu0  ;;  %v472_v19 = vpop.f32.mrf.mxu1 }
  0xe3   :  { %v339_v20 = vmul.f32 %v464_v17, %v586_v16  ;;  %v347_v21 = vmul.f32 %v472_v19, %v586_v16 }
  0xe4   :  { %v216_v22 = vpop.f32.mrf.mxu0  ;;  %v248_v23 = vpop.f32.mrf.mxu1 }
  0xe5   :  { %v362_v24 = vadd.f32 %v591_v18, %v339_v20  ;;  %v370_v25 = vadd.f32 %v591_v18, %v347_v21  ;;  %v337_v26 = vmul.f32 %v586_v16, %v216_v22  ;;  %v345_v27 = vmul.f32 %v586_v16, %v248_v23 }
  0xe6   :  { %v465_v28 = vpop.f32.mrf.mxu0  ;;  %v473_v29 = vpop.f32.mrf.mxu1 }
  0xe7   :  { %v378_v30 = vmax.f32 %v362_v24, 0.0  ;;  %v386_v31 = vmax.f32 %v370_v25, 0.0  ;;  %v360_v32 = vadd.f32 %v591_v18, %v337_v26  ;;  %v368_v33 = vadd.f32 %v591_v18, %v345_v27 }
  0xe8   :  { %v340_v34 = vmul.f32 %v465_v28, %v586_v16  ;;  %v348_v35 = vmul.f32 %v473_v29, %v586_v16  ;;  %v219_v36 = vpop.f32.mrf.mxu0  ;;  %v251_v37 = vpop.f32.mrf.mxu1 }
  0xe9   :  { %394 = vst [vmem:[%s677_s4 + $0x10] sm:$0xff] %v378_v30  ;;  %402 = vst [vmem:[%s677_s4 + $0x50] sm:$0xff] %v386_v31  ;;  %v376_v38 = vmax.f32 %v360_v32, 0.0  ;;  %v384_v39 = vmax.f32 %v368_v33, 0.0  ;;  %v338_v40 = vmul.f32 %v586_v16, %v219_v36  ;;  %v346_v41 = vmul.f32 %v586_v16, %v251_v37 }
  0xea   :  { %v363_v42 = vadd.f32 %v591_v18, %v340_v34  ;;  %v371_v43 = vadd.f32 %v591_v18, %v348_v35  ;;  %v468_v44 = vpop.f32.mrf.mxu0  ;;  %v476_v45 = vpop.f32.mrf.mxu1 }
  0xeb   :  { %392 = vst [vmem:[%s677_s4] sm:$0xff] %v376_v38  ;;  %400 = vst [vmem:[%s677_s4 + $0x40] sm:$0xff] %v384_v39  ;;  %v361_v46 = vadd.f32 %v591_v18, %v338_v40  ;;  %v369_v47 = vadd.f32 %v591_v18, %v346_v41  ;;  %v343_v48 = vmul.f32 %v468_v44, %v586_v16 }
  0xec   :  { %v351_v49 = vmul.f32 %v476_v45, %v586_v16  ;;  %v379_v50 = vmax.f32 %v363_v42, 0.0  ;;  %v387_v51 = vmax.f32 %v371_v43, 0.0  ;;  %v232_v52 = vpop.f32.mrf.mxu0  ;;  %v264_v53 = vpop.f32.mrf.mxu1 }
  0xed   :  { %v377_v54 = vmax.f32 %v361_v46, 0.0  ;;  %v385_v55 = vmax.f32 %v369_v47, 0.0  ;;  %v366_v56 = vadd.f32 %v591_v18, %v343_v48  ;;  %v341_v58 = vmul.f32 %v586_v16, %v232_v52 }
  0xee   :  { %v374_v57 = vadd.f32 %v591_v18, %v351_v49  ;;  %395 = vst [vmem:[%s677_s4 + $0x18] sm:$0xff] %v379_v50  ;;  %403 = vst [vmem:[%s677_s4 + $0x58] sm:$0xff] %v387_v51  ;;  %v349_v59 = vmul.f32 %v586_v16, %v264_v53  ;;  %v469_v60 = vpop.f32.mrf.mxu0  ;;  %v477_v61 = vpop.f32.mrf.mxu1 }
  0xef   :  { %393 = vst [vmem:[%s677_s4 + $0x8] sm:$0xff] %v377_v54  ;;  %401 = vst [vmem:[%s677_s4 + $0x48] sm:$0xff] %v385_v55  ;;  %v382_v62 = vmax.f32 %v366_v56, 0.0  ;;  %v344_v0 = vmul.f32 %v469_v60, %v586_v16  ;;  %v352_v1 = vmul.f32 %v477_v61, %v586_v16  ;;  %v364_v2 = vadd.f32 %v591_v18, %v341_v58 }
  0xf0   :  { %v390_v63 = vmax.f32 %v374_v57, 0.0  ;;  %v372_v3 = vadd.f32 %v591_v18, %v349_v59  ;;  %v235_v4 = vpop.f32.mrf.mxu0  ;;  %v267_v5 = vpop.f32.mrf.mxu1 }
  0xf1   :  { %398 = vst [vmem:[%s677_s4 + $0x30] sm:$0xff] %v382_v62  ;;  %v367_v6 = vadd.f32 %v591_v18, %v344_v0  ;;  %v375_v7 = vadd.f32 %v591_v18, %v352_v1  ;;  %v342_v8 = vmul.f32 %v586_v16, %v235_v4  ;;  %v350_v9 = vmul.f32 %v586_v16, %v267_v5 }
  0xf2   :  { %406 = vst [vmem:[%s677_s4 + $0x70] sm:$0xff] %v390_v63  ;;  %v380_v10 = vmax.f32 %v364_v2, 0.0  ;;  %v388_v11 = vmax.f32 %v372_v3, 0.0 }
  0xf3   :  { %v383_v12 = vmax.f32 %v367_v6, 0.0  ;;  %v391_v13 = vmax.f32 %v375_v7, 0.0  ;;  %v365_v14 = vadd.f32 %v591_v18, %v342_v8  ;;  %v373_v15 = vadd.f32 %v591_v18, %v350_v9 }
  0xf4   :  { %396 = vst [vmem:[%s677_s4 + $0x20] sm:$0xff] %v380_v10  ;;  %404 = vst [vmem:[%s677_s4 + $0x60] sm:$0xff] %v388_v11 }
  0xf5   :  { %399 = vst [vmem:[%s677_s4 + $0x38] sm:$0xff] %v383_v12  ;;  %407 = vst [vmem:[%s677_s4 + $0x78] sm:$0xff] %v391_v13  ;;  %v381_v16 = vmax.f32 %v365_v14, 0.0  ;;  %v389_v17 = vmax.f32 %v373_v15, 0.0 }
  0xf7   :  { %397 = vst [vmem:[%s677_s4 + $0x28] sm:$0xff] %v381_v16  ;;  %405 = vst [vmem:[%s677_s4 + $0x68] sm:$0xff] %v389_v17 }

// kernel: autodeeplab_forward.107
= control target key start
LH: loop header
LB: loop body
LE: loop exit
PB: predicated region body
PF: predicated region fallthrough
CT: control target
= control target key end

     0   :  { %s333_s1 = inlined_call_operand.vmem [shape: bf16[128,128], index: 1, kind: input, shape index: {}]   ;;  %s334_s0 = inlined_call_operand.vmem [shape: bf16[32,128], index: 0, kind: input, shape index: {}]   ;;  %s335_s2 = inlined_call_operand.vmem [shape: f32[1,128], index: 2, kind: input, shape index: {}]   ;;  %s336_s3 = inlined_call_operand.vmem [shape: f32[1,128], index: 3, kind: input, shape index: {}]   ;;  %s337_s4 = inlined_call_operand.vmem [shape: f32[32,128], index: 4, kind: output, shape index: {}]  }
   0x1   :  { %v250_v0 = vld [vmem:[%s333_s1 + $0x38] sm:$0xff]   ;;  %v251_v1 = vld [vmem:[%s333_s1 + $0x30] sm:$0xff]   ;;  %v252_v2 = vld [vmem:[%s333_s1 + $0x28] sm:$0xff]  }
   0x2   :  { %230 = vmatprep.subr.bf16.mxu0 %v250_v0  ;;  %v253_v3 = vld [vmem:[%s333_s1 + $0x20] sm:$0xff]   ;;  %v254_v5 = vld [vmem:[%s333_s1 + $0x18] sm:$0xff]   ;;  %v255_v6 = vld [vmem:[%s333_s1 + $0x10] sm:$0xff]  }
   0x3   :  { %231 = vmatpush3.bf16.msra.mxu0 %v250_v0  ;;  %v258_v4 = vld [vmem:[%s334_s0] sm:$0xff]   ;;  %v256_v7 = vld [vmem:[%s333_s1 + $0x8] sm:$0xff]  }
   0x4   :  { %232 = vmatprep.subr.bf16.mxu0 %v251_v1  ;;  %246 = vmatprep.mubr.bf16.mxu0 %v258_v4  ;;  %v257_v8 = vld [vmem:[%s333_s1] sm:$0xff]   ;;  %v259_v9 = vld [vmem:[%s334_s0 + $0x8] sm:$0xff]  }
   0x5   :  { %v218_v10 = vld [vmem:[%s335_s2] ss:$0 sm:$0xff] }
   0x6   :  { %v219_v12 = vld [vmem:[%s336_s3] ss:$0 sm:$0xff] }
   0x7   :  { %233 = vmatpush3.bf16.msra.mxu0 %v251_v1 }
   0x8   :  { %234 = vmatprep.subr.bf16.mxu0 %v252_v2 }
   0xb   :  { %235 = vmatpush3.bf16.msra.mxu0 %v252_v2 }
   0xc   :  { %236 = vmatprep.subr.bf16.mxu0 %v253_v3 }
   0xf   :  { %237 = vmatpush3.bf16.msra.mxu0 %v253_v3 }
  0x10   :  { %238 = vmatprep.subr.bf16.mxu0 %v254_v5 }
  0x13   :  { %239 = vmatpush3.bf16.msra.mxu0 %v254_v5 }
  0x14   :  { %240 = vmatprep.subr.bf16.mxu0 %v255_v6 }
  0x17   :  { %241 = vmatpush3.bf16.msra.mxu0 %v255_v6 }
  0x18   :  { %242 = vmatprep.subr.bf16.mxu0 %v256_v7 }
  0x1b   :  { %243 = vmatpush3.bf16.msra.mxu0 %v256_v7 }
  0x1c   :  { %244 = vmatprep.subr.bf16.mxu0 %v257_v8 }
  0x1f   :  { %245 = vmatpush3.bf16.msra.mxu0 %v257_v8 }
  0x22   :  { %247 = vmatmul.mubr.bf16.vlgmr.msra.gmra.mxu0 %v259_v9 }
  0xe2   :  { %v248_v11 = vpop.f32.mrf.mxu0 }
  0xe3   :  { %v183_v13 = vmul.f32 %v248_v11, %v218_v10 }
  0xe4   :  { %v144_v14 = vpop.f32.mrf.mxu0 }
  0xe5   :  { %v194_v15 = vadd.f32 %v219_v12, %v183_v13  ;;  %v181_v16 = vmul.f32 %v218_v10, %v144_v14 }
  0xe6   :  { %v249_v17 = vpop.f32.mrf.mxu0 }
  0xe7   :  { %v198_v18 = vmax.f32 %v194_v15, 0.0  ;;  %v192_v19 = vadd.f32 %v219_v12, %v181_v16  ;;  %v184_v20 = vmul.f32 %v249_v17, %v218_v10 }
  0xe8   :  { %v147_v21 = vpop.f32.mrf.mxu0 }
  0xe9   :  { %202 = vst [vmem:[%s337_s4 + $0x10] sm:$0xff] %v198_v18  ;;  %v196_v22 = vmax.f32 %v192_v19, 0.0  ;;  %v195_v23 = vadd.f32 %v219_v12, %v184_v20  ;;  %v182_v24 = vmul.f32 %v218_v10, %v147_v21 }
  0xeb   :  { %200 = vst [vmem:[%s337_s4] sm:$0xff] %v196_v22  ;;  %v199_v25 = vmax.f32 %v195_v23, 0.0  ;;  %v193_v26 = vadd.f32 %v219_v12, %v182_v24 }
  0xed   :  { %203 = vst [vmem:[%s337_s4 + $0x18] sm:$0xff] %v199_v25  ;;  %v197_v27 = vmax.f32 %v193_v26, 0.0 }
  0xef   :  { %201 = vst [vmem:[%s337_s4 + $0x8] sm:$0xff] %v197_v27 }

// kernel: autodeeplab_forward.108
= control target key start
LH: loop header
LB: loop body
LE: loop exit
PB: predicated region body
PF: predicated region fallthrough
CT: control target
= control target key end

     0   :  { %s329_s1 = inlined_call_operand.vmem [shape: bf16[128,128], index: 1, kind: input, shape index: {}]   ;;  %s330_s0 = inlined_call_operand.vmem [shape: bf16[32,128], index: 0, kind: input, shape index: {}]   ;;  %s331_s2 = inlined_call_operand.vmem [shape: f32[1,128], index: 2, kind: input, shape index: {}]   ;;  %s332_s3 = inlined_call_operand.vmem [shape: f32[1,128], index: 3, kind: input, shape index: {}]   ;;  %s333_s4 = inlined_call_operand.vmem [shape: f32[32,128], index: 4, kind: output, shape index: {}]  }
   0x1   :  { %v246_v0 = vld [vmem:[%s329_s1 + $0x38] sm:$0xff]   ;;  %v247_v1 = vld [vmem:[%s329_s1 + $0x30] sm:$0xff]   ;;  %v248_v2 = vld [vmem:[%s329_s1 + $0x28] sm:$0xff]  }
   0x2   :  { %226 = vmatprep.subr.bf16.mxu0 %v246_v0  ;;  %v249_v3 = vld [vmem:[%s329_s1 + $0x20] sm:$0xff]   ;;  %v250_v5 = vld [vmem:[%s329_s1 + $0x18] sm:$0xff]   ;;  %v251_v6 = vld [vmem:[%s329_s1 + $0x10] sm:$0xff]  }
   0x3   :  { %227 = vmatpush3.bf16.msra.mxu0 %v246_v0  ;;  %v254_v4 = vld [vmem:[%s330_s0] sm:$0xff]   ;;  %v252_v7 = vld [vmem:[%s329_s1 + $0x8] sm:$0xff]  }
   0x4   :  { %228 = vmatprep.subr.bf16.mxu0 %v247_v1  ;;  %242 = vmatprep.mubr.bf16.mxu0 %v254_v4  ;;  %v253_v8 = vld [vmem:[%s329_s1] sm:$0xff]   ;;  %v255_v9 = vld [vmem:[%s330_s0 + $0x8] sm:$0xff]  }
   0x5   :  { %v214_v10 = vld [vmem:[%s331_s2] ss:$0 sm:$0xff] }
   0x6   :  { %v215_v12 = vld [vmem:[%s332_s3] ss:$0 sm:$0xff] }
   0x7   :  { %229 = vmatpush3.bf16.msra.mxu0 %v247_v1 }
   0x8   :  { %230 = vmatprep.subr.bf16.mxu0 %v248_v2 }
   0xb   :  { %231 = vmatpush3.bf16.msra.mxu0 %v248_v2 }
   0xc   :  { %232 = vmatprep.subr.bf16.mxu0 %v249_v3 }
   0xf   :  { %233 = vmatpush3.bf16.msra.mxu0 %v249_v3 }
  0x10   :  { %234 = vmatprep.subr.bf16.mxu0 %v250_v5 }
  0x13   :  { %235 = vmatpush3.bf16.msra.mxu0 %v250_v5 }
  0x14   :  { %236 = vmatprep.subr.bf16.mxu0 %v251_v6 }
  0x17   :  { %237 = vmatpush3.bf16.msra.mxu0 %v251_v6 }
  0x18   :  { %238 = vmatprep.subr.bf16.mxu0 %v252_v7 }
  0x1b   :  { %239 = vmatpush3.bf16.msra.mxu0 %v252_v7 }
  0x1c   :  { %240 = vmatprep.subr.bf16.mxu0 %v253_v8 }
  0x1f   :  { %241 = vmatpush3.bf16.msra.mxu0 %v253_v8 }
  0x22   :  { %243 = vmatmul.mubr.bf16.vlgmr.msra.gmra.mxu0 %v255_v9 }
  0xe2   :  { %v244_v11 = vpop.f32.mrf.mxu0 }
  0xe3   :  { %v183_v13 = vmul.f32 %v244_v11, %v214_v10 }
  0xe4   :  { %v144_v14 = vpop.f32.mrf.mxu0 }
  0xe5   :  { %v194_v15 = vadd.f32 %v215_v12, %v183_v13  ;;  %v181_v16 = vmul.f32 %v214_v10, %v144_v14 }
  0xe6   :  { %v245_v17 = vpop.f32.mrf.mxu0 }
  0xe7   :  { %198 = vst [vmem:[%s333_s4 + $0x10] sm:$0xff] %v194_v15  ;;  %v192_v18 = vadd.f32 %v215_v12, %v181_v16  ;;  %v184_v19 = vmul.f32 %v245_v17, %v214_v10 }
  0xe8   :  { %v147_v20 = vpop.f32.mrf.mxu0 }
  0xe9   :  { %196 = vst [vmem:[%s333_s4] sm:$0xff] %v192_v18  ;;  %v195_v21 = vadd.f32 %v215_v12, %v184_v19  ;;  %v182_v22 = vmul.f32 %v214_v10, %v147_v20 }
  0xeb   :  { %199 = vst [vmem:[%s333_s4 + $0x18] sm:$0xff] %v195_v21  ;;  %v193_v23 = vadd.f32 %v215_v12, %v182_v22 }
  0xed   :  { %197 = vst [vmem:[%s333_s4 + $0x8] sm:$0xff] %v193_v23 }

// kernel: autodeeplab_forward.123
= control target key start
LH: loop header
LB: loop body
LE: loop exit
PB: predicated region body
PF: predicated region fallthrough
CT: control target
= control target key end

     0   :  { %v225_v0 = vmov 0.0   ;;  %vm226_vm0 = vmmov 0   ;;  %s291_s1 = inlined_call_operand.vmem [shape: bf16[128,128], index: 1, kind: input, shape index: {}]   ;;  %s292_s0 = inlined_call_operand.vmem [shape: bf16[16,128], index: 0, kind: input, shape index: {}]   ;;  %s293_s2 = inlined_call_operand.vmem [shape: f32[1,128], index: 2, kind: input, shape index: {}]   ;;  %s294_s3 = inlined_call_operand.vmem [shape: f32[1,128], index: 3, kind: input, shape index: {}]   ;;  %s295_s4 = inlined_call_operand.vmem [shape: f32[16,128], index: 4, kind: output, shape index: {}]  }
   0x1   :  { %194 = vmatprep.subr.bf16.mxu0 %v225_v0  ;;  %v216_v1 = vld [vmem:[%s291_s1 + $0x38] sm:$0xff]   ;;  %210 = vmatprep.mubr.msk.bf16.mxu0 %vm226_vm0, %v225_v0  ;;  %v217_v2 = vld [vmem:[%s291_s1 + $0x30] sm:$0xff]   ;;  %v218_v3 = vld [vmem:[%s291_s1 + $0x28] sm:$0xff]  }
   0x2   :  { %195 = vmatpush3.bf16.msra.mxu0 %v216_v1  ;;  %v219_v4 = vld [vmem:[%s291_s1 + $0x20] sm:$0xff]   ;;  %v220_v5 = vld [vmem:[%s291_s1 + $0x18] sm:$0xff]   ;;  %v221_v6 = vld [vmem:[%s291_s1 + $0x10] sm:$0xff]  }
   0x3   :  { %196 = vmatprep.subr.bf16.mxu0 %v225_v0  ;;  %v222_v7 = vld [vmem:[%s291_s1 + $0x8] sm:$0xff]   ;;  %v223_v8 = vld [vmem:[%s291_s1] sm:$0xff]  }
   0x4   :  { %v224_v9 = vld [vmem:[%s292_s0] sm:$0xff]  }
   0x5   :  { %v183_v10 = vld [vmem:[%s293_s2] ss:$0 sm:$0xff] }
   0x6   :  { %197 = vmatpush3.bf16.msra.mxu0 %v217_v2  ;;  %v184_v12 = vld [vmem:[%s294_s3] ss:$0 sm:$0xff] }
   0x7   :  { %198 = vmatprep.subr.bf16.mxu0 %v225_v0 }
   0xa   :  { %199 = vmatpush3.bf16.msra.mxu0 %v218_v3 }
   0xb   :  { %200 = vmatprep.subr.bf16.mxu0 %v225_v0 }
   0xe   :  { %201 = vmatpush3.bf16.msra.mxu0 %v219_v4 }
   0xf   :  { %202 = vmatprep.subr.bf16.mxu0 %v225_v0 }
  0x12   :  { %203 = vmatpush3.bf16.msra.mxu0 %v220_v5 }
  0x13   :  { %204 = vmatprep.subr.bf16.mxu0 %v225_v0 }
  0x16   :  { %205 = vmatpush3.bf16.msra.mxu0 %v221_v6 }
  0x17   :  { %206 = vmatprep.subr.bf16.mxu0 %v225_v0 }
  0x1a   :  { %207 = vmatpush3.bf16.msra.mxu0 %v222_v7 }
  0x1b   :  { %208 = vmatprep.subr.bf16.mxu0 %v225_v0 }
  0x1e   :  { %209 = vmatpush3.bf16.msra.mxu0 %v223_v8 }
  0x21   :  { %211 = vmatmul.mubr.bf16.vlgmr.msra.gmra.mxu0 %v224_v9 }
  0xe1   :  { %v132_v11 = vpop.f32.mrf.mxu0 }
  0xe2   :  { %v155_v13 = vmul.f32 %v183_v10, %v132_v11 }
  0xe3   :  { %v212_v14 = vpop.f32.mrf.mxu0 }
  0xe4   :  { %v164_v15 = vadd.f32 %v184_v12, %v155_v13 }
  0xe5   :  { %v135_v16 = vpop.f32.mrf.mxu0 }
  0xe6   :  { %v166_v17 = vmax.f32 %v164_v15, 0.0  ;;  %v156_v18 = vmul.f32 %v183_v10, %v135_v16 }
  0xe7   :  { %v213_v19 = vpop.f32.mrf.mxu0 }
  0xe8   :  { %168 = vst [vmem:[%s295_s4] sm:$0xff] %v166_v17  ;;  %v165_v20 = vadd.f32 %v184_v12, %v156_v18 }
  0xea   :  { %v167_v21 = vmax.f32 %v165_v20, 0.0 }
  0xec   :  { %169 = vst [vmem:[%s295_s4 + $0x8] sm:$0xff] %v167_v21 }

// kernel: autodeeplab_forward.124
= control target key start
LH: loop header
LB: loop body
LE: loop exit
PB: predicated region body
PF: predicated region fallthrough
CT: control target
= control target key end

     0   :  { %v223_v0 = vmov 0.0   ;;  %vm224_vm0 = vmmov 0   ;;  %s289_s1 = inlined_call_operand.vmem [shape: bf16[128,128], index: 1, kind: input, shape index: {}]   ;;  %s290_s0 = inlined_call_operand.vmem [shape: bf16[16,128], index: 0, kind: input, shape index: {}]   ;;  %s291_s2 = inlined_call_operand.vmem [shape: f32[1,128], index: 2, kind: input, shape index: {}]   ;;  %s292_s3 = inlined_call_operand.vmem [shape: f32[1,128], index: 3, kind: input, shape index: {}]   ;;  %s293_s4 = inlined_call_operand.vmem [shape: f32[16,128], index: 4, kind: output, shape index: {}]  }
   0x1   :  { %192 = vmatprep.subr.bf16.mxu0 %v223_v0  ;;  %v214_v1 = vld [vmem:[%s289_s1 + $0x38] sm:$0xff]   ;;  %208 = vmatprep.mubr.msk.bf16.mxu0 %vm224_vm0, %v223_v0  ;;  %v215_v2 = vld [vmem:[%s289_s1 + $0x30] sm:$0xff]   ;;  %v216_v3 = vld [vmem:[%s289_s1 + $0x28] sm:$0xff]  }
   0x2   :  { %193 = vmatpush3.bf16.msra.mxu0 %v214_v1  ;;  %v217_v4 = vld [vmem:[%s289_s1 + $0x20] sm:$0xff]   ;;  %v218_v5 = vld [vmem:[%s289_s1 + $0x18] sm:$0xff]   ;;  %v219_v6 = vld [vmem:[%s289_s1 + $0x10] sm:$0xff]  }
   0x3   :  { %194 = vmatprep.subr.bf16.mxu0 %v223_v0  ;;  %v220_v7 = vld [vmem:[%s289_s1 + $0x8] sm:$0xff]   ;;  %v221_v8 = vld [vmem:[%s289_s1] sm:$0xff]  }
   0x4   :  { %v222_v9 = vld [vmem:[%s290_s0] sm:$0xff]  }
   0x5   :  { %v181_v10 = vld [vmem:[%s291_s2] ss:$0 sm:$0xff] }
   0x6   :  { %195 = vmatpush3.bf16.msra.mxu0 %v215_v2  ;;  %v182_v12 = vld [vmem:[%s292_s3] ss:$0 sm:$0xff] }
   0x7   :  { %196 = vmatprep.subr.bf16.mxu0 %v223_v0 }
   0xa   :  { %197 = vmatpush3.bf16.msra.mxu0 %v216_v3 }
   0xb   :  { %198 = vmatprep.subr.bf16.mxu0 %v223_v0 }
   0xe   :  { %199 = vmatpush3.bf16.msra.mxu0 %v217_v4 }
   0xf   :  { %200 = vmatprep.subr.bf16.mxu0 %v223_v0 }
  0x12   :  { %201 = vmatpush3.bf16.msra.mxu0 %v218_v5 }
  0x13   :  { %202 = vmatprep.subr.bf16.mxu0 %v223_v0 }
  0x16   :  { %203 = vmatpush3.bf16.msra.mxu0 %v219_v6 }
  0x17   :  { %204 = vmatprep.subr.bf16.mxu0 %v223_v0 }
  0x1a   :  { %205 = vmatpush3.bf16.msra.mxu0 %v220_v7 }
  0x1b   :  { %206 = vmatprep.subr.bf16.mxu0 %v223_v0 }
  0x1e   :  { %207 = vmatpush3.bf16.msra.mxu0 %v221_v8 }
  0x21   :  { %209 = vmatmul.mubr.bf16.vlgmr.msra.gmra.mxu0 %v222_v9 }
  0xe1   :  { %v132_v11 = vpop.f32.mrf.mxu0 }
  0xe2   :  { %v155_v13 = vmul.f32 %v181_v10, %v132_v11 }
  0xe3   :  { %v210_v14 = vpop.f32.mrf.mxu0 }
  0xe4   :  { %v164_v15 = vadd.f32 %v182_v12, %v155_v13 }
  0xe5   :  { %v135_v16 = vpop.f32.mrf.mxu0 }
  0xe6   :  { %166 = vst [vmem:[%s293_s4] sm:$0xff] %v164_v15  ;;  %v156_v17 = vmul.f32 %v181_v10, %v135_v16 }
  0xe7   :  { %v211_v18 = vpop.f32.mrf.mxu0 }
  0xe8   :  { %v165_v19 = vadd.f32 %v182_v12, %v156_v17 }
  0xea   :  { %167 = vst [vmem:[%s293_s4 + $0x8] sm:$0xff] %v165_v19 }

// kernel: autodeeplab_forward.105
= control target key start
LH: loop header
LB: loop body
LE: loop exit
PB: predicated region body
PF: predicated region fallthrough
CT: control target
= control target key end

     0   :  { %s621_s1 = inlined_call_operand.vmem [shape: bf16[128,128], index: 1, kind: input, shape index: {}]   ;;  %s622_s0 = inlined_call_operand.vmem [shape: bf16[128,128], index: 0, kind: input, shape index: {}]   ;;  %s623_s2 = inlined_call_operand.vmem [shape: f32[1,128], index: 2, kind: input, shape index: {}]   ;;  %s624_s3 = inlined_call_operand.vmem [shape: f32[1,128], index: 3, kind: input, shape index: {}]   ;;  %s625_s4 = inlined_call_operand.vmem [shape: f32[128,128], index: 4, kind: output, shape index: {}]  }
   0x1   :  { %v478_v0 = vld [vmem:[%s621_s1 + $0x38] sm:$0xff]   ;;  %v479_v1 = vld [vmem:[%s621_s1 + $0x30] sm:$0xff]   ;;  %v480_v2 = vld [vmem:[%s621_s1 + $0x28] sm:$0xff]  }
   0x2   :  { %430 = vmatprep.subr.bf16.mxu0 %v478_v0  ;;  %462 = vmatprep.subr.bf16.mxu1 %v478_v0  ;;  %v481_v3 = vld [vmem:[%s621_s1 + $0x20] sm:$0xff]   ;;  %v482_v6 = vld [vmem:[%s621_s1 + $0x18] sm:$0xff]   ;;  %v483_v7 = vld [vmem:[%s621_s1 + $0x10] sm:$0xff]  }
   0x3   :  { %431 = vmatpush3.bf16.msra.mxu0 %v478_v0  ;;  %470 = vmatpush3.bf16.msra.mxu1 %v478_v0  ;;  %v486_v4 = vld [vmem:[%s622_s0] sm:$0xff]   ;;  %v484_v8 = vld [vmem:[%s621_s1 + $0x8] sm:$0xff]   ;;  %v490_v12 = vld [vmem:[%s622_s0 + $0x10] sm:$0xff]  }
   0x4   :  { %432 = vmatprep.subr.bf16.mxu0 %v479_v1  ;;  %463 = vmatprep.subr.bf16.mxu1 %v479_v1  ;;  %v487_v5 = vld [vmem:[%s622_s0 + $0x20] sm:$0xff]   ;;  %v488_v10 = vld [vmem:[%s622_s0 + $0x8] sm:$0xff]   ;;  %v491_v13 = vld [vmem:[%s622_s0 + $0x30] sm:$0xff]  }
   0x5   :  { %446 = vmatprep.mubr.bf16.mxu0 %v486_v4  ;;  %454 = vmatprep.mubr.bf16.mxu1 %v487_v5  ;;  %v485_v9 = vld [vmem:[%s621_s1] sm:$0xff]   ;;  %v489_v11 = vld [vmem:[%s622_s0 + $0x28] sm:$0xff]   ;;  %v492_v14 = vld [vmem:[%s622_s0 + $0x18] sm:$0xff]  }
   0x6   :  { %v493_v15 = vld [vmem:[%s622_s0 + $0x38] sm:$0xff]   ;;  %v412_v16 = vld [vmem:[%s623_s2] ss:$0 sm:$0xff] }
   0x7   :  { %433 = vmatpush3.bf16.msra.mxu0 %v479_v1  ;;  %471 = vmatpush3.bf16.msra.mxu1 %v479_v1  ;;  %v413_v18 = vld [vmem:[%s624_s3] ss:$0 sm:$0xff] }
   0x8   :  { %434 = vmatprep.subr.bf16.mxu0 %v480_v2  ;;  %464 = vmatprep.subr.bf16.mxu1 %v480_v2 }
   0xb   :  { %435 = vmatpush3.bf16.msra.mxu0 %v480_v2  ;;  %472 = vmatpush3.bf16.msra.mxu1 %v480_v2 }
   0xc   :  { %436 = vmatprep.subr.bf16.mxu0 %v481_v3  ;;  %465 = vmatprep.subr.bf16.mxu1 %v481_v3 }
   0xf   :  { %437 = vmatpush3.bf16.msra.mxu0 %v481_v3  ;;  %473 = vmatpush3.bf16.msra.mxu1 %v481_v3 }
  0x10   :  { %438 = vmatprep.subr.bf16.mxu0 %v482_v6  ;;  %466 = vmatprep.subr.bf16.mxu1 %v482_v6 }
  0x13   :  { %439 = vmatpush3.bf16.msra.mxu0 %v482_v6  ;;  %474 = vmatpush3.bf16.msra.mxu1 %v482_v6 }
  0x14   :  { %440 = vmatprep.subr.bf16.mxu0 %v483_v7  ;;  %467 = vmatprep.subr.bf16.mxu1 %v483_v7 }
  0x17   :  { %441 = vmatpush3.bf16.msra.mxu0 %v483_v7  ;;  %475 = vmatpush3.bf16.msra.mxu1 %v483_v7 }
  0x18   :  { %442 = vmatprep.subr.bf16.mxu0 %v484_v8  ;;  %468 = vmatprep.subr.bf16.mxu1 %v484_v8 }
  0x1b   :  { %443 = vmatpush3.bf16.msra.mxu0 %v484_v8  ;;  %476 = vmatpush3.bf16.msra.mxu1 %v484_v8 }
  0x1c   :  { %444 = vmatprep.subr.bf16.mxu0 %v485_v9  ;;  %469 = vmatprep.subr.bf16.mxu1 %v485_v9 }
  0x1f   :  { %445 = vmatpush3.bf16.msra.mxu0 %v485_v9  ;;  %477 = vmatpush3.bf16.msra.mxu1 %v485_v9 }
  0x22   :  { %447 = vmatmul.mubr.bf16.vlgmr.msra.gmra.mxu0 %v488_v10  ;;  %455 = vmatmul.mubr.bf16.vlgmr.msra.gmra.mxu1 %v489_v11 }
  0x23   :  { %450 = vmatprep.mubr.bf16.mxu0 %v490_v12  ;;  %458 = vmatprep.mubr.bf16.mxu1 %v491_v13 }
  0x2a   :  { %451 = vmatmul.mubr.bf16.gmra.mxu0 %v492_v14  ;;  %459 = vmatmul.mubr.bf16.gmra.mxu1 %v493_v15 }
  0xe2   :  { %v448_v17 = vpop.f32.mrf.mxu0  ;;  %v456_v19 = vpop.f32.mrf.mxu1 }
  0xe3   :  { %v339_v20 = vmul.f32 %v448_v17, %v412_v16  ;;  %v347_v21 = vmul.f32 %v456_v19, %v412_v16 }
  0xe4   :  { %v216_v22 = vpop.f32.mrf.mxu0  ;;  %v248_v23 = vpop.f32.mrf.mxu1 }
  0xe5   :  { %v362_v24 = vadd.f32 %v413_v18, %v339_v20  ;;  %v370_v25 = vadd.f32 %v413_v18, %v347_v21  ;;  %v337_v26 = vmul.f32 %v412_v16, %v216_v22  ;;  %v345_v27 = vmul.f32 %v412_v16, %v248_v23 }
  0xe6   :  { %v449_v28 = vpop.f32.mrf.mxu0  ;;  %v457_v29 = vpop.f32.mrf.mxu1 }
  0xe7   :  { %378 = vst [vmem:[%s625_s4 + $0x10] sm:$0xff] %v362_v24  ;;  %386 = vst [vmem:[%s625_s4 + $0x50] sm:$0xff] %v370_v25  ;;  %v360_v30 = vadd.f32 %v413_v18, %v337_v26  ;;  %v368_v31 = vadd.f32 %v413_v18, %v345_v27  ;;  %v340_v32 = vmul.f32 %v449_v28, %v412_v16 }
  0xe8   :  { %v348_v33 = vmul.f32 %v457_v29, %v412_v16  ;;  %v219_v34 = vpop.f32.mrf.mxu0  ;;  %v251_v35 = vpop.f32.mrf.mxu1 }
  0xe9   :  { %376 = vst [vmem:[%s625_s4] sm:$0xff] %v360_v30  ;;  %384 = vst [vmem:[%s625_s4 + $0x40] sm:$0xff] %v368_v31  ;;  %v363_v36 = vadd.f32 %v413_v18, %v340_v32  ;;  %v338_v38 = vmul.f32 %v412_v16, %v219_v34  ;;  %v346_v39 = vmul.f32 %v412_v16, %v251_v35 }
  0xea   :  { %v371_v37 = vadd.f32 %v413_v18, %v348_v33  ;;  %v452_v40 = vpop.f32.mrf.mxu0  ;;  %v460_v41 = vpop.f32.mrf.mxu1 }
  0xeb   :  { %379 = vst [vmem:[%s625_s4 + $0x18] sm:$0xff] %v363_v36  ;;  %v361_v42 = vadd.f32 %v413_v18, %v338_v38  ;;  %v369_v43 = vadd.f32 %v413_v18, %v346_v39  ;;  %v343_v44 = vmul.f32 %v452_v40, %v412_v16  ;;  %v351_v45 = vmul.f32 %v460_v41, %v412_v16 }
  0xec   :  { %387 = vst [vmem:[%s625_s4 + $0x58] sm:$0xff] %v371_v37  ;;  %v232_v46 = vpop.f32.mrf.mxu0  ;;  %v264_v47 = vpop.f32.mrf.mxu1 }
  0xed   :  { %377 = vst [vmem:[%s625_s4 + $0x8] sm:$0xff] %v361_v42  ;;  %385 = vst [vmem:[%s625_s4 + $0x48] sm:$0xff] %v369_v43  ;;  %v366_v48 = vadd.f32 %v413_v18, %v343_v44  ;;  %v374_v49 = vadd.f32 %v413_v18, %v351_v45  ;;  %v341_v50 = vmul.f32 %v412_v16, %v232_v46 }
  0xee   :  { %v349_v51 = vmul.f32 %v412_v16, %v264_v47  ;;  %v453_v52 = vpop.f32.mrf.mxu0  ;;  %v461_v53 = vpop.f32.mrf.mxu1 }
  0xef   :  { %382 = vst [vmem:[%s625_s4 + $0x30] sm:$0xff] %v366_v48  ;;  %390 = vst [vmem:[%s625_s4 + $0x70] sm:$0xff] %v374_v49  ;;  %v364_v54 = vadd.f32 %v413_v18, %v341_v50  ;;  %v344_v56 = vmul.f32 %v453_v52, %v412_v16  ;;  %v352_v57 = vmul.f32 %v461_v53, %v412_v16 }
  0xf0   :  { %v372_v55 = vadd.f32 %v413_v18, %v349_v51  ;;  %v235_v58 = vpop.f32.mrf.mxu0  ;;  %v267_v59 = vpop.f32.mrf.mxu1 }
  0xf1   :  { %380 = vst [vmem:[%s625_s4 + $0x20] sm:$0xff] %v364_v54  ;;  %v367_v60 = vadd.f32 %v413_v18, %v344_v56  ;;  %v375_v61 = vadd.f32 %v413_v18, %v352_v57  ;;  %v342_v62 = vmul.f32 %v412_v16, %v235_v58  ;;  %v350_v63 = vmul.f32 %v412_v16, %v267_v59 }
  0xf2   :  { %388 = vst [vmem:[%s625_s4 + $0x60] sm:$0xff] %v372_v55 }
  0xf3   :  { %383 = vst [vmem:[%s625_s4 + $0x38] sm:$0xff] %v367_v60  ;;  %391 = vst [vmem:[%s625_s4 + $0x78] sm:$0xff] %v375_v61  ;;  %v365_v0 = vadd.f32 %v413_v18, %v342_v62  ;;  %v373_v1 = vadd.f32 %v413_v18, %v350_v63 }
  0xf5   :  { %381 = vst [vmem:[%s625_s4 + $0x28] sm:$0xff] %v365_v0  ;;  %389 = vst [vmem:[%s625_s4 + $0x68] sm:$0xff] %v373_v1 }

// kernel: autodeeplab_forward.190
= control target key start
LH: loop header
LB: loop body
LE: loop exit
PB: predicated region body
PF: predicated region fallthrough
CT: control target
= control target key end

     0   :  { %s471_s1 = inlined_call_operand.vmem [shape: bf16[256,128], index: 1, kind: input, shape index: {}]   ;;  %s472_s0 = inlined_call_operand.vmem [shape: bf16[32,256], index: 0, kind: input, shape index: {}]   ;;  %s473_s2 = inlined_call_operand.vmem [shape: f32[1,128], index: 2, kind: input, shape index: {}]   ;;  %s474_s3 = inlined_call_operand.vmem [shape: f32[1,128], index: 3, kind: input, shape index: {}]   ;;  %s475_s4 = inlined_call_operand.vmem [shape: f32[32,128], index: 4, kind: output, shape index: {}]  }
   0x1   :  { %v346_v0 = vld [vmem:[%s471_s1 + $0x78] sm:$0xff]   ;;  %v348_v2 = vld [vmem:[%s471_s1 + $0x70] sm:$0xff]   ;;  %v350_v4 = vld [vmem:[%s471_s1 + $0x68] sm:$0xff]  }
   0x2   :  { %v347_v1 = vld [vmem:[%s471_s1 + $0x38] sm:$0xff]   ;;  %302 = vmatprep.subr.bf16.mxu0 %v346_v0  ;;  %330 = vmatprep.subr.bf16.mxu1 %v346_v0  ;;  %v349_v3 = vld [vmem:[%s471_s1 + $0x30] sm:$0xff]   ;;  %v351_v5 = vld [vmem:[%s471_s1 + $0x28] sm:$0xff]  }
   0x3   :  { %303 = vmatpush3.bf16.msra.mxu0 %v347_v1  ;;  %338 = vmatpush3.bf16.msra.mxu1 %v347_v1  ;;  %v352_v6 = vld [vmem:[%s471_s1 + $0x60] sm:$0xff]   ;;  %v354_v8 = vld [vmem:[%s471_s1 + $0x58] sm:$0xff]   ;;  %v356_v10 = vld [vmem:[%s471_s1 + $0x50] sm:$0xff]  }
   0x4   :  { %304 = vmatprep.subr.bf16.mxu0 %v348_v2  ;;  %331 = vmatprep.subr.bf16.mxu1 %v348_v2  ;;  %v353_v7 = vld [vmem:[%s471_s1 + $0x20] sm:$0xff]   ;;  %v355_v9 = vld [vmem:[%s471_s1 + $0x18] sm:$0xff]   ;;  %v357_v13 = vld [vmem:[%s471_s1 + $0x10] sm:$0xff]  }
   0x5   :  { %v364_v11 = vld [vmem:[%s472_s0 + $0x4] ss:$8 sps:$4 sm:$0xff]   ;;  %v367_v12 = vld [vmem:[%s472_s0 + $0x14] ss:$8 sps:$4 sm:$0xff]   ;;  %v362_v18 = vld [vmem:[%s472_s0] ss:$8 sps:$4 sm:$0xff]  }
   0x6   :  { %v358_v14 = vld [vmem:[%s471_s1 + $0x48] sm:$0xff]   ;;  %214 = vmatprep.mubr.bf16.mxu0 %v364_v11  ;;  %222 = vmatprep.mubr.bf16.mxu1 %v367_v12  ;;  %v360_v16 = vld [vmem:[%s471_s1 + $0x40] sm:$0xff]   ;;  %v365_v19 = vld [vmem:[%s472_s0 + $0x10] ss:$8 sps:$4 sm:$0xff]  }
   0x7   :  { %305 = vmatpush3.bf16.msra.mxu0 %v349_v3  ;;  %339 = vmatpush3.bf16.msra.mxu1 %v349_v3  ;;  %v359_v15 = vld [vmem:[%s471_s1 + $0x8] sm:$0xff]   ;;  %v361_v17 = vld [vmem:[%s471_s1] sm:$0xff]  }
   0x8   :  { %306 = vmatprep.subr.bf16.mxu0 %v350_v4  ;;  %332 = vmatprep.subr.bf16.mxu1 %v350_v4  ;;  %v300_v23 = vld [vmem:[%s473_s2] ss:$0 sm:$0xff] }
   0x9   :  { %v301_v27 = vld [vmem:[%s474_s3] ss:$0 sm:$0xff] }
   0xb   :  { %307 = vmatpush3.bf16.msra.mxu0 %v351_v5  ;;  %340 = vmatpush3.bf16.msra.mxu1 %v351_v5 }
   0xc   :  { %308 = vmatprep.subr.bf16.mxu0 %v352_v6  ;;  %333 = vmatprep.subr.bf16.mxu1 %v352_v6 }
   0xf   :  { %309 = vmatpush3.bf16.msra.mxu0 %v353_v7  ;;  %341 = vmatpush3.bf16.msra.mxu1 %v353_v7 }
  0x10   :  { %310 = vmatprep.subr.bf16.mxu0 %v354_v8  ;;  %334 = vmatprep.subr.bf16.mxu1 %v354_v8 }
  0x13   :  { %311 = vmatpush3.bf16.msra.mxu0 %v355_v9  ;;  %342 = vmatpush3.bf16.msra.mxu1 %v355_v9 }
  0x14   :  { %312 = vmatprep.subr.bf16.mxu0 %v356_v10  ;;  %335 = vmatprep.subr.bf16.mxu1 %v356_v10 }
  0x17   :  { %313 = vmatpush3.bf16.msra.mxu0 %v357_v13  ;;  %343 = vmatpush3.bf16.msra.mxu1 %v357_v13 }
  0x18   :  { %314 = vmatprep.subr.bf16.mxu0 %v358_v14  ;;  %336 = vmatprep.subr.bf16.mxu1 %v358_v14 }
  0x1b   :  { %315 = vmatpush3.bf16.msra.mxu0 %v359_v15  ;;  %344 = vmatpush3.bf16.msra.mxu1 %v359_v15 }
  0x1c   :  { %316 = vmatprep.subr.bf16.mxu0 %v360_v16  ;;  %337 = vmatprep.subr.bf16.mxu1 %v360_v16 }
  0x1f   :  { %317 = vmatpush3.bf16.msra.mxu0 %v361_v17  ;;  %345 = vmatpush3.bf16.msra.mxu1 %v361_v17 }
  0x22   :  { %215 = vmatmul.mubr.bf16.vlgmr.msra.gmra.mxu0 %v362_v18  ;;  %223 = vmatmul.mubr.bf16.vlgmr.msra.gmra.mxu1 %v365_v19 }
  0xe2   :  { %v318_v20 = vpop.f32.mrf.mxu0  ;;  %v324_v21 = vpop.f32.mrf.mxu1 }
  0xe4   :  { %v319_v22 = vpop.f32.mrf.mxu0  ;;  %v325_v24 = vpop.f32.mrf.mxu1 }
  0xe5   :  { %v320_v25 = vadd.f32 %v319_v22, %v318_v20  ;;  %v326_v26 = vadd.f32 %v325_v24, %v324_v21 }
  0xe6   :  { %v321_v28 = vpop.f32.mrf.mxu0  ;;  %v327_v29 = vpop.f32.mrf.mxu1 }
  0xe7   :  { %v253_v30 = vmul.f32 %v320_v25, %v300_v23  ;;  %v255_v31 = vmul.f32 %v326_v26, %v300_v23 }
  0xe8   :  { %v322_v32 = vpop.f32.mrf.mxu0  ;;  %v328_v33 = vpop.f32.mrf.mxu1 }
  0xe9   :  { %v264_v34 = vadd.f32 %v301_v27, %v253_v30  ;;  %v266_v35 = vadd.f32 %v301_v27, %v255_v31  ;;  %v323_v36 = vadd.f32 %v322_v32, %v321_v28  ;;  %v329_v37 = vadd.f32 %v328_v33, %v327_v29 }
  0xeb   :  { %v268_v38 = vmax.f32 %v264_v34, 0.0  ;;  %v270_v39 = vmax.f32 %v266_v35, 0.0  ;;  %v254_v40 = vmul.f32 %v323_v36, %v300_v23  ;;  %v256_v41 = vmul.f32 %v329_v37, %v300_v23 }
  0xed   :  { %272 = vst [vmem:[%s475_s4] sm:$0xff] %v268_v38  ;;  %274 = vst [vmem:[%s475_s4 + $0x10] sm:$0xff] %v270_v39  ;;  %v265_v42 = vadd.f32 %v301_v27, %v254_v40  ;;  %v267_v43 = vadd.f32 %v301_v27, %v256_v41 }
  0xef   :  { %v269_v44 = vmax.f32 %v265_v42, 0.0  ;;  %v271_v45 = vmax.f32 %v267_v43, 0.0 }
  0xf1   :  { %273 = vst [vmem:[%s475_s4 + $0x8] sm:$0xff] %v269_v44  ;;  %275 = vst [vmem:[%s475_s4 + $0x18] sm:$0xff] %v271_v45 }

// kernel: autodeeplab_forward.194
= control target key start
LH: loop header
LB: loop body
LE: loop exit
PB: predicated region body
PF: predicated region fallthrough
CT: control target
= control target key end

     0   :  { %v465_v0 = vmov 0.0   ;;  %vm466_vm0 = vmmov 0   ;;  %s585_s1 = inlined_call_operand.vmem [shape: bf16[384,128], index: 1, kind: input, shape index: {}]   ;;  %s586_s0 = inlined_call_operand.vmem [shape: bf16[16,384], index: 0, kind: input, shape index: {}]   ;;  %s587_s2 = inlined_call_operand.vmem [shape: f32[1,128], index: 2, kind: input, shape index: {}]   ;;  %s588_s3 = inlined_call_operand.vmem [shape: f32[1,128], index: 3, kind: input, shape index: {}]   ;;  %s589_s4 = inlined_call_operand.vmem [shape: f32[16,128], index: 4, kind: output, shape index: {}]  }
   0x1   :  { %415 = vmatprep.subr.bf16.mxu1 %v465_v0  ;;  %v437_v1 = vld [vmem:[%s585_s1 + $0x78] sm:$0xff]   ;;  %431 = vmatprep.mubr.msk.bf16.mxu1 %vm466_vm0, %v465_v0  ;;  %v440_v4 = vld [vmem:[%s585_s1 + $0x70] sm:$0xff]   ;;  %v443_v7 = vld [vmem:[%s585_s1 + $0x68] sm:$0xff]  }
   0x2   :  { %v438_v2 = vld [vmem:[%s585_s1 + $0xb8] sm:$0xff]   ;;  %384 = vmatprep.subr.bf16.mxu0 %v437_v1  ;;  %v441_v5 = vld [vmem:[%s585_s1 + $0xb0] sm:$0xff]   ;;  %v444_v8 = vld [vmem:[%s585_s1 + $0xa8] sm:$0xff]  }
   0x3   :  { %v439_v3 = vld [vmem:[%s585_s1 + $0x38] sm:$0xff]   ;;  %416 = vmatpush3.bf16.msra.mxu1 %v438_v2  ;;  %v442_v6 = vld [vmem:[%s585_s1 + $0x30] sm:$0xff]   ;;  %v445_v9 = vld [vmem:[%s585_s1 + $0x28] sm:$0xff]  }
   0x4   :  { %385 = vmatpush3.bf16.msra.mxu0 %v439_v3  ;;  %417 = vmatprep.subr.bf16.mxu1 %v465_v0  ;;  %v446_v10 = vld [vmem:[%s585_s1 + $0x60] sm:$0xff]   ;;  %v449_v13 = vld [vmem:[%s585_s1 + $0x58] sm:$0xff]   ;;  %v452_v16 = vld [vmem:[%s585_s1 + $0x50] sm:$0xff]  }
   0x5   :  { %386 = vmatprep.subr.bf16.mxu0 %v440_v4  ;;  %v447_v11 = vld [vmem:[%s585_s1 + $0xa0] sm:$0xff]   ;;  %v450_v14 = vld [vmem:[%s585_s1 + $0x98] sm:$0xff]   ;;  %v453_v17 = vld [vmem:[%s585_s1 + $0x90] sm:$0xff]  }
   0x6   :  { %v448_v12 = vld [vmem:[%s585_s1 + $0x20] sm:$0xff]   ;;  %v451_v15 = vld [vmem:[%s585_s1 + $0x18] sm:$0xff]   ;;  %v454_v18 = vld [vmem:[%s585_s1 + $0x10] sm:$0xff]  }
   0x7   :  { %418 = vmatpush3.bf16.msra.mxu1 %v441_v5  ;;  %v455_v19 = vld [vmem:[%s585_s1 + $0x48] sm:$0xff]   ;;  %v458_v22 = vld [vmem:[%s585_s1 + $0x40] sm:$0xff]  }
   0x8   :  { %387 = vmatpush3.bf16.msra.mxu0 %v442_v6  ;;  %419 = vmatprep.subr.bf16.mxu1 %v465_v0  ;;  %v456_v20 = vld [vmem:[%s585_s1 + $0x88] sm:$0xff]   ;;  %v463_v23 = vld [vmem:[%s586_s0 + $0x4] ss:$12 sps:$4 sm:$0xff]   ;;  %v382_v34 = vld [vmem:[%s587_s2] ss:$0 sm:$0xff] }
   0x9   :  { %388 = vmatprep.subr.bf16.mxu0 %v443_v7  ;;  %v457_v21 = vld [vmem:[%s585_s1 + $0x8] sm:$0xff]   ;;  %v459_v24 = vld [vmem:[%s585_s1 + $0x80] sm:$0xff]   ;;  %270 = vmatprep.mubr.bf16.mxu0 %v463_v23 }
   0xa   :  { %v460_v25 = vld [vmem:[%s585_s1] sm:$0xff]   ;;  %v464_v26 = vld [vmem:[%s586_s0 + $0x8] ss:$12 sps:$4 sm:$0xff]  }
   0xb   :  { %420 = vmatpush3.bf16.msra.mxu1 %v444_v8  ;;  %v461_v27 = vld [vmem:[%s586_s0] ss:$12 sps:$4 sm:$0xff]  }
   0xc   :  { %389 = vmatpush3.bf16.msra.mxu0 %v445_v9  ;;  %421 = vmatprep.subr.bf16.mxu1 %v465_v0  ;;  %v383_v38 = vld [vmem:[%s588_s3] ss:$0 sm:$0xff] }
   0xd   :  { %390 = vmatprep.subr.bf16.mxu0 %v446_v10 }
   0xf   :  { %422 = vmatpush3.bf16.msra.mxu1 %v447_v11 }
  0x10   :  { %391 = vmatpush3.bf16.msra.mxu0 %v448_v12  ;;  %423 = vmatprep.subr.bf16.mxu1 %v465_v0 }
  0x11   :  { %392 = vmatprep.subr.bf16.mxu0 %v449_v13 }
  0x13   :  { %424 = vmatpush3.bf16.msra.mxu1 %v450_v14 }
  0x14   :  { %393 = vmatpush3.bf16.msra.mxu0 %v451_v15  ;;  %425 = vmatprep.subr.bf16.mxu1 %v465_v0 }
  0x15   :  { %394 = vmatprep.subr.bf16.mxu0 %v452_v16 }
  0x17   :  { %426 = vmatpush3.bf16.msra.mxu1 %v453_v17 }
  0x18   :  { %395 = vmatpush3.bf16.msra.mxu0 %v454_v18  ;;  %427 = vmatprep.subr.bf16.mxu1 %v465_v0 }
  0x19   :  { %396 = vmatprep.subr.bf16.mxu0 %v455_v19 }
  0x1b   :  { %428 = vmatpush3.bf16.msra.mxu1 %v456_v20 }
  0x1c   :  { %397 = vmatpush3.bf16.msra.mxu0 %v457_v21  ;;  %429 = vmatprep.subr.bf16.mxu1 %v465_v0 }
  0x1d   :  { %398 = vmatprep.subr.bf16.mxu0 %v458_v22 }
  0x1f   :  { %430 = vmatpush3.bf16.msra.mxu1 %v459_v24 }
  0x20   :  { %399 = vmatpush3.bf16.msra.mxu0 %v460_v25 }
  0x22   :  { %432 = vmatmul.mubr.bf16.vlgmr.msra.gmra.mxu1 %v464_v26 }
  0x23   :  { %271 = vmatmul.mubr.bf16.vlgmr.msra.gmra.mxu0 %v461_v27 }
  0xe2   :  { %v313_v28 = vpop.f32.mrf.mxu1 }
  0xe3   :  { %v400_v29 = vpop.f32.mrf.mxu0 }
  0xe4   :  { %v433_v30 = vpop.f32.mrf.mxu1 }
  0xe5   :  { %v401_v31 = vpop.f32.mrf.mxu0 }
  0xe6   :  { %v402_v32 = vadd.f32 %v401_v31, %v400_v29  ;;  %v316_v33 = vpop.f32.mrf.mxu1 }
  0xe7   :  { %v403_v35 = vpop.f32.mrf.mxu0 }
  0xe8   :  { %v314_v36 = vadd.f32 %v402_v32, %v313_v28  ;;  %v434_v37 = vpop.f32.mrf.mxu1 }
  0xe9   :  { %v404_v39 = vpop.f32.mrf.mxu0 }
  0xea   :  { %v336_v40 = vmul.f32 %v382_v34, %v314_v36  ;;  %v405_v41 = vadd.f32 %v404_v39, %v403_v35 }
  0xec   :  { %v345_v42 = vadd.f32 %v383_v38, %v336_v40  ;;  %v317_v43 = vadd.f32 %v405_v41, %v316_v33 }
  0xee   :  { %v347_v44 = vmax.f32 %v345_v42, 0.0  ;;  %v337_v45 = vmul.f32 %v382_v34, %v317_v43 }
  0xf0   :  { %349 = vst [vmem:[%s589_s4] sm:$0xff] %v347_v44  ;;  %v346_v46 = vadd.f32 %v383_v38, %v337_v45 }
  0xf2   :  { %v348_v47 = vmax.f32 %v346_v46, 0.0 }
  0xf4   :  { %350 = vst [vmem:[%s589_s4 + $0x8] sm:$0xff] %v348_v47 }

// kernel: autodeeplab_forward.201
= control target key start
LH: loop header
LB: loop body
LE: loop exit
PB: predicated region body
PF: predicated region fallthrough
CT: control target
= control target key end

     0   :  { %s230_s0 = inlined_call_operand.vmem [shape: f32[16,512], index: 0, kind: input, shape index: {}]   ;;  %s231_s1 = inlined_call_operand.vmem [shape: f32[16,512], index: 1, kind: input, shape index: {}]   ;;  %s232_s2 = inlined_call_operand.vmem [shape: f32[16,512], index: 2, kind: input, shape index: {}]   ;;  %s233_s3 = inlined_call_operand.vmem [shape: f32[16,512], index: 3, kind: input, shape index: {}]   ;;  %s234_s4 = inlined_call_operand.vmem [shape: f32[16,512], index: 4, kind: output, shape index: {}]  }
   0x1   :  { %v17_v0 = vld [vmem:[%s230_s0] sm:$0xff]  ;;  %v18_v4 = vld [vmem:[%s230_s0 + $0x8] sm:$0xff]  ;;  %v19_v9 = vld [vmem:[%s230_s0 + $0x10] sm:$0xff] }
   0x2   :  { %v25_v1 = vld [vmem:[%s231_s1] sm:$0xff]  ;;  %v26_v5 = vld [vmem:[%s231_s1 + $0x8] sm:$0xff]  ;;  %v27_v12 = vld [vmem:[%s231_s1 + $0x10] sm:$0xff] }
   0x3   :  { %v41_v2 = vld [vmem:[%s232_s2] sm:$0xff]  ;;  %v33_v3 = vadd.f32 %v25_v1, %v17_v0  ;;  %v34_v7 = vadd.f32 %v26_v5, %v18_v4  ;;  %v42_v8 = vld [vmem:[%s232_s2 + $0x8] sm:$0xff]  ;;  %v43_v13 = vld [vmem:[%s232_s2 + $0x10] sm:$0xff]  ;;  %v35_v15 = vadd.f32 %v27_v12, %v19_v9 }
   0x4   :  { %v57_v6 = vld [vmem:[%s233_s3] sm:$0xff]  ;;  %v58_v11 = vld [vmem:[%s233_s3 + $0x8] sm:$0xff]  ;;  %v20_v16 = vld [vmem:[%s230_s0 + $0x18] sm:$0xff] }
   0x5   :  { %v49_v10 = vadd.f32 %v41_v2, %v33_v3  ;;  %v50_v14 = vadd.f32 %v42_v8, %v34_v7  ;;  %v28_v17 = vld [vmem:[%s231_s1 + $0x18] sm:$0xff]  ;;  %v59_v20 = vld [vmem:[%s233_s3 + $0x10] sm:$0xff]  ;;  %v21_v22 = vld [vmem:[%s230_s0 + $0x20] sm:$0xff]  ;;  %v51_v25 = vadd.f32 %v43_v13, %v35_v15 }
   0x6   :  { %v44_v18 = vld [vmem:[%s232_s2 + $0x18] sm:$0xff]  ;;  %v36_v21 = vadd.f32 %v28_v17, %v20_v16  ;;  %v29_v23 = vld [vmem:[%s231_s1 + $0x20] sm:$0xff]  ;;  %v22_v29 = vld [vmem:[%s230_s0 + $0x28] sm:$0xff] }
   0x7   :  { %v65_v19 = vadd.f32 %v57_v6, %v49_v10  ;;  %v66_v24 = vadd.f32 %v58_v11, %v50_v14  ;;  %v60_v26 = vld [vmem:[%s233_s3 + $0x18] sm:$0xff]  ;;  %v37_v27 = vadd.f32 %v29_v23, %v21_v22  ;;  %v45_v28 = vld [vmem:[%s232_s2 + $0x20] sm:$0xff]  ;;  %v30_v32 = vld [vmem:[%s231_s1 + $0x28] sm:$0xff]  ;;  %v67_v34 = vadd.f32 %v59_v20, %v51_v25 }
   0x8   :  { %v52_v30 = vadd.f32 %v44_v18, %v36_v21  ;;  %v61_v31 = vld [vmem:[%s233_s3 + $0x20] sm:$0xff]  ;;  %v46_v33 = vld [vmem:[%s232_s2 + $0x28] sm:$0xff]  ;;  %v38_v36 = vadd.f32 %v30_v32, %v22_v29  ;;  %v23_v37 = vld [vmem:[%s230_s0 + $0x30] sm:$0xff] }
   0x9   :  { %73 = vst [vmem:[%s234_s4] sm:$0xff] %v65_v19  ;;  %74 = vst [vmem:[%s234_s4 + $0x8] sm:$0xff] %v66_v24  ;;  %v53_v35 = vadd.f32 %v45_v28, %v37_v27  ;;  %v31_v38 = vld [vmem:[%s231_s1 + $0x30] sm:$0xff]  ;;  %v62_v41 = vld [vmem:[%s233_s3 + $0x28] sm:$0xff] }
   0xa   :  { %v47_v39 = vld [vmem:[%s232_s2 + $0x30] sm:$0xff]  ;;  %v68_v40 = vadd.f32 %v60_v26, %v52_v30  ;;  %v39_v42 = vadd.f32 %v31_v38, %v23_v37  ;;  %v24_v43 = vld [vmem:[%s230_s0 + $0x38] sm:$0xff]  ;;  %75 = vst [vmem:[%s234_s4 + $0x10] sm:$0xff] %v67_v34  ;;  %v54_v46 = vadd.f32 %v46_v33, %v38_v36 }
   0xb   :  { %v32_v44 = vld [vmem:[%s231_s1 + $0x38] sm:$0xff]  ;;  %v69_v45 = vadd.f32 %v61_v31, %v53_v35  ;;  %v63_v47 = vld [vmem:[%s233_s3 + $0x30] sm:$0xff] }
   0xc   :  { %v40_v48 = vadd.f32 %v32_v44, %v24_v43  ;;  %v48_v49 = vld [vmem:[%s232_s2 + $0x38] sm:$0xff]  ;;  %76 = vst [vmem:[%s234_s4 + $0x18] sm:$0xff] %v68_v40  ;;  %v55_v50 = vadd.f32 %v47_v39, %v39_v42  ;;  %v70_v52 = vadd.f32 %v62_v41, %v54_v46 }
   0xd   :  { %v64_v51 = vld [vmem:[%s233_s3 + $0x38] sm:$0xff]  ;;  %77 = vst [vmem:[%s234_s4 + $0x20] sm:$0xff] %v69_v45 }
   0xe   :  { %v56_v53 = vadd.f32 %v48_v49, %v40_v48  ;;  %v71_v54 = vadd.f32 %v63_v47, %v55_v50  ;;  %78 = vst [vmem:[%s234_s4 + $0x28] sm:$0xff] %v70_v52 }
  0x10   :  { %v72_v55 = vadd.f32 %v64_v51, %v56_v53  ;;  %79 = vst [vmem:[%s234_s4 + $0x30] sm:$0xff] %v71_v54 }
  0x12   :  { %80 = vst [vmem:[%s234_s4 + $0x38] sm:$0xff] %v72_v55 }

// kernel: autodeeplab_forward.198
= control target key start
LH: loop header
LB: loop body
LE: loop exit
PB: predicated region body
PF: predicated region fallthrough
CT: control target
= control target key end

     0   :  { %s1092_s15 = smov 0   ;;  %s1094_s16 = smov 0   ;;  %s1211_s0 = inlined_call_operand.vmem [shape: bf16[16,1024], index: 0, kind: input, shape index: {}]   ;;  %s1212_s1 = inlined_call_operand.vmem [shape: bf16[1024,128], index: 1, kind: input, shape index: {}]   ;;  %s1213_s2 = inlined_call_operand.vmem [shape: f32[1,128], index: 2, kind: input, shape index: {}]   ;;  %s1214_s3 = inlined_call_operand.vmem [shape: f32[1,128], index: 3, kind: input, shape index: {}]   ;;  %s1215_s4 = inlined_call_operand.vmem [shape: f32[16,128], index: 4, kind: output, shape index: {}]  }
   0x1   :  { %s1096_s17 = smov 0   ;;  %s1098_s18 = smov 0  }
   0x2   :  { %s1100_s19 = smov 0  }
   0x3 LB: > { %s26_s20 = sadd.s32 1, %s1060_s18  ;;  %p49_p1 = scmp.ne.s32.totalorder %s1052_s16, %s1048_s15  ;;  %s1064_s19 = sphi %s1100_s19, %s14_s19   ;;  %s1060_s18 = sphi %s1098_s18, %s1219_s18   ;;  %s1056_s17 = sphi %s1096_s17, %s1218_s17   ;;  %s1052_s16 = sphi %s1094_s16, %s1217_s16   ;;  %s1048_s15 = sphi %s1092_s15, %s1216_s15  }
   0x4   : > { %p27_p0 = scmp.ge.s32.totalorder %s26_s20, 2  ;;  %p50_p2 = scmp.eq.s32.totalorder %s1064_s19, 0 }
   0x5   : > { %s42_s22 = sadd.s32 1, %s1052_s16  ;;  %p850_p5 = scmp.ge.s32.totalorder %s1064_s19, 2 }
   0x6   : > { %s1221_s20 = smov (%p27_p0, %s26_s20), 0  ;;  %p51_p3 = por %p50_p2, %p49_p1 }
   0x7   : > { %s38_s21 = ssub.s32 %s1060_s18, %s1221_s20  ;;  %195 = sbr.rel (%p850_p5) target bundleno = 18 (0x12), region = 24 }
   0x8   : > { %p40_p4 = scmp.eq.s32.totalorder %s38_s21, 0 }
   0xa   : > { %s1127_s23 = scalar_select %p40_p4, %s1052_s16, %s42_s22  }
   0xc   : > { %198 = sbr.rel (!%p51_p3) target bundleno = 18 (0x12), region = 28  ;;  %s200_s24 = sand.u32 (%p51_p3), 1, %s1052_s16  }
   0xd   : > { %s902_s25 = sshll.u32 (%p51_p3), %s1060_s18, 4  ;;  %s851_s26 = sshll.u32 (%p51_p3), %s200_s24, 5 }
   0xe   : > { %s208_s29 = scalar_lea.vmem (%p51_p3), %s1211_s0, %s902_s25  ;;  %s202_s30 = scalar_lea.vmem (%p51_p3), [#allocation3], %s851_s26 }
   0xf   : > { %v221_v0 = vld [vmem:[%s208_s29] sm:$0xff] (%p51_p3)  ;;  %v223_v1 = vld [vmem:[%s208_s29 + $0x8] sm:$0xff] (%p51_p3) }
  0x10   : > { %v225_v2 = vld [vmem:[%s208_s29 + $0x20] sm:$0xff] (%p51_p3)  ;;  %222 = vst [vmem:[%s202_s30] sm:$0xff] (%p51_p3), %v221_v0  ;;  %224 = vst [vmem:[%s202_s30 + $0x8] sm:$0xff] (%p51_p3), %v223_v1  ;;  %v227_v3 = vld [vmem:[%s208_s29 + $0x28] sm:$0xff] (%p51_p3) }
  0x11   : > { %226 = vst [vmem:[%s202_s30 + $0x10] sm:$0xff] %v225_v2  ;;  %228 = vst [vmem:[%s202_s30 + $0x18] sm:$0xff] %v227_v3 }
  0x12 PF: > { %p854_p6 = scmp.ge.s32.totalorder %s1064_s19, 1  ;;  %p245_p7 = scmp.lt.s32.totalorder %s1064_s19, 3 }
  0x14   : > { %p246_p8 = pnand %p854_p6, %p245_p7 }
  0x15   : > { %s252_s5 = sand.u32 (!%p246_p8), 1, %s1048_s15   ;;  %s856_s6 = sshll.u32 (!%p246_p8), %s1056_s17, 6 }
  0x16   : > { %249 = sbr.rel (%p246_p8) target bundleno = 289 (0x121), region = 55  ;;  %s855_s7 = sshll.u32 (!%p246_p8), %s252_s5, 5 }
  0x17   : > { %p297_p9 = scmp.lt.s32.totalorder (!%p246_p8), %s856_s6, 127  ;;  %s1144_s12 = scalar_lea.vmem (!%p246_p8), [#allocation3], %s855_s7 }
  0x18   : > { %p858_p10 = scmp.ne.s32.totalorder (!%p246_p8), %s1056_s17, 0 }
  0x1b   : > { %s1223_s6 = smov (!%p297_p9, %s856_s6), 127  ;;  %324 = sbr.rel (%p858_p10) target bundleno = 34 (0x22), region = 63 }
  0x1c   : > { %s857_s8 = sshll.u32 %s1223_s6, 2 }
  0x1d   : > { %s1142_s11 = scalar_lea.vmem %s1212_s1, %s857_s8 }
  0x20   : > { %v1066_v4 = vmov 0.0  }
  0x21   : > { %325 = vst [vmem:[#allocation2] sm:$0xff] %v1066_v4  ;;  %326 = vst [vmem:[#allocation2 + $0x8] sm:$0xff] %v1066_v4 }
  0x22 PF: > { %v988_v5 = vld [vmem:[%s1142_s11 + $0x78] sm:$0xff]   ;;  %v992_v9 = vld [vmem:[%s1142_s11 + $0x70] sm:$0xff]   ;;  %v996_v13 = vld [vmem:[%s1142_s11 + $0x68] sm:$0xff]   ;;  %p895_p11 = scmp.ne.s32.totalorder %s1056_s17, 1 }
  0x23   : > { %v989_v6 = vld [vmem:[%s1142_s11 + $0xf8] sm:$0xff]   ;;  %903 = vmatprep.subr.bf16.mxu0 %v988_v5  ;;  %v993_v10 = vld [vmem:[%s1142_s11 + $0xf0] sm:$0xff]   ;;  %v997_v14 = vld [vmem:[%s1142_s11 + $0xe8] sm:$0xff]  }
  0x24   : > { %v990_v7 = vld [vmem:[%s1142_s11 + $0x38] sm:$0xff]   ;;  %925 = vmatprep.subr.bf16.mxu1 %v989_v6  ;;  %v994_v11 = vld [vmem:[%s1142_s11 + $0x30] sm:$0xff]   ;;  %v998_v15 = vld [vmem:[%s1142_s11 + $0x28] sm:$0xff]  }
  0x25   : > { %v991_v8 = vld [vmem:[%s1142_s11 + $0xb8] sm:$0xff]   ;;  %904 = vmatpush3.bf16.msra.mxu0 %v990_v7  ;;  %v995_v12 = vld [vmem:[%s1142_s11 + $0xb0] sm:$0xff]   ;;  %v999_v16 = vld [vmem:[%s1142_s11 + $0xa8] sm:$0xff]  }
  0x26   : > { %926 = vmatpush3.bf16.msra.mxu1 %v991_v8  ;;  %905 = vmatprep.subr.bf16.mxu0 %v992_v9  ;;  %v1000_v17 = vld [vmem:[%s1142_s11 + $0x60] sm:$0xff]   ;;  %v1004_v21 = vld [vmem:[%s1142_s11 + $0x58] sm:$0xff]   ;;  %v1008_v25 = vld [vmem:[%s1142_s11 + $0x50] sm:$0xff]  }
  0x27   : > { %927 = vmatprep.subr.bf16.mxu1 %v993_v10  ;;  %v1001_v18 = vld [vmem:[%s1142_s11 + $0xe0] sm:$0xff]   ;;  %v1005_v22 = vld [vmem:[%s1142_s11 + $0xd8] sm:$0xff]   ;;  %v1009_v26 = vld [vmem:[%s1142_s11 + $0xd0] sm:$0xff]  }
  0x28   : > { %v1002_v19 = vld [vmem:[%s1142_s11 + $0x20] sm:$0xff]   ;;  %v1006_v23 = vld [vmem:[%s1142_s11 + $0x18] sm:$0xff]   ;;  %v1010_v27 = vld [vmem:[%s1142_s11 + $0x10] sm:$0xff]  }
  0x29   : > { %906 = vmatpush3.bf16.msra.mxu0 %v994_v11  ;;  %v1003_v20 = vld [vmem:[%s1142_s11 + $0xa0] sm:$0xff]   ;;  %v1007_v24 = vld [vmem:[%s1142_s11 + $0x98] sm:$0xff]   ;;  %v1011_v28 = vld [vmem:[%s1142_s11 + $0x90] sm:$0xff]  }
  0x2a   : > { %928 = vmatpush3.bf16.msra.mxu1 %v995_v12  ;;  %907 = vmatprep.subr.bf16.mxu0 %v996_v13  ;;  %v1012_v29 = vld [vmem:[%s1142_s11 + $0x48] sm:$0xff]   ;;  %v1016_v33 = vld [vmem:[%s1142_s11 + $0x40] sm:$0xff]  }
  0x2b   : > { %929 = vmatprep.subr.bf16.mxu1 %v997_v14  ;;  %v1013_v30 = vld [vmem:[%s1142_s11 + $0xc8] sm:$0xff]   ;;  %v1017_v34 = vld [vmem:[%s1142_s11 + $0xc0] sm:$0xff]  }
  0x2c   : > { %v1014_v31 = vld [vmem:[%s1142_s11 + $0x8] sm:$0xff]   ;;  %v1018_v35 = vld [vmem:[%s1142_s11] sm:$0xff]  }
  0x2d   : > { %908 = vmatpush3.bf16.msra.mxu0 %v998_v15  ;;  %v1015_v32 = vld [vmem:[%s1142_s11 + $0x88] sm:$0xff]   ;;  %v1019_v36 = vld [vmem:[%s1142_s11 + $0x80] sm:$0xff]  }
  0x2e   : > { %930 = vmatpush3.bf16.msra.mxu1 %v999_v16  ;;  %909 = vmatprep.subr.bf16.mxu0 %v1000_v17  ;;  %v1020_v37 = vld [vmem:[%s1144_s12] ss:$16 sps:$4 sm:$0xff]   ;;  %v1022_v38 = vld [vmem:[%s1144_s12 + $0x4] ss:$16 sps:$4 sm:$0xff]   ;;  %v1023_v39 = vld [vmem:[%s1144_s12 + $0x8] ss:$16 sps:$4 sm:$0xff]  }
  0x2f   : > { %931 = vmatprep.subr.bf16.mxu1 %v1001_v18  ;;  %v1025_v40 = vld [vmem:[%s1144_s12 + $0xc] ss:$16 sps:$4 sm:$0xff]   ;;  %641 = vmatprep.mubr.bf16.mxu0 %v1022_v38  ;;  %v327_v48 = vld [vmem:[#allocation2] sm:$0xff] }
  0x30   : > { %682 = vmatprep.mubr.bf16.mxu1 %v1025_v40  ;;  %v328_v56 = vld [vmem:[#allocation2 + $0x8] sm:$0xff] }
  0x31   : > { %910 = vmatpush3.bf16.msra.mxu0 %v1002_v19 }
  0x32   : > { %932 = vmatpush3.bf16.msra.mxu1 %v1003_v20  ;;  %911 = vmatprep.subr.bf16.mxu0 %v1004_v21 }
  0x33   : > { %933 = vmatprep.subr.bf16.mxu1 %v1005_v22 }
  0x35   : > { %912 = vmatpush3.bf16.msra.mxu0 %v1006_v23 }
  0x36   : > { %934 = vmatpush3.bf16.msra.mxu1 %v1007_v24  ;;  %913 = vmatprep.subr.bf16.mxu0 %v1008_v25 }
  0x37   : > { %935 = vmatprep.subr.bf16.mxu1 %v1009_v26 }
  0x39   : > { %914 = vmatpush3.bf16.msra.mxu0 %v1010_v27 }
  0x3a   : > { %936 = vmatpush3.bf16.msra.mxu1 %v1011_v28  ;;  %915 = vmatprep.subr.bf16.mxu0 %v1012_v29 }
  0x3b   : > { %937 = vmatprep.subr.bf16.mxu1 %v1013_v30 }
  0x3d   : > { %916 = vmatpush3.bf16.msra.mxu0 %v1014_v31 }
  0x3e   : > { %938 = vmatpush3.bf16.msra.mxu1 %v1015_v32  ;;  %917 = vmatprep.subr.bf16.mxu0 %v1016_v33 }
  0x3f   : > { %939 = vmatprep.subr.bf16.mxu1 %v1017_v34 }
  0x41   : > { %918 = vmatpush3.bf16.msra.mxu0 %v1018_v35 }
  0x42   : > { %940 = vmatpush3.bf16.msra.mxu1 %v1019_v36 }
  0x44   : > { %642 = vmatmul.mubr.bf16.vlgmr.msra.gmra.mxu0 %v1020_v37 }
  0x45   : > { %683 = vmatmul.mubr.bf16.vlgmr.msra.gmra.mxu1 %v1023_v39 }
 0x104   : > { %v919_v41 = vpop.f32.mrf.mxu0 }
 0x105   : > { %v941_v42 = vpop.f32.mrf.mxu1 }
 0x106   : > { %v920_v43 = vpop.f32.mrf.mxu0 }
 0x107   : > { %v921_v44 = vadd.f32 %v920_v43, %v919_v41  ;;  %v942_v45 = vpop.f32.mrf.mxu1 }
 0x108   : > { %v943_v46 = vadd.f32 %v942_v45, %v941_v42  ;;  %v922_v47 = vpop.f32.mrf.mxu0 }
 0x109   : > { %v944_v49 = vpop.f32.mrf.mxu1 }
 0x10a   : > { %v685_v50 = vadd.f32 %v943_v46, %v921_v44  ;;  %v923_v51 = vpop.f32.mrf.mxu0 }
 0x10b   : > { %v924_v52 = vadd.f32 %v923_v51, %v922_v47  ;;  %v945_v53 = vpop.f32.mrf.mxu1 }
 0x10c   : > { %v691_v54 = vadd.f32 %v685_v50, %v327_v48  ;;  %v946_v55 = vadd.f32 %v945_v53, %v944_v49 }
 0x10e   : > { %693 = vst [vmem:[#allocation2] sm:$0xff] %v691_v54  ;;  %v688_v57 = vadd.f32 %v946_v55, %v924_v52  ;;  %698 = sbr.rel (%p895_p11) target bundleno = 289 (0x121), region = 67 }
 0x110   : > { %v692_v58 = vadd.f32 %v688_v57, %v328_v56 }
 0x112   : > { %694 = vst [vmem:[#allocation2 + $0x8] sm:$0xff] %v692_v58 }
 0x113   : > { %v896_v60 = vld [vmem:[%s1213_s2] ss:$0 sm:$0xff] }
 0x114   : > { %v897_v61 = vld [vmem:[%s1214_s3] ss:$0 sm:$0xff] }
 0x115   : > { %v699_v59 = vld [vmem:[#allocation2] sm:$0xff] }
 0x116   : > { %v708_v62 = vmul.f32 %v896_v60, %v699_v59 }
 0x118   : > { %v717_v1 = vadd.f32 %v897_v61, %v708_v62 }
 0x119   : > { %v700_v63 = vld [vmem:[#allocation2 + $0x8] sm:$0xff] }
 0x11a   : > { %v709_v0 = vmul.f32 %v896_v60, %v700_v63  ;;  %v719_v3 = vmax.f32 %v717_v1, 0.0 }
 0x11c   : > { %v718_v2 = vadd.f32 %v897_v61, %v709_v0  ;;  %721 = vst [vmem:[%s1215_s4] sm:$0xff] %v719_v3 }
 0x11e   : > { %v720_v4 = vmax.f32 %v718_v2, 0.0 }
 0x120   : > { %722 = vst [vmem:[%s1215_s4 + $0x8] sm:$0xff] %v720_v4 }
 0x121 PF: > { %s14_s19 = sadd.s32 1, %s1064_s19   ;;  %s1216_s15 = smov %s1052_s16 }
 0x122   : > { %p11_p12 = scmp.ge.s32.totalorder %s14_s19, 4   ;;  %s1217_s16 = smov %s1127_s23 }
 0x123   : > { %s1218_s17 = smov %s1060_s18  ;;  %s1219_s18 = smov %s1221_s20 }
 0x124   :  { %13 = sbr.rel (!%p11_p12) target bundleno = 3 (0x3), region = 111 }

// kernel: autodeeplab_forward.200
= control target key start
LH: loop header
LB: loop body
LE: loop exit
PB: predicated region body
PF: predicated region fallthrough
CT: control target
= control target key end

     0   :  { %s392_s1 = inlined_call_operand.vmem [shape: bf16[256,128], index: 1, kind: input, shape index: {}]   ;;  %s393_s0 = inlined_call_operand.vmem [shape: bf16[16,256], index: 0, kind: input, shape index: {}]   ;;  %s394_s2 = inlined_call_operand.vmem [shape: f32[1,128], index: 2, kind: input, shape index: {}]   ;;  %s395_s3 = inlined_call_operand.vmem [shape: f32[1,128], index: 3, kind: input, shape index: {}]   ;;  %s396_s4 = inlined_call_operand.vmem [shape: f32[16,128], index: 4, kind: output, shape index: {}]  }
   0x1   :  { %v282_v0 = vld [vmem:[%s392_s1 + $0x78] sm:$0xff]   ;;  %v284_v2 = vld [vmem:[%s392_s1 + $0x70] sm:$0xff]   ;;  %v286_v4 = vld [vmem:[%s392_s1 + $0x68] sm:$0xff]  }
   0x2   :  { %v283_v1 = vld [vmem:[%s392_s1 + $0x38] sm:$0xff]   ;;  %260 = vmatprep.subr.bf16.mxu0 %v282_v0  ;;  %v285_v3 = vld [vmem:[%s392_s1 + $0x30] sm:$0xff]   ;;  %v287_v5 = vld [vmem:[%s392_s1 + $0x28] sm:$0xff]  }
   0x3   :  { %261 = vmatpush3.bf16.msra.mxu0 %v283_v1  ;;  %v288_v6 = vld [vmem:[%s392_s1 + $0x60] sm:$0xff]   ;;  %v290_v8 = vld [vmem:[%s392_s1 + $0x58] sm:$0xff]   ;;  %v292_v10 = vld [vmem:[%s392_s1 + $0x50] sm:$0xff]  }
   0x4   :  { %262 = vmatprep.subr.bf16.mxu0 %v284_v2  ;;  %v289_v7 = vld [vmem:[%s392_s1 + $0x20] sm:$0xff]   ;;  %v291_v9 = vld [vmem:[%s392_s1 + $0x18] sm:$0xff]   ;;  %v293_v12 = vld [vmem:[%s392_s1 + $0x10] sm:$0xff]  }
   0x5   :  { %v300_v11 = vld [vmem:[%s393_s0 + $0x4] ss:$8 sps:$4 sm:$0xff]   ;;  %v298_v17 = vld [vmem:[%s393_s0] ss:$8 sps:$4 sm:$0xff]  }
   0x6   :  { %198 = vmatprep.mubr.bf16.mxu0 %v300_v11  ;;  %v294_v13 = vld [vmem:[%s392_s1 + $0x48] sm:$0xff]   ;;  %v296_v15 = vld [vmem:[%s392_s1 + $0x40] sm:$0xff]  }
   0x7   :  { %263 = vmatpush3.bf16.msra.mxu0 %v285_v3  ;;  %v295_v14 = vld [vmem:[%s392_s1 + $0x8] sm:$0xff]   ;;  %v297_v16 = vld [vmem:[%s392_s1] sm:$0xff]  }
   0x8   :  { %264 = vmatprep.subr.bf16.mxu0 %v286_v4  ;;  %v258_v20 = vld [vmem:[%s394_s2] ss:$0 sm:$0xff] }
   0x9   :  { %v259_v22 = vld [vmem:[%s395_s3] ss:$0 sm:$0xff] }
   0xb   :  { %265 = vmatpush3.bf16.msra.mxu0 %v287_v5 }
   0xc   :  { %266 = vmatprep.subr.bf16.mxu0 %v288_v6 }
   0xf   :  { %267 = vmatpush3.bf16.msra.mxu0 %v289_v7 }
  0x10   :  { %268 = vmatprep.subr.bf16.mxu0 %v290_v8 }
  0x13   :  { %269 = vmatpush3.bf16.msra.mxu0 %v291_v9 }
  0x14   :  { %270 = vmatprep.subr.bf16.mxu0 %v292_v10 }
  0x17   :  { %271 = vmatpush3.bf16.msra.mxu0 %v293_v12 }
  0x18   :  { %272 = vmatprep.subr.bf16.mxu0 %v294_v13 }
  0x1b   :  { %273 = vmatpush3.bf16.msra.mxu0 %v295_v14 }
  0x1c   :  { %274 = vmatprep.subr.bf16.mxu0 %v296_v15 }
  0x1f   :  { %275 = vmatpush3.bf16.msra.mxu0 %v297_v16 }
  0x22   :  { %199 = vmatmul.mubr.bf16.vlgmr.msra.gmra.mxu0 %v298_v17 }
  0xe2   :  { %v276_v18 = vpop.f32.mrf.mxu0 }
  0xe4   :  { %v277_v19 = vpop.f32.mrf.mxu0 }
  0xe5   :  { %v278_v21 = vadd.f32 %v277_v19, %v276_v18 }
  0xe6   :  { %v279_v23 = vpop.f32.mrf.mxu0 }
  0xe7   :  { %v223_v24 = vmul.f32 %v278_v21, %v258_v20 }
  0xe8   :  { %v280_v25 = vpop.f32.mrf.mxu0 }
  0xe9   :  { %v232_v26 = vadd.f32 %v259_v22, %v223_v24  ;;  %v281_v27 = vadd.f32 %v280_v25, %v279_v23 }
  0xeb   :  { %234 = vst [vmem:[%s396_s4] sm:$0xff] %v232_v26  ;;  %v224_v28 = vmul.f32 %v281_v27, %v258_v20 }
  0xed   :  { %v233_v29 = vadd.f32 %v259_v22, %v224_v28 }
  0xef   :  { %235 = vst [vmem:[%s396_s4 + $0x8] sm:$0xff] %v233_v29 }

</bundles_post_ra>
